<compile_context>
chip_gen: v6e
topology: v6e:2x2x1
jax: 0.10.0
libtpu: 0.0.40
codegen_flags: <defaults>
</compile_context>

<pallas_src>
import functools

import jax
import jax.numpy as jnp
from jax.experimental import pallas as pl
from jax.experimental.pallas import tpu as pltpu

CLASSES = 2
BN_EPS = 1e-5


# ----------------------------------------------------------------------------
# Pallas kernel 1: generic tiled matmul   out = relu?(A @ B + bias)
#   grid = (N tiles ["parallel"], K tiles ["arbitrary", trailing]).
#   Accumulates directly into the resident f32 output block (no acc scratch).
# ----------------------------------------------------------------------------
def _matmul_bias_kernel(a_ref, b_ref, bias_ref, o_ref, *, relu):
    k = pl.program_id(1)

    @pl.when(k == 0)
    def _():
        o_ref[...] = jnp.zeros_like(o_ref)

    o_ref[...] += jnp.dot(a_ref[...], b_ref[...],
                          preferred_element_type=jnp.float32)

    @pl.when(k == pl.num_programs(1) - 1)
    def _():
        r = o_ref[...] + bias_ref[...]
        if relu:
            r = jnp.maximum(r, 0.0)
        o_ref[...] = r


def matmul_bias(a, b, bias, *, relu=False, tk=None, tn=None):
    """relu?(a @ b + bias); a:(M,K) b:(K,N) bias:(N,). bf16 operands, f32 acc."""
    M, K = a.shape
    K2, N = b.shape
    assert K == K2
    if tk is None or tk > K:
        tk = K
    if tn is None or tn > N:
        tn = N
    assert K % tk == 0 and N % tn == 0
    nk, nn = K // tk, N // tn
    bias2 = bias.reshape(1, N).astype(jnp.float32)

    kernel = functools.partial(_matmul_bias_kernel, relu=relu)
    return pl.pallas_call(
        kernel,
        out_shape=jax.ShapeDtypeStruct((M, N), jnp.float32),
        grid_spec=pltpu.PrefetchScalarGridSpec(
            num_scalar_prefetch=0,
            grid=(nn, nk),
            in_specs=[
                pl.BlockSpec((M, tk), lambda n, k: (0, k)),
                pl.BlockSpec((tk, tn), lambda n, k: (k, n)),
                pl.BlockSpec((1, tn), lambda n, k: (0, n)),
            ],
            out_specs=pl.BlockSpec((M, tn), lambda n, k: (0, n)),
        ),
        compiler_params=pltpu.CompilerParams(
            dimension_semantics=("parallel", "arbitrary")),
    )(a.astype(jnp.bfloat16), b.astype(jnp.bfloat16), bias2)


# ----------------------------------------------------------------------------
# Pallas kernel 2: fused FCNHead
#   conv3x3(BN-folded, bias) + ReLU + conv1x1, K-reduction over the 9*C im2col
#   columns, N (= inter channels) tiled "parallel".  Each N-tile writes its
#   partial contribution to the class logits; partials are summed outside.
# ----------------------------------------------------------------------------
def _fcn_head_kernel(a_ref, w3_ref, b3_ref, w1_ref, o_ref, acc_ref):
    k = pl.program_id(1)

    @pl.when(k == 0)
    def _():
        acc_ref[...] = jnp.zeros_like(acc_ref)

    acc_ref[...] += jnp.dot(a_ref[...], w3_ref[...],
                            preferred_element_type=jnp.float32)

    @pl.when(k == pl.num_programs(1) - 1)
    def _():
        hid = jnp.maximum(acc_ref[...] + b3_ref[...], 0.0)   # folded BN + ReLU
        # fused conv1x1: this N-tile's partial contribution to the logits
        o_ref[...] = jnp.dot(hid.astype(jnp.bfloat16), w1_ref[...],
                             preferred_element_type=jnp.float32)


def fcn_head(feat_nhwc, head_params, classes):
    n, h, w, cin = feat_nhwc.shape
    inter = cin // 4
    w3f, b3f, w1, b1 = fold_head(head_params)
    a = im2col3x3(feat_nhwc)                       # (M, 9*cin)
    M = n * h * w
    tk = cin                                       # one 3x3 tap per K step
    tn = inter // 2 if (inter // 2) % 128 == 0 else inter
    nk, nn = (9 * cin) // tk, inter // tn

    partial = pl.pallas_call(
        _fcn_head_kernel,
        out_shape=jax.ShapeDtypeStruct((nn, M, classes), jnp.float32),
        grid_spec=pltpu.PrefetchScalarGridSpec(
            num_scalar_prefetch=0,
            grid=(nn, nk),
            in_specs=[
                pl.BlockSpec((M, tk), lambda ni, k: (0, k)),
                pl.BlockSpec((tk, tn), lambda ni, k: (k, ni)),
                pl.BlockSpec((1, tn), lambda ni, k: (0, ni)),
                pl.BlockSpec((tn, classes), lambda ni, k: (ni, 0)),
            ],
            out_specs=pl.BlockSpec((None, M, classes),
                                   lambda ni, k: (ni, 0, 0)),
            scratch_shapes=[pltpu.VMEM((M, tn), jnp.float32)],
        ),
        compiler_params=pltpu.CompilerParams(
            dimension_semantics=("parallel", "arbitrary")),
    )(a.astype(jnp.bfloat16), w3f.astype(jnp.bfloat16),
      b3f.reshape(1, inter).astype(jnp.float32), w1.astype(jnp.bfloat16))

    logits = partial.sum(axis=0) + b1[None, :]
    return logits.reshape(n, h, w, classes)


# ----------------------------------------------------------------------------
# Glue: im2col for 3x3/pad=1 conv, bilinear-interp matrices, BN folding
# ----------------------------------------------------------------------------
def im2col3x3(x_nhwc):
    n, h, w, c = x_nhwc.shape
    xp = jnp.pad(x_nhwc, ((0, 0), (1, 1), (1, 1), (0, 0)))
    cols = []
    for dh in range(3):
        for dw in range(3):
            cols.append(xp[:, dh:dh + h, dw:dw + w, :])
    return jnp.concatenate(cols, axis=-1).reshape(n * h * w, 9 * c)


def bilinear_matrix(in_size, out_size):
    # F.interpolate(mode='bilinear', align_corners=False) as a (out, in) matrix
    src = (jnp.arange(out_size, dtype=jnp.float32) + 0.5) * (in_size / out_size) - 0.5
    src = jnp.clip(src, 0.0, in_size - 1.0)
    i0 = jnp.floor(src).astype(jnp.int32)
    i1 = jnp.minimum(i0 + 1, in_size - 1)
    w1 = src - i0.astype(jnp.float32)
    w0 = 1.0 - w1
    return (w0[:, None] * jax.nn.one_hot(i0, in_size, dtype=jnp.float32)
            + w1[:, None] * jax.nn.one_hot(i1, in_size, dtype=jnp.float32))


def fold_head(h):
    """FCNHead = Conv3x3(no bias) + BN(eval) + ReLU + Dropout(eval=id) + Conv1x1."""
    inter, cin, _, _ = h["w3"].shape
    # torch OIHW -> (kh, kw, cin, cout) -> (9*cin, cout) to match im2col order
    w3 = jnp.transpose(h["w3"], (2, 3, 1, 0)).reshape(9 * cin, inter)
    scale = h["gamma"] / jnp.sqrt(h["var"] + BN_EPS)
    w3f = w3 * scale[None, :]
    b3f = h["beta"] - h["mean"] * scale
    w1 = jnp.transpose(h["w1"][:, :, 0, 0], (1, 0))  # (inter, classes)
    return w3f, b3f, w1, h["b1"]


# ----------------------------------------------------------------------------
# Deterministic parameter init (synthetic; shapes follow the module __init__)
# ----------------------------------------------------------------------------
def init_params(key, classes=CLASSES, in_ch=3):
    ks = list(jax.random.split(key, 16))

    def normal(k, shape, fan_in):
        return jax.random.normal(k, shape, jnp.float32) / jnp.sqrt(fan_in)

    p = {}
    # surrogate backbone (stride-8 patchify -> linear); see TODO(synk) above
    patch_dim = 8 * 8 * in_ch
    p["bb_w_out"] = normal(ks[0], (patch_dim, 2048), float(patch_dim))
    p["bb_b_out"] = jnp.zeros((2048,), jnp.float32)
    p["bb_w_aux"] = normal(ks[1], (patch_dim, 1024), float(patch_dim))
    p["bb_b_aux"] = jnp.zeros((1024,), jnp.float32)

    def head(keys, cin):
        kc, kg, kb, km, kv, kcls = keys
        inter = cin // 4
        return dict(
            w3=normal(kc, (inter, cin, 3, 3), 9.0 * cin),           # Conv3x3, bias=False
            gamma=jax.random.uniform(kg, (inter,), jnp.float32, 0.5, 1.5),
            beta=0.1 * jax.random.normal(kb, (inter,), jnp.float32),
            mean=0.1 * jax.random.normal(km, (inter,), jnp.float32),
            var=jax.random.uniform(kv, (inter,), jnp.float32, 0.5, 1.5),
            w1=normal(kcls, (classes, inter, 1, 1), float(inter)),  # Conv1x1
            b1=jnp.zeros((classes,), jnp.float32),
        )

    p["head_main"] = head(ks[2:8], 2048)
    p["head_aux"] = head(ks[8:14], 1024)
    return p


# ----------------------------------------------------------------------------
# Forward pass (FCN_CNSN eval path)
# ----------------------------------------------------------------------------
def fcn_cnsn_forward(x_nchw, params, classes=CLASSES):
    n, cin, H, W = x_nchw.shape
    x_nhwc = jnp.transpose(x_nchw, (0, 2, 3, 1))

    # ---- surrogate backbone: one merged matmul for 'out' (2048) + 'aux' (1024)
    h8, w8 = H // 8, W // 8
    patches = (x_nhwc.reshape(n, h8, 8, w8, 8, cin)
               .transpose(0, 1, 3, 2, 4, 5)
               .reshape(n * h8 * w8, 8 * 8 * cin))
    w_bb = jnp.concatenate([params["bb_w_out"], params["bb_w_aux"]], axis=1)  # (192, 3072)
    b_bb = jnp.concatenate([params["bb_b_out"], params["bb_b_aux"]], axis=0)
    feat_all = matmul_bias(patches, w_bb, b_bb, relu=True, tn=1536)
    feat_out = feat_all[:, :2048].reshape(n, h8, w8, 2048)
    feat_aux = feat_all[:, 2048:].reshape(n, h8, w8, 1024)

    # ---- FCNHead (conv3x3 + folded BN + ReLU + fused conv1x1), both branches
    out_main = fcn_head(feat_out, params["head_main"], classes)   # (n, h8, w8, C)
    out_aux = fcn_head(feat_aux, params["head_aux"], classes)

    # ---- bilinear upsample to input size (align_corners=False), separable,
    #      main + aux batched along the row axis
    mh = bilinear_matrix(h8, H)                 # (H, h8)
    mw = bilinear_matrix(w8, W)                 # (W, w8)
    y = jnp.stack([out_main, out_aux], axis=0)  # (2, n, h8, w8, classes)
    # interpolate along W
    yw = jnp.transpose(y, (0, 1, 4, 2, 3)).reshape(2 * n * classes * h8, w8)
    yw = matmul_bias(yw, mw.T, jnp.zeros((W,), jnp.float32))
    yw = yw.reshape(2, n, classes, h8, W)
    # interpolate along H
    yh = jnp.transpose(yw, (0, 1, 2, 4, 3)).reshape(2 * n * classes * W, h8)
    yh = matmul_bias(yh, mh.T, jnp.zeros((H,), jnp.float32))
    up = yh.reshape(2, n, classes, W, H).transpose(0, 1, 2, 4, 3)  # (2,n,C,H,W)

    # eval mode: FCN_CNSN returns result['out']; aux is computed by
    # FCN_RESNET.forward so we return it too.
    return up[0], up[1]


if __name__ == "__main__":
    key = jax.random.PRNGKey(0)
    pkey, xkey = jax.random.split(key)
    params = init_params(pkey)
    x = jax.random.normal(xkey, (2, 3, 16, 16), jnp.float32)   # NCHW input

    fwd = jax.jit(functools.partial(fcn_cnsn_forward, params=params))
    out_main, out_aux = fwd(x)
    jax.block_until_ready((out_main, out_aux))

    assert out_main.shape == (2, CLASSES, 16, 16), out_main.shape
    assert out_aux.shape == (2, CLASSES, 16, 16), out_aux.shape
    assert bool(jnp.all(jnp.isfinite(out_main)))
    assert bool(jnp.all(jnp.isfinite(out_aux)))
    print("KERNEL_OK")
</pallas_src>

<mosaic_0001>
module attributes {stable_mosaic.version = 11 : i64} {
  func.func @_matmul_bias_kernel(%arg0: i32, %arg1: i32, %arg2: memref<8x192xbf16, #tpu.memory_space<vmem>>, %arg3: memref<192x1536xbf16, #tpu.memory_space<vmem>>, %arg4: memref<1x1536xf32, #tpu.memory_space<vmem>>, %arg5: memref<8x1536xf32, #tpu.memory_space<vmem>>) attributes {dimension_semantics = [#tpu.dimension_semantics<parallel>, #tpu.dimension_semantics<arbitrary>], iteration_bounds = array<i64: 2, 1>, scalar_prefetch = 0 : i64, scratch_operands = 0 : i64, tpu.core_type = #tpu.core_type<tc>, window_params = [{transform_indices = @transform_0, window_bounds = array<i64: 8, 192>}, {transform_indices = @transform_1, window_bounds = array<i64: 192, 1536>}, {transform_indices = @transform_2, window_bounds = array<i64: 1, 1536>}, {transform_indices = @transform_3, window_bounds = array<i64: 8, 1536>}]} {
    %c0_i32 = arith.constant 0 : i32
    %0 = arith.cmpi eq, %arg1, %c0_i32 : i32
    %1 = arith.extui %0 : i1 to i32
    %c0_i32_0 = arith.constant 0 : i32
    %2 = arith.cmpi ne, %1, %c0_i32_0 : i32
    scf.if %2 {
      %cst_10 = arith.constant 0.000000e+00 : f32
      %12 = vector.broadcast %cst_10 : f32 to vector<8x1536xf32>
      %c0_11 = arith.constant 0 : index
      %c0_12 = arith.constant 0 : index
      %13 = vector.load %arg5[%c0_11, %c0_12] : memref<8x1536xf32, #tpu.memory_space<vmem>>, vector<8x1536xf32>
      tpu.vector_store %arg5[%c0_11, %c0_12], %12 {strides = array<i32>} : memref<8x1536xf32, #tpu.memory_space<vmem>>, vector<8x1536xf32>,
    } else {
    }
    %c0 = arith.constant 0 : index
    %c0_1 = arith.constant 0 : index
    %3 = vector.load %arg5[%c0, %c0_1] : memref<8x1536xf32, #tpu.memory_space<vmem>>, vector<8x1536xf32>
    %c0_2 = arith.constant 0 : index
    %c0_3 = arith.constant 0 : index
    %4 = vector.load %arg2[%c0_2, %c0_3] : memref<8x192xbf16, #tpu.memory_space<vmem>>, vector<8x192xbf16>
    %c0_4 = arith.constant 0 : index
    %c0_5 = arith.constant 0 : index
    %5 = vector.load %arg3[%c0_4, %c0_5] : memref<192x1536xbf16, #tpu.memory_space<vmem>>, vector<192x1536xbf16>
    %cst = arith.constant dense<0.000000e+00> : vector<8x1536xf32>
    %6 = tpu.matmul %4, %5, %cst {dimension_numbers = #tpu.dot_dimension_numbers<[1], [0], [0], [1], [0, 0, 1, 1], [], []>} : vector<8x192xbf16>, vector<192x1536xbf16>, vector<8x1536xf32> -> vector<8x1536xf32>
    %7 = arith.addf %3, %6 : vector<8x1536xf32>
    %c0_6 = arith.constant 0 : index
    %c0_7 = arith.constant 0 : index
    %8 = vector.load %arg5[%c0_6, %c0_7] : memref<8x1536xf32, #tpu.memory_space<vmem>>, vector<8x1536xf32>
    tpu.vector_store %arg5[%c0_6, %c0_7], %7 {strides = array<i32>} : memref<8x1536xf32, #tpu.memory_space<vmem>>, vector<8x1536xf32>,
    %c0_i32_8 = arith.constant 0 : i32
    %9 = arith.cmpi eq, %arg1, %c0_i32_8 : i32
    %10 = arith.extui %9 : i1 to i32
    %c0_i32_9 = arith.constant 0 : i32
    %11 = arith.cmpi ne, %10, %c0_i32_9 : i32
    scf.if %11 {
      %c0_10 = arith.constant 0 : index
      %c0_11 = arith.constant 0 : index
      %12 = vector.load %arg5[%c0_10, %c0_11] : memref<8x1536xf32, #tpu.memory_space<vmem>>, vector<8x1536xf32>
      %c0_12 = arith.constant 0 : index
      %c0_13 = arith.constant 0 : index
      %13 = vector.load %arg4[%c0_12, %c0_13] : memref<1x1536xf32, #tpu.memory_space<vmem>>, vector<1x1536xf32>
      %14 = vector.broadcast %13 : vector<1x1536xf32> to vector<8x1536xf32>
      %15 = arith.addf %12, %14 : vector<8x1536xf32>
      %cst_14 = arith.constant 0.000000e+00 : f32
      %16 = vector.broadcast %cst_14 : f32 to vector<8x1536xf32>
      %17 = arith.maximumf %15, %16 : vector<8x1536xf32>
      %c0_15 = arith.constant 0 : index
      %c0_16 = arith.constant 0 : index
      %18 = vector.load %arg5[%c0_15, %c0_16] : memref<8x1536xf32, #tpu.memory_space<vmem>>, vector<8x1536xf32>
      tpu.vector_store %arg5[%c0_15, %c0_16], %17 {strides = array<i32>} : memref<8x1536xf32, #tpu.memory_space<vmem>>, vector<8x1536xf32>,
    } else {
    }
    return
  }
  func.func @transform_0(%arg0: i32, %arg1: i32) -> (i32, i32) {
    %c0_i32 = arith.constant 0 : i32
    %c0_i32_0 = arith.constant 0 : i32
    return %c0_i32, %arg1 : i32, i32
  }
  func.func @transform_1(%arg0: i32, %arg1: i32) -> (i32, i32) {
    %c0_i32 = arith.constant 0 : i32
    return %arg1, %arg0 : i32, i32
  }
  func.func @transform_2(%arg0: i32, %arg1: i32) -> (i32, i32) {
    %c0_i32 = arith.constant 0 : i32
    %c0_i32_0 = arith.constant 0 : i32
    return %c0_i32, %arg0 : i32, i32
  }
  func.func @transform_3(%arg0: i32, %arg1: i32) -> (i32, i32) {
    %c0_i32 = arith.constant 0 : i32
    %c0_i32_0 = arith.constant 0 : i32
    return %c0_i32, %arg0 : i32, i32
  }
}

module attributes {stable_mosaic.version = 11 : i64} {
  func.func @_fcn_head_kernel(%arg0: i32, %arg1: i32, %arg2: memref<8x2048xbf16, #tpu.memory_space<vmem>>, %arg3: memref<2048x256xbf16, #tpu.memory_space<vmem>>, %arg4: memref<1x256xf32, #tpu.memory_space<vmem>>, %arg5: memref<256x2xbf16, #tpu.memory_space<vmem>>, %arg6: memref<1x8x2xf32, #tpu.memory_space<vmem>>, %arg7: memref<8x256xf32, #tpu.memory_space<vmem>>) attributes {dimension_semantics = [#tpu.dimension_semantics<parallel>, #tpu.dimension_semantics<arbitrary>], iteration_bounds = array<i64: 2, 9>, scalar_prefetch = 0 : i64, scratch_operands = 1 : i64, tpu.core_type = #tpu.core_type<tc>, window_params = [{transform_indices = @transform_0, window_bounds = array<i64: 8, 2048>}, {transform_indices = @transform_1, window_bounds = array<i64: 2048, 256>}, {transform_indices = @transform_2, window_bounds = array<i64: 1, 256>}, {transform_indices = @transform_3, window_bounds = array<i64: 256, 2>}, {transform_indices = @transform_4, window_bounds = array<i64: 1, 8, 2>}]} {
    %c0_i32 = arith.constant 0 : i32
    %0 = arith.cmpi eq, %arg1, %c0_i32 : i32
    %1 = arith.extui %0 : i1 to i32
    %c0_i32_0 = arith.constant 0 : i32
    %2 = arith.cmpi ne, %1, %c0_i32_0 : i32
    scf.if %2 {
      %cst_9 = arith.constant 0.000000e+00 : f32
      %12 = vector.broadcast %cst_9 : f32 to vector<8x256xf32>
      %c0_10 = arith.constant 0 : index
      %c0_11 = arith.constant 0 : index
      %13 = vector.load %arg7[%c0_10, %c0_11] : memref<8x256xf32, #tpu.memory_space<vmem>>, vector<8x256xf32>
      tpu.vector_store %arg7[%c0_10, %c0_11], %12 {strides = array<i32>} : memref<8x256xf32, #tpu.memory_space<vmem>>, vector<8x256xf32>,
    } else {
    }
    %c0 = arith.constant 0 : index
    %c0_1 = arith.constant 0 : index
    %3 = vector.load %arg7[%c0, %c0_1] : memref<8x256xf32, #tpu.memory_space<vmem>>, vector<8x256xf32>
    %c0_2 = arith.constant 0 : index
    %c0_3 = arith.constant 0 : index
    %4 = vector.load %arg2[%c0_2, %c0_3] : memref<8x2048xbf16, #tpu.memory_space<vmem>>, vector<8x2048xbf16>
    %c0_4 = arith.constant 0 : index
    %c0_5 = arith.constant 0 : index
    %5 = vector.load %arg3[%c0_4, %c0_5] : memref<2048x256xbf16, #tpu.memory_space<vmem>>, vector<2048x256xbf16>
    %cst = arith.constant dense<0.000000e+00> : vector<8x256xf32>
    %6 = tpu.matmul %4, %5, %cst {dimension_numbers = #tpu.dot_dimension_numbers<[1], [0], [0], [1], [0, 0, 1, 1], [], []>} : vector<8x2048xbf16>, vector<2048x256xbf16>, vector<8x256xf32> -> vector<8x256xf32>
    %7 = arith.addf %3, %6 : vector<8x256xf32>
    %c0_6 = arith.constant 0 : index
    %c0_7 = arith.constant 0 : index
    %8 = vector.load %arg7[%c0_6, %c0_7] : memref<8x256xf32, #tpu.memory_space<vmem>>, vector<8x256xf32>
    tpu.vector_store %arg7[%c0_6, %c0_7], %7 {strides = array<i32>} : memref<8x256xf32, #tpu.memory_space<vmem>>, vector<8x256xf32>,
    %c8_i32 = arith.constant 8 : i32
    %9 = arith.cmpi eq, %arg1, %c8_i32 : i32
    %10 = arith.extui %9 : i1 to i32
    %c0_i32_8 = arith.constant 0 : i32
    %11 = arith.cmpi ne, %10, %c0_i32_8 : i32
    scf.if %11 {
      %c0_9 = arith.constant 0 : index
      %c0_10 = arith.constant 0 : index
      %12 = vector.load %arg7[%c0_9, %c0_10] : memref<8x256xf32, #tpu.memory_space<vmem>>, vector<8x256xf32>
      %c0_11 = arith.constant 0 : index
      %c0_12 = arith.constant 0 : index
      %13 = vector.load %arg4[%c0_11, %c0_12] : memref<1x256xf32, #tpu.memory_space<vmem>>, vector<1x256xf32>
      %14 = vector.broadcast %13 : vector<1x256xf32> to vector<8x256xf32>
      %15 = arith.addf %12, %14 : vector<8x256xf32>
      %cst_13 = arith.constant 0.000000e+00 : f32
      %16 = vector.broadcast %cst_13 : f32 to vector<8x256xf32>
      %17 = arith.maximumf %15, %16 : vector<8x256xf32>
      %18 = arith.truncf %17 : vector<8x256xf32> to vector<8x256xbf16>
      %c0_14 = arith.constant 0 : index
      %c0_15 = arith.constant 0 : index
      %19 = vector.load %arg5[%c0_14, %c0_15] : memref<256x2xbf16, #tpu.memory_space<vmem>>, vector<256x2xbf16>
      %cst_16 = arith.constant dense<0.000000e+00> : vector<8x2xf32>
      %20 = tpu.matmul %18, %19, %cst_16 {dimension_numbers = #tpu.dot_dimension_numbers<[1], [0], [0], [1], [0, 0, 1, 1], [], []>} : vector<8x256xbf16>, vector<256x2xbf16>, vector<8x2xf32> -> vector<8x2xf32>
      %c0_17 = arith.constant 0 : index
      %c0_18 = arith.constant 0 : index
      %c0_19 = arith.constant 0 : index
      %21 = vector.load %arg6[%c0_17, %c0_18, %c0_19] : memref<1x8x2xf32, #tpu.memory_space<vmem>>, vector<1x8x2xf32>
      %22 = vector.shape_cast %21 : vector<1x8x2xf32> to vector<8x2xf32>
      %23 = vector.shape_cast %20 : vector<8x2xf32> to vector<1x8x2xf32>
      tpu.vector_store %arg6[%c0_17, %c0_18, %c0_19], %23 {strides = array<i32>} : memref<1x8x2xf32, #tpu.memory_space<vmem>>, vector<1x8x2xf32>,
    } else {
    }
    return
  }
  func.func @transform_0(%arg0: i32, %arg1: i32) -> (i32, i32) {
    %c0_i32 = arith.constant 0 : i32
    %c0_i32_0 = arith.constant 0 : i32
    return %c0_i32, %arg1 : i32, i32
  }
  func.func @transform_1(%arg0: i32, %arg1: i32) -> (i32, i32) {
    %c0_i32 = arith.constant 0 : i32
    return %arg1, %arg0 : i32, i32
  }
  func.func @transform_2(%arg0: i32, %arg1: i32) -> (i32, i32) {
    %c0_i32 = arith.constant 0 : i32
    %c0_i32_0 = arith.constant 0 : i32
    return %c0_i32, %arg0 : i32, i32
  }
  func.func @transform_3(%arg0: i32, %arg1: i32) -> (i32, i32) {
    %c0_i32 = arith.constant 0 : i32
    %c0_i32_0 = arith.constant 0 : i32
    return %arg0, %c0_i32 : i32, i32
  }
  func.func @transform_4(%arg0: i32, %arg1: i32) -> (i32, i32, i32) {
    %c0_i32 = arith.constant 0 : i32
    %c0_i32_0 = arith.constant 0 : i32
    %c0_i32_1 = arith.constant 0 : i32
    return %arg0, %c0_i32, %c0_i32_0 : i32, i32, i32
  }
}

module attributes {stable_mosaic.version = 11 : i64} {
  func.func @_fcn_head_kernel(%arg0: i32, %arg1: i32, %arg2: memref<8x1024xbf16, #tpu.memory_space<vmem>>, %arg3: memref<1024x128xbf16, #tpu.memory_space<vmem>>, %arg4: memref<1x128xf32, #tpu.memory_space<vmem>>, %arg5: memref<128x2xbf16, #tpu.memory_space<vmem>>, %arg6: memref<1x8x2xf32, #tpu.memory_space<vmem>>, %arg7: memref<8x128xf32, #tpu.memory_space<vmem>>) attributes {dimension_semantics = [#tpu.dimension_semantics<parallel>, #tpu.dimension_semantics<arbitrary>], iteration_bounds = array<i64: 2, 9>, scalar_prefetch = 0 : i64, scratch_operands = 1 : i64, tpu.core_type = #tpu.core_type<tc>, window_params = [{transform_indices = @transform_0, window_bounds = array<i64: 8, 1024>}, {transform_indices = @transform_1, window_bounds = array<i64: 1024, 128>}, {transform_indices = @transform_2, window_bounds = array<i64: 1, 128>}, {transform_indices = @transform_3, window_bounds = array<i64: 128, 2>}, {transform_indices = @transform_4, window_bounds = array<i64: 1, 8, 2>}]} {
    %c0_i32 = arith.constant 0 : i32
    %0 = arith.cmpi eq, %arg1, %c0_i32 : i32
    %1 = arith.extui %0 : i1 to i32
    %c0_i32_0 = arith.constant 0 : i32
    %2 = arith.cmpi ne, %1, %c0_i32_0 : i32
    scf.if %2 {
      %cst_9 = arith.constant 0.000000e+00 : f32
      %12 = vector.broadcast %cst_9 : f32 to vector<8x128xf32>
      %c0_10 = arith.constant 0 : index
      %c0_11 = arith.constant 0 : index
      %13 = vector.load %arg7[%c0_10, %c0_11] : memref<8x128xf32, #tpu.memory_space<vmem>>, vector<8x128xf32>
      tpu.vector_store %arg7[%c0_10, %c0_11], %12 {strides = array<i32>} : memref<8x128xf32, #tpu.memory_space<vmem>>, vector<8x128xf32>,
    } else {
    }
    %c0 = arith.constant 0 : index
    %c0_1 = arith.constant 0 : index
    %3 = vector.load %arg7[%c0, %c0_1] : memref<8x128xf32, #tpu.memory_space<vmem>>, vector<8x128xf32>
    %c0_2 = arith.constant 0 : index
    %c0_3 = arith.constant 0 : index
    %4 = vector.load %arg2[%c0_2, %c0_3] : memref<8x1024xbf16, #tpu.memory_space<vmem>>, vector<8x1024xbf16>
    %c0_4 = arith.constant 0 : index
    %c0_5 = arith.constant 0 : index
    %5 = vector.load %arg3[%c0_4, %c0_5] : memref<1024x128xbf16, #tpu.memory_space<vmem>>, vector<1024x128xbf16>
    %cst = arith.constant dense<0.000000e+00> : vector<8x128xf32>
    %6 = tpu.matmul %4, %5, %cst {dimension_numbers = #tpu.dot_dimension_numbers<[1], [0], [0], [1], [0, 0, 1, 1], [], []>} : vector<8x1024xbf16>, vector<1024x128xbf16>, vector<8x128xf32> -> vector<8x128xf32>
    %7 = arith.addf %3, %6 : vector<8x128xf32>
    %c0_6 = arith.constant 0 : index
    %c0_7 = arith.constant 0 : index
    %8 = vector.load %arg7[%c0_6, %c0_7] : memref<8x128xf32, #tpu.memory_space<vmem>>, vector<8x128xf32>
    tpu.vector_store %arg7[%c0_6, %c0_7], %7 {strides = array<i32>} : memref<8x128xf32, #tpu.memory_space<vmem>>, vector<8x128xf32>,
    %c8_i32 = arith.constant 8 : i32
    %9 = arith.cmpi eq, %arg1, %c8_i32 : i32
    %10 = arith.extui %9 : i1 to i32
    %c0_i32_8 = arith.constant 0 : i32
    %11 = arith.cmpi ne, %10, %c0_i32_8 : i32
    scf.if %11 {
      %c0_9 = arith.constant 0 : index
      %c0_10 = arith.constant 0 : index
      %12 = vector.load %arg7[%c0_9, %c0_10] : memref<8x128xf32, #tpu.memory_space<vmem>>, vector<8x128xf32>
      %c0_11 = arith.constant 0 : index
      %c0_12 = arith.constant 0 : index
      %13 = vector.load %arg4[%c0_11, %c0_12] : memref<1x128xf32, #tpu.memory_space<vmem>>, vector<1x128xf32>
      %14 = vector.broadcast %13 : vector<1x128xf32> to vector<8x128xf32>
      %15 = arith.addf %12, %14 : vector<8x128xf32>
      %cst_13 = arith.constant 0.000000e+00 : f32
      %16 = vector.broadcast %cst_13 : f32 to vector<8x128xf32>
      %17 = arith.maximumf %15, %16 : vector<8x128xf32>
      %18 = arith.truncf %17 : vector<8x128xf32> to vector<8x128xbf16>
      %c0_14 = arith.constant 0 : index
      %c0_15 = arith.constant 0 : index
      %19 = vector.load %arg5[%c0_14, %c0_15] : memref<128x2xbf16, #tpu.memory_space<vmem>>, vector<128x2xbf16>
      %cst_16 = arith.constant dense<0.000000e+00> : vector<8x2xf32>
      %20 = tpu.matmul %18, %19, %cst_16 {dimension_numbers = #tpu.dot_dimension_numbers<[1], [0], [0], [1], [0, 0, 1, 1], [], []>} : vector<8x128xbf16>, vector<128x2xbf16>, vector<8x2xf32> -> vector<8x2xf32>
      %c0_17 = arith.constant 0 : index
      %c0_18 = arith.constant 0 : index
      %c0_19 = arith.constant 0 : index
      %21 = vector.load %arg6[%c0_17, %c0_18, %c0_19] : memref<1x8x2xf32, #tpu.memory_space<vmem>>, vector<1x8x2xf32>
      %22 = vector.shape_cast %21 : vector<1x8x2xf32> to vector<8x2xf32>
      %23 = vector.shape_cast %20 : vector<8x2xf32> to vector<1x8x2xf32>
      tpu.vector_store %arg6[%c0_17, %c0_18, %c0_19], %23 {strides = array<i32>} : memref<1x8x2xf32, #tpu.memory_space<vmem>>, vector<1x8x2xf32>,
    } else {
    }
    return
  }
  func.func @transform_0(%arg0: i32, %arg1: i32) -> (i32, i32) {
    %c0_i32 = arith.constant 0 : i32
    %c0_i32_0 = arith.constant 0 : i32
    return %c0_i32, %arg1 : i32, i32
  }
  func.func @transform_1(%arg0: i32, %arg1: i32) -> (i32, i32) {
    %c0_i32 = arith.constant 0 : i32
    return %arg1, %arg0 : i32, i32
  }
  func.func @transform_2(%arg0: i32, %arg1: i32) -> (i32, i32) {
    %c0_i32 = arith.constant 0 : i32
    %c0_i32_0 = arith.constant 0 : i32
    return %c0_i32, %arg0 : i32, i32
  }
  func.func @transform_3(%arg0: i32, %arg1: i32) -> (i32, i32) {
    %c0_i32 = arith.constant 0 : i32
    %c0_i32_0 = arith.constant 0 : i32
    return %arg0, %c0_i32 : i32, i32
  }
  func.func @transform_4(%arg0: i32, %arg1: i32) -> (i32, i32, i32) {
    %c0_i32 = arith.constant 0 : i32
    %c0_i32_0 = arith.constant 0 : i32
    %c0_i32_1 = arith.constant 0 : i32
    return %arg0, %c0_i32, %c0_i32_0 : i32, i32, i32
  }
}

module attributes {stable_mosaic.version = 11 : i64} {
  func.func @_matmul_bias_kernel(%arg0: i32, %arg1: i32, %arg2: memref<16x2xbf16, #tpu.memory_space<vmem>>, %arg3: memref<2x16xbf16, #tpu.memory_space<vmem>>, %arg4: memref<1x16xf32, #tpu.memory_space<vmem>>, %arg5: memref<16x16xf32, #tpu.memory_space<vmem>>) attributes {dimension_semantics = [#tpu.dimension_semantics<parallel>, #tpu.dimension_semantics<arbitrary>], iteration_bounds = array<i64: 1, 1>, scalar_prefetch = 0 : i64, scratch_operands = 0 : i64, tpu.core_type = #tpu.core_type<tc>, window_params = [{transform_indices = @transform_0, window_bounds = array<i64: 16, 2>}, {transform_indices = @transform_1, window_bounds = array<i64: 2, 16>}, {transform_indices = @transform_2, window_bounds = array<i64: 1, 16>}, {transform_indices = @transform_3, window_bounds = array<i64: 16, 16>}]} {
    %c0_i32 = arith.constant 0 : i32
    %0 = arith.cmpi eq, %arg1, %c0_i32 : i32
    %1 = arith.extui %0 : i1 to i32
    %c0_i32_0 = arith.constant 0 : i32
    %2 = arith.cmpi ne, %1, %c0_i32_0 : i32
    scf.if %2 {
      %cst_10 = arith.constant 0.000000e+00 : f32
      %12 = vector.broadcast %cst_10 : f32 to vector<16x16xf32>
      %c0_11 = arith.constant 0 : index
      %c0_12 = arith.constant 0 : index
      %13 = vector.load %arg5[%c0_11, %c0_12] : memref<16x16xf32, #tpu.memory_space<vmem>>, vector<16x16xf32>
      tpu.vector_store %arg5[%c0_11, %c0_12], %12 {strides = array<i32>} : memref<16x16xf32, #tpu.memory_space<vmem>>, vector<16x16xf32>,
    } else {
    }
    %c0 = arith.constant 0 : index
    %c0_1 = arith.constant 0 : index
    %3 = vector.load %arg5[%c0, %c0_1] : memref<16x16xf32, #tpu.memory_space<vmem>>, vector<16x16xf32>
    %c0_2 = arith.constant 0 : index
    %c0_3 = arith.constant 0 : index
    %4 = vector.load %arg2[%c0_2, %c0_3] : memref<16x2xbf16, #tpu.memory_space<vmem>>, vector<16x2xbf16>
    %c0_4 = arith.constant 0 : index
    %c0_5 = arith.constant 0 : index
    %5 = vector.load %arg3[%c0_4, %c0_5] : memref<2x16xbf16, #tpu.memory_space<vmem>>, vector<2x16xbf16>
    %cst = arith.constant dense<0.000000e+00> : vector<16x16xf32>
    %6 = tpu.matmul %4, %5, %cst {dimension_numbers = #tpu.dot_dimension_numbers<[1], [0], [0], [1], [0, 0, 1, 1], [], []>} : vector<16x2xbf16>, vector<2x16xbf16>, vector<16x16xf32> -> vector<16x16xf32>
    %7 = arith.addf %3, %6 : vector<16x16xf32>
    %c0_6 = arith.constant 0 : index
    %c0_7 = arith.constant 0 : index
    %8 = vector.load %arg5[%c0_6, %c0_7] : memref<16x16xf32, #tpu.memory_space<vmem>>, vector<16x16xf32>
    tpu.vector_store %arg5[%c0_6, %c0_7], %7 {strides = array<i32>} : memref<16x16xf32, #tpu.memory_space<vmem>>, vector<16x16xf32>,
    %c0_i32_8 = arith.constant 0 : i32
    %9 = arith.cmpi eq, %arg1, %c0_i32_8 : i32
    %10 = arith.extui %9 : i1 to i32
    %c0_i32_9 = arith.constant 0 : i32
    %11 = arith.cmpi ne, %10, %c0_i32_9 : i32
    scf.if %11 {
      %c0_10 = arith.constant 0 : index
      %c0_11 = arith.constant 0 : index
      %12 = vector.load %arg5[%c0_10, %c0_11] : memref<16x16xf32, #tpu.memory_space<vmem>>, vector<16x16xf32>
      %c0_12 = arith.constant 0 : index
      %c0_13 = arith.constant 0 : index
      %13 = vector.load %arg4[%c0_12, %c0_13] : memref<1x16xf32, #tpu.memory_space<vmem>>, vector<1x16xf32>
      %14 = vector.broadcast %13 : vector<1x16xf32> to vector<16x16xf32>
      %15 = arith.addf %12, %14 : vector<16x16xf32>
      %c0_14 = arith.constant 0 : index
      %c0_15 = arith.constant 0 : index
      %16 = vector.load %arg5[%c0_14, %c0_15] : memref<16x16xf32, #tpu.memory_space<vmem>>, vector<16x16xf32>
      tpu.vector_store %arg5[%c0_14, %c0_15], %15 {strides = array<i32>} : memref<16x16xf32, #tpu.memory_space<vmem>>, vector<16x16xf32>,
    } else {
    }
    return
  }
  func.func @transform_0(%arg0: i32, %arg1: i32) -> (i32, i32) {
    %c0_i32 = arith.constant 0 : i32
    %c0_i32_0 = arith.constant 0 : i32
    return %c0_i32, %arg1 : i32, i32
  }
  func.func @transform_1(%arg0: i32, %arg1: i32) -> (i32, i32) {
    %c0_i32 = arith.constant 0 : i32
    return %arg1, %arg0 : i32, i32
  }
  func.func @transform_2(%arg0: i32, %arg1: i32) -> (i32, i32) {
    %c0_i32 = arith.constant 0 : i32
    %c0_i32_0 = arith.constant 0 : i32
    return %c0_i32, %arg0 : i32, i32
  }
  func.func @transform_3(%arg0: i32, %arg1: i32) -> (i32, i32) {
    %c0_i32 = arith.constant 0 : i32
    %c0_i32_0 = arith.constant 0 : i32
    return %c0_i32, %arg0 : i32, i32
  }
}

module attributes {stable_mosaic.version = 11 : i64} {
  func.func @_matmul_bias_kernel(%arg0: i32, %arg1: i32, %arg2: memref<128x2xbf16, #tpu.memory_space<vmem>>, %arg3: memref<2x16xbf16, #tpu.memory_space<vmem>>, %arg4: memref<1x16xf32, #tpu.memory_space<vmem>>, %arg5: memref<128x16xf32, #tpu.memory_space<vmem>>) attributes {dimension_semantics = [#tpu.dimension_semantics<parallel>, #tpu.dimension_semantics<arbitrary>], iteration_bounds = array<i64: 1, 1>, scalar_prefetch = 0 : i64, scratch_operands = 0 : i64, tpu.core_type = #tpu.core_type<tc>, window_params = [{transform_indices = @transform_0, window_bounds = array<i64: 128, 2>}, {transform_indices = @transform_1, window_bounds = array<i64: 2, 16>}, {transform_indices = @transform_2, window_bounds = array<i64: 1, 16>}, {transform_indices = @transform_3, window_bounds = array<i64: 128, 16>}]} {
    %c0_i32 = arith.constant 0 : i32
    %0 = arith.cmpi eq, %arg1, %c0_i32 : i32
    %1 = arith.extui %0 : i1 to i32
    %c0_i32_0 = arith.constant 0 : i32
    %2 = arith.cmpi ne, %1, %c0_i32_0 : i32
    scf.if %2 {
      %cst_10 = arith.constant 0.000000e+00 : f32
      %12 = vector.broadcast %cst_10 : f32 to vector<128x16xf32>
      %c0_11 = arith.constant 0 : index
      %c0_12 = arith.constant 0 : index
      %13 = vector.load %arg5[%c0_11, %c0_12] : memref<128x16xf32, #tpu.memory_space<vmem>>, vector<128x16xf32>
      tpu.vector_store %arg5[%c0_11, %c0_12], %12 {strides = array<i32>} : memref<128x16xf32, #tpu.memory_space<vmem>>, vector<128x16xf32>,
    } else {
    }
    %c0 = arith.constant 0 : index
    %c0_1 = arith.constant 0 : index
    %3 = vector.load %arg5[%c0, %c0_1] : memref<128x16xf32, #tpu.memory_space<vmem>>, vector<128x16xf32>
    %c0_2 = arith.constant 0 : index
    %c0_3 = arith.constant 0 : index
    %4 = vector.load %arg2[%c0_2, %c0_3] : memref<128x2xbf16, #tpu.memory_space<vmem>>, vector<128x2xbf16>
    %c0_4 = arith.constant 0 : index
    %c0_5 = arith.constant 0 : index
    %5 = vector.load %arg3[%c0_4, %c0_5] : memref<2x16xbf16, #tpu.memory_space<vmem>>, vector<2x16xbf16>
    %cst = arith.constant dense<0.000000e+00> : vector<128x16xf32>
    %6 = tpu.matmul %4, %5, %cst {dimension_numbers = #tpu.dot_dimension_numbers<[1], [0], [0], [1], [0, 0, 1, 1], [], []>} : vector<128x2xbf16>, vector<2x16xbf16>, vector<128x16xf32> -> vector<128x16xf32>
    %7 = arith.addf %3, %6 : vector<128x16xf32>
    %c0_6 = arith.constant 0 : index
    %c0_7 = arith.constant 0 : index
    %8 = vector.load %arg5[%c0_6, %c0_7] : memref<128x16xf32, #tpu.memory_space<vmem>>, vector<128x16xf32>
    tpu.vector_store %arg5[%c0_6, %c0_7], %7 {strides = array<i32>} : memref<128x16xf32, #tpu.memory_space<vmem>>, vector<128x16xf32>,
    %c0_i32_8 = arith.constant 0 : i32
    %9 = arith.cmpi eq, %arg1, %c0_i32_8 : i32
    %10 = arith.extui %9 : i1 to i32
    %c0_i32_9 = arith.constant 0 : i32
    %11 = arith.cmpi ne, %10, %c0_i32_9 : i32
    scf.if %11 {
      %c0_10 = arith.constant 0 : index
      %c0_11 = arith.constant 0 : index
      %12 = vector.load %arg5[%c0_10, %c0_11] : memref<128x16xf32, #tpu.memory_space<vmem>>, vector<128x16xf32>
      %c0_12 = arith.constant 0 : index
      %c0_13 = arith.constant 0 : index
      %13 = vector.load %arg4[%c0_12, %c0_13] : memref<1x16xf32, #tpu.memory_space<vmem>>, vector<1x16xf32>
      %14 = vector.broadcast %13 : vector<1x16xf32> to vector<128x16xf32>
      %15 = arith.addf %12, %14 : vector<128x16xf32>
      %c0_14 = arith.constant 0 : index
      %c0_15 = arith.constant 0 : index
      %16 = vector.load %arg5[%c0_14, %c0_15] : memref<128x16xf32, #tpu.memory_space<vmem>>, vector<128x16xf32>
      tpu.vector_store %arg5[%c0_14, %c0_15], %15 {strides = array<i32>} : memref<128x16xf32, #tpu.memory_space<vmem>>, vector<128x16xf32>,
    } else {
    }
    return
  }
  func.func @transform_0(%arg0: i32, %arg1: i32) -> (i32, i32) {
    %c0_i32 = arith.constant 0 : i32
    %c0_i32_0 = arith.constant 0 : i32
    return %c0_i32, %arg1 : i32, i32
  }
  func.func @transform_1(%arg0: i32, %arg1: i32) -> (i32, i32) {
    %c0_i32 = arith.constant 0 : i32
    return %arg1, %arg0 : i32, i32
  }
  func.func @transform_2(%arg0: i32, %arg1: i32) -> (i32, i32) {
    %c0_i32 = arith.constant 0 : i32
    %c0_i32_0 = arith.constant 0 : i32
    return %c0_i32, %arg0 : i32, i32
  }
  func.func @transform_3(%arg0: i32, %arg1: i32) -> (i32, i32) {
    %c0_i32 = arith.constant 0 : i32
    %c0_i32_0 = arith.constant 0 : i32
    return %c0_i32, %arg0 : i32, i32
  }
}

</mosaic_0001>

<bundles_post_ra>
// kernel: fcn_cnsn_forward.5
= control target key start
LH: loop header
LB: loop body
LE: loop exit
PB: predicated region body
PF: predicated region fallthrough
CT: control target
= control target key end

     0   :  { %8 = vsyncpa [#allocation3], 0  ;;  %s2483_s0 = inlined_call_operand.vmem [shape: bf16[8,192], index: 0, kind: input, shape index: {}]   ;;  %s2484_s1 = inlined_call_operand.hbm [shape: bf16[192,3072], index: 1, kind: input, shape index: {}]   ;;  %s2485_s2 = inlined_call_operand.vmem [shape: f32[1,3072], index: 2, kind: input, shape index: {}]   ;;  %s2486_s3 = inlined_call_operand.vmem [shape: f32[8,3072], index: 3, kind: output, shape index: {}]  }
   0x1   :  { %10 = vsyncpa [#allocation3 + $0x1], 0  ;;  %s2190_s12 = smov 0   ;;  %s2192_s13 = smov 0  }
   0x2   :  { %s2194_s14 = smov 0   ;;  %s2196_s15 = smov 0  }
   0x3   :  { %s2198_s16 = smov 0   ;;  %s2200_s17 = smov 0  }
   0x4 LB: > { %s1644_s18 = sadd.s32 4294967295, %s2164_s17   ;;  %s28_s19 = sadd.s32 1, %s2160_s16  ;;  %s2164_s17 = sphi %s2200_s17, %s16_s17   ;;  %s2160_s16 = sphi %s2198_s16, %s2493_s16   ;;  %s2156_s15 = sphi %s2196_s15, %s2492_s15   ;;  %s2152_s14 = sphi %s2194_s14, %s2491_s14   ;;  %s2148_s13 = sphi %s2192_s13, %s2490_s13   ;;  %s2144_s12 = sphi %s2190_s12, %s2489_s12  }
   0x5   : > { %p30_p0 = scmp.ge.s32.totalorder %s28_s19, 2  ;;  %s63_s20 = sadd.s32 1, %s2152_s14 }
   0x6   : > { %p70_p1 = scmp.ne.s32.totalorder %s2152_s14, %s2148_s13  ;;  %p71_p2 = scmp.eq.s32.totalorder %s2164_s17, 0 }
   0x7   : > { %s2495_s19 = smov (%p30_p0, %s28_s19), 0  ;;  %p76_p4 = scmp.ne.s32.totalorder %s2148_s13, %s2144_s12 }
   0x8   : > { %p72_p3 = por %p71_p2, %p70_p1  ;;  %s59_s21 = ssub.s32 %s2160_s16, %s2495_s19 }
   0x9   : > { %p77_p5 = scmp.eq.s32.totalorder %s1644_s18, 0  ;;  %p61_p6 = scmp.eq.s32.totalorder %s59_s21, 0 }
   0xa   : > { %p1815_p8 = scmp.lt.s32.totalorder %s2164_s17, 2  ;;  %s161_s24 = sand.u32 1, %s2152_s14  }
   0xb   : > { %p2229_p7 = por %p77_p5, %p76_p4  ;;  %s1806_s25 = smul.u32 768, %s2160_s16 }
   0xc   : > { %s2235_s23 = scalar_select %p61_p6, %s2152_s14, %s63_s20  }
   0xd   : > { %s1807_s26 = smul.u32 1152, %s161_s24  ;;  %s174_s29 = scalar_lea.hbm %s2484_s1, %s1806_s25 }
   0xe   : > { %p2242_p9 = pnand %p1815_p8, %p72_p3  ;;  %p1650_p10 = scmp.ge.s32.totalorder %s2164_s17, 1 }
   0xf   : > { %s165_s4 = scalar_lea.vmem [#allocation2], %s1807_s26  ;;  %s162_s6 = scalar_lea.sflag [#allocation3], %s161_s24 }
  0x10   : > { %s175_s5 = sshll.u32 %s165_s4, 4  ;;  %p2088_p11 = pneg %p2242_p9  ;;  %s176_s5 = int_to_ptr.vmem [resolvable:$true] %s175_s5 }
  0x11   : > { %s2099_s7 = scalar_lea.vmem %s176_s5, 18432  ;;  %s2166_s8 = smov [#allocation2]  }
  0x12   : > { %p2100_p12 = scmp.ne.s32.totalorder %s176_s5, %s2099_s7  ;;  %s2104_s9 = sshll.u32 %s2166_s8, 4  ;;  %s2105_s9 = int_to_ptr.vmem [resolvable:$false] %s2104_s9 }
  0x13   : > { %s2106_s10 = scalar_lea.vmem %s2105_s9, 36864  ;;  %p2107_p1 = scmp.lt.s32.totalorder %s176_s5, %s2105_s9 }
  0x14   : > { %p2102_p13 = pnand %p2100_p12, %p2088_p11  ;;  %p2108_p2 = scmp.lt.s32.totalorder %s2106_s10, %s2099_s7 }
  0x16   : > { %p2103_p0 = pneg %p2102_p13  ;;  %p2109_p3 = por %p2108_p2, %p2107_p1 }
  0x18   : > { %p2110_p4 = pnand %p2109_p3, %p2103_p0 }
  0x1a   : > { %2113 = shalt.err (!%p2110_p4)
}
  0x1b   : > { %s2167_s11 = smov 1536   ;;  %s2168_s12 = smov 768  }
  0x1c   : > { %s2169_s18 = smov 48   ;;  %p191_p5 = scmp.lt.s32.totalorder %s2164_s17, 3 }
  0x1d   : > { %1814 = dma.hbm_to_vmem [thread:$0]  (!%p2242_p9), %s174_s29, 18432, %s176_s5, %s162_s6, %s2167_s11, %s2168_s12, %s2169_s18  }
  0x1e   : > { %p192_p6 = pnand %p1650_p10, %p191_p5 }
  0x1f   : > { %s197_s20 = sand.u32 (!%p192_p6), 1, %s2148_s13  }
  0x20   : > { %195 = sbr.rel (%p192_p6) target bundleno = 383 (0x17f), region = 32  ;;  %s198_s24 = scalar_lea.sflag (!%p192_p6), [#allocation3], %s197_s20 }
  0x21   : > { %s1808_s21 = smul.u32 (!%p192_p6), 1152, %s197_s20 }
  0x23   : > { %s2255_s25 = scalar_lea.vmem (!%p192_p6), [#allocation2], %s1808_s21 }
  0x25   : > { %2139 = dma.done.wait (%p2229_p7), %s198_s24, 18432  }
  0x26   : > { %2141 = vsyncadd (%p2229_p7), %s198_s24, 4294948864  ;;  %v1868_v0 = vld [vmem:[%s2255_s25 + $0x2a4] ss:$48 sps:$4 sm:$0xff]   ;;  %v1870_v1 = vld [vmem:[%s2255_s25 + $0x2ac] ss:$48 sps:$4 sm:$0xff]   ;;  %vm1152_vm0 = vcmask 523264  }
  0x27   : > { %1156 = vmatprep.subr.bf16.mxu0 %v1868_v0  ;;  %v1872_v2 = vld [vmem:[%s2255_s25 + $0x2a0] ss:$48 sps:$4 sm:$0xff]   ;;  %v1873_v3 = vld [vmem:[%s2255_s25 + $0x2a8] ss:$48 sps:$4 sm:$0xff]   ;;  %1197 = vmatprep.subr.bf16.mxu1 %v1870_v1  ;;  %v1874_v4 = vld [vmem:[%s2255_s25 + $0x244] ss:$48 sps:$4 sm:$0xff]  }
  0x28   : > { %1157 = vmatpush1.bf16.msra.mxu0 %v1872_v2  ;;  %1198 = vmatpush1.bf16.msra.mxu1 %v1873_v3  ;;  %v1876_v5 = vld [vmem:[%s2255_s25 + $0x24c] ss:$48 sps:$4 sm:$0xff]   ;;  %v1878_v6 = vld [vmem:[%s2255_s25 + $0x240] ss:$48 sps:$4 sm:$0xff]   ;;  %v1879_v7 = vld [vmem:[%s2255_s25 + $0x248] ss:$48 sps:$4 sm:$0xff]  }
  0x29   : > { %1158 = vmatprep.subr.bf16.mxu0 %v1874_v4  ;;  %1199 = vmatprep.subr.bf16.mxu1 %v1876_v5  ;;  %v1880_v8 = vld [vmem:[%s2255_s25 + $0x1e4] ss:$48 sps:$4 sm:$0xff]   ;;  %v1882_v9 = vld [vmem:[%s2255_s25 + $0x1ec] ss:$48 sps:$4 sm:$0xff]   ;;  %v1884_v10 = vld [vmem:[%s2255_s25 + $0x1e0] ss:$48 sps:$4 sm:$0xff]  }
  0x2a   : > { %v1885_v11 = vld [vmem:[%s2255_s25 + $0x1e8] ss:$48 sps:$4 sm:$0xff]   ;;  %v1886_v12 = vld [vmem:[%s2255_s25 + $0x184] ss:$48 sps:$4 sm:$0xff]   ;;  %v1888_v13 = vld [vmem:[%s2255_s25 + $0x18c] ss:$48 sps:$4 sm:$0xff]  }
  0x2b   : > { %v1890_v14 = vld [vmem:[%s2255_s25 + $0x180] ss:$48 sps:$4 sm:$0xff]   ;;  %v1891_v15 = vld [vmem:[%s2255_s25 + $0x188] ss:$48 sps:$4 sm:$0xff]   ;;  %v1892_v16 = vld [vmem:[%s2255_s25 + $0x124] ss:$48 sps:$4 sm:$0xff]  }
  0x2c   : > { %1159 = vmatpush1.bf16.msra.mxu0 %v1878_v6  ;;  %1200 = vmatpush1.bf16.msra.mxu1 %v1879_v7  ;;  %v1894_v17 = vld [vmem:[%s2255_s25 + $0x12c] ss:$48 sps:$4 sm:$0xff]   ;;  %v1896_v18 = vld [vmem:[%s2255_s25 + $0x120] ss:$48 sps:$4 sm:$0xff]   ;;  %v1897_v19 = vld [vmem:[%s2255_s25 + $0x128] ss:$48 sps:$4 sm:$0xff]  }
  0x2d   : > { %1160 = vmatprep.subr.bf16.mxu0 %v1880_v8  ;;  %1201 = vmatprep.subr.bf16.mxu1 %v1882_v9  ;;  %v1898_v20 = vld [vmem:[%s2255_s25 + $0xc4] ss:$48 sps:$4 sm:$0xff]   ;;  %v1900_v21 = vld [vmem:[%s2255_s25 + $0xcc] ss:$48 sps:$4 sm:$0xff]   ;;  %v1902_v22 = vld [vmem:[%s2255_s25 + $0xc0] ss:$48 sps:$4 sm:$0xff]  }
  0x2e   : > { %v1903_v23 = vld [vmem:[%s2255_s25 + $0xc8] ss:$48 sps:$4 sm:$0xff]   ;;  %v1904_v24 = vld [vmem:[%s2255_s25 + $0x64] ss:$48 sps:$4 sm:$0xff]   ;;  %v1906_v25 = vld [vmem:[%s2255_s25 + $0x6c] ss:$48 sps:$4 sm:$0xff]  }
  0x2f   : > { %v1908_v26 = vld [vmem:[%s2255_s25 + $0x60] ss:$48 sps:$4 sm:$0xff]   ;;  %v1909_v27 = vld [vmem:[%s2255_s25 + $0x68] ss:$48 sps:$4 sm:$0xff]   ;;  %v1910_v28 = vld [vmem:[%s2255_s25 + $0x4] ss:$48 sps:$4 sm:$0xff]  }
  0x30   : > { %1161 = vmatpush1.bf16.msra.mxu0 %v1884_v10  ;;  %1202 = vmatpush1.bf16.msra.mxu1 %v1885_v11  ;;  %v1912_v29 = vld [vmem:[%s2255_s25 + $0xc] ss:$48 sps:$4 sm:$0xff]   ;;  %v1914_v30 = vld [vmem:[%s2255_s25] ss:$48 sps:$4 sm:$0xff]   ;;  %v1915_v31 = vld [vmem:[%s2255_s25 + $0x8] ss:$48 sps:$4 sm:$0xff]  }
  0x31   : > { %1162 = vmatprep.subr.bf16.mxu0 %v1886_v12  ;;  %1203 = vmatprep.subr.bf16.mxu1 %v1888_v13  ;;  %v1916_v32 = vld [vmem:[%s2255_s25 + $0x424] ss:$48 sps:$4 sm:$0xff]   ;;  %v1918_v33 = vld [vmem:[%s2255_s25 + $0x42c] ss:$48 sps:$4 sm:$0xff]   ;;  %v1920_v34 = vld [vmem:[%s2255_s25 + $0x420] ss:$48 sps:$4 sm:$0xff]  }
  0x32   : > { %v1921_v35 = vld [vmem:[%s2255_s25 + $0x428] ss:$48 sps:$4 sm:$0xff]   ;;  %v281_v36 = vld [vmem:[%s2483_s0] sm:$0xff]  ;;  %v1924_v38 = vld [vmem:[%s2255_s25 + $0x3cc] ss:$48 sps:$4 sm:$0xff]   ;;  %s241_s27 = smul.u32 12, %s2156_s15 }
  0x33   : > { %v1922_v37 = vld [vmem:[%s2255_s25 + $0x3c4] ss:$48 sps:$4 sm:$0xff]   ;;  %v2302_v39 = vcombine.high %v281_v36, %v281_v36  ;;  %v1926_v40 = vld [vmem:[%s2255_s25 + $0x3c0] ss:$48 sps:$4 sm:$0xff]   ;;  %v1927_v41 = vld [vmem:[%s2255_s25 + $0x3c8] ss:$48 sps:$4 sm:$0xff]   ;;  %v2320_v52 = vcombine.low %v281_v36, %v281_v36 }
  0x34   : > { %1163 = vmatpush1.bf16.msra.mxu0 %v1890_v14  ;;  %1204 = vmatpush1.bf16.msra.mxu1 %v1891_v15  ;;  %v1928_v42 = vld [vmem:[%s2255_s25 + $0x364] ss:$48 sps:$4 sm:$0xff]   ;;  %v1930_v43 = vld [vmem:[%s2255_s25 + $0x36c] ss:$48 sps:$4 sm:$0xff]   ;;  %v1932_v44 = vld [vmem:[%s2255_s25 + $0x360] ss:$48 sps:$4 sm:$0xff]  }
  0x35   : > { %1164 = vmatprep.subr.bf16.mxu0 %v1892_v16  ;;  %1205 = vmatprep.subr.bf16.mxu1 %v1894_v17  ;;  %v1933_v45 = vld [vmem:[%s2255_s25 + $0x368] ss:$48 sps:$4 sm:$0xff]   ;;  %v1934_v46 = vld [vmem:[%s2255_s25 + $0x304] ss:$48 sps:$4 sm:$0xff]   ;;  %v1936_v47 = vld [vmem:[%s2255_s25 + $0x30c] ss:$48 sps:$4 sm:$0xff]  }
  0x36   : > { %1798 = vmatprep.mubr.msk.bf16.mxu0 %vm1152_vm0, %v2302_v39  ;;  %1799 = vmatprep.mubr.msk.bf16.mxu1 %vm1152_vm0, %v2302_v39  ;;  %v1938_v48 = vld [vmem:[%s2255_s25 + $0x300] ss:$48 sps:$4 sm:$0xff]   ;;  %v1939_v49 = vld [vmem:[%s2255_s25 + $0x308] ss:$48 sps:$4 sm:$0xff]   ;;  %v1944_v50 = vld [vmem:[%s2255_s25 + $0x2b4] ss:$48 sps:$4 sm:$0xff]  }
  0x37   : > { %v1947_v51 = vld [vmem:[%s2255_s25 + $0x2bc] ss:$48 sps:$4 sm:$0xff]   ;;  %v1942_v53 = vld [vmem:[%s2255_s25 + $0x2b0] ss:$48 sps:$4 sm:$0xff]   ;;  %v1945_v54 = vld [vmem:[%s2255_s25 + $0x2b8] ss:$48 sps:$4 sm:$0xff]  }
  0x38   : > { %1165 = vmatpush1.bf16.msra.mxu0 %v1896_v18  ;;  %1206 = vmatpush1.bf16.msra.mxu1 %v1897_v19  ;;  %v1950_v55 = vld [vmem:[%s2255_s25 + $0x254] ss:$48 sps:$4 sm:$0xff]   ;;  %v1953_v56 = vld [vmem:[%s2255_s25 + $0x25c] ss:$48 sps:$4 sm:$0xff]   ;;  %v1948_v57 = vld [vmem:[%s2255_s25 + $0x250] ss:$48 sps:$4 sm:$0xff]  }
  0x39   : > { %1166 = vmatprep.subr.bf16.mxu0 %v1898_v20  ;;  %1207 = vmatprep.subr.bf16.mxu1 %v1900_v21  ;;  %v1951_v58 = vld [vmem:[%s2255_s25 + $0x258] ss:$48 sps:$4 sm:$0xff]   ;;  %v1956_v59 = vld [vmem:[%s2255_s25 + $0x1f4] ss:$48 sps:$4 sm:$0xff]   ;;  %v1959_v60 = vld [vmem:[%s2255_s25 + $0x1fc] ss:$48 sps:$4 sm:$0xff]  }
  0x3a   : > { %v1954_v61 = vld [vmem:[%s2255_s25 + $0x1f0] ss:$48 sps:$4 sm:$0xff]   ;;  %v1957_v62 = vld [vmem:[%s2255_s25 + $0x1f8] ss:$48 sps:$4 sm:$0xff]   ;;  %v1962_v63 = vld [vmem:[%s2255_s25 + $0x194] ss:$48 sps:$4 sm:$0xff]  }
  0x3b   : > { %v1965_v0 = vld [vmem:[%s2255_s25 + $0x19c] ss:$48 sps:$4 sm:$0xff]   ;;  %v1960_v1 = vld [vmem:[%s2255_s25 + $0x190] ss:$48 sps:$4 sm:$0xff]   ;;  %v1963_v2 = vld [vmem:[%s2255_s25 + $0x198] ss:$48 sps:$4 sm:$0xff]  }
  0x3c   : > { %1167 = vmatpush1.bf16.msra.mxu0 %v1902_v22  ;;  %1208 = vmatpush1.bf16.msra.mxu1 %v1903_v23  ;;  %v1968_v3 = vld [vmem:[%s2255_s25 + $0x134] ss:$48 sps:$4 sm:$0xff]   ;;  %v1971_v4 = vld [vmem:[%s2255_s25 + $0x13c] ss:$48 sps:$4 sm:$0xff]   ;;  %v1966_v5 = vld [vmem:[%s2255_s25 + $0x130] ss:$48 sps:$4 sm:$0xff]  }
  0x3d   : > { %1168 = vmatprep.subr.bf16.mxu0 %v1904_v24  ;;  %1209 = vmatprep.subr.bf16.mxu1 %v1906_v25  ;;  %v1969_v6 = vld [vmem:[%s2255_s25 + $0x138] ss:$48 sps:$4 sm:$0xff]   ;;  %v1974_v7 = vld [vmem:[%s2255_s25 + $0xd4] ss:$48 sps:$4 sm:$0xff]   ;;  %v1977_v8 = vld [vmem:[%s2255_s25 + $0xdc] ss:$48 sps:$4 sm:$0xff]  }
  0x3e   : > { %v1972_v9 = vld [vmem:[%s2255_s25 + $0xd0] ss:$48 sps:$4 sm:$0xff]   ;;  %v1975_v10 = vld [vmem:[%s2255_s25 + $0xd8] ss:$48 sps:$4 sm:$0xff]   ;;  %v1980_v11 = vld [vmem:[%s2255_s25 + $0x74] ss:$48 sps:$4 sm:$0xff]  }
  0x3f   : > { %v1983_v12 = vld [vmem:[%s2255_s25 + $0x7c] ss:$48 sps:$4 sm:$0xff]   ;;  %v1978_v13 = vld [vmem:[%s2255_s25 + $0x70] ss:$48 sps:$4 sm:$0xff]   ;;  %v1981_v14 = vld [vmem:[%s2255_s25 + $0x78] ss:$48 sps:$4 sm:$0xff]  }
  0x40   : > { %1169 = vmatpush1.bf16.msra.mxu0 %v1908_v26  ;;  %1210 = vmatpush1.bf16.msra.mxu1 %v1909_v27  ;;  %v1986_v15 = vld [vmem:[%s2255_s25 + $0x14] ss:$48 sps:$4 sm:$0xff]   ;;  %v1989_v16 = vld [vmem:[%s2255_s25 + $0x1c] ss:$48 sps:$4 sm:$0xff]   ;;  %v1984_v17 = vld [vmem:[%s2255_s25 + $0x10] ss:$48 sps:$4 sm:$0xff]  }
  0x41   : > { %1170 = vmatprep.subr.bf16.mxu0 %v1910_v28  ;;  %1211 = vmatprep.subr.bf16.mxu1 %v1912_v29  ;;  %v1987_v18 = vld [vmem:[%s2255_s25 + $0x18] ss:$48 sps:$4 sm:$0xff]   ;;  %v1992_v19 = vld [vmem:[%s2255_s25 + $0x434] ss:$48 sps:$4 sm:$0xff]   ;;  %v1995_v20 = vld [vmem:[%s2255_s25 + $0x43c] ss:$48 sps:$4 sm:$0xff]  }
  0x42   : > { %v1990_v21 = vld [vmem:[%s2255_s25 + $0x430] ss:$48 sps:$4 sm:$0xff]   ;;  %v1993_v22 = vld [vmem:[%s2255_s25 + $0x438] ss:$48 sps:$4 sm:$0xff]   ;;  %v1998_v23 = vld [vmem:[%s2255_s25 + $0x3d4] ss:$48 sps:$4 sm:$0xff]  }
  0x43   : > { %v2001_v24 = vld [vmem:[%s2255_s25 + $0x3dc] ss:$48 sps:$4 sm:$0xff]   ;;  %v1996_v25 = vld [vmem:[%s2255_s25 + $0x3d0] ss:$48 sps:$4 sm:$0xff]   ;;  %v1999_v26 = vld [vmem:[%s2255_s25 + $0x3d8] ss:$48 sps:$4 sm:$0xff]  }
  0x44   : > { %1171 = vmatpush1.bf16.msra.mxu0 %v1914_v30  ;;  %1212 = vmatpush1.bf16.msra.mxu1 %v1915_v31  ;;  %v2004_v27 = vld [vmem:[%s2255_s25 + $0x374] ss:$48 sps:$4 sm:$0xff]   ;;  %v2007_v28 = vld [vmem:[%s2255_s25 + $0x37c] ss:$48 sps:$4 sm:$0xff]   ;;  %v2002_v29 = vld [vmem:[%s2255_s25 + $0x370] ss:$48 sps:$4 sm:$0xff]  }
  0x45   : > { %1180 = vmatprep.subr.bf16.mxu0 %v1916_v32  ;;  %1221 = vmatprep.subr.bf16.mxu1 %v1918_v33  ;;  %v2005_v30 = vld [vmem:[%s2255_s25 + $0x378] ss:$48 sps:$4 sm:$0xff]   ;;  %v2010_v31 = vld [vmem:[%s2255_s25 + $0x314] ss:$48 sps:$4 sm:$0xff]   ;;  %v2013_v32 = vld [vmem:[%s2255_s25 + $0x31c] ss:$48 sps:$4 sm:$0xff]  }
  0x46   : > { %v2008_v33 = vld [vmem:[%s2255_s25 + $0x310] ss:$48 sps:$4 sm:$0xff]   ;;  %v2019_v36 = vld [vmem:[%s2255_s25 + $0x2cc] ss:$48 sps:$4 sm:$0xff]   ;;  %p242_p7 = scmp.lt.s32.totalorder %s241_s27, 23 }
  0x48   : > { %1181 = vmatpush2.bf16.msra.mxu0 %v1920_v34  ;;  %1222 = vmatpush2.bf16.msra.mxu1 %v1921_v35  ;;  %v2011_v34 = vld [vmem:[%s2255_s25 + $0x318] ss:$48 sps:$4 sm:$0xff]   ;;  %v2016_v35 = vld [vmem:[%s2255_s25 + $0x2c4] ss:$48 sps:$4 sm:$0xff]   ;;  %s2497_s27 = smov (!%p242_p7, %s241_s27), 23 }
  0x49   : > { %1182 = vmatprep.subr.bf16.mxu0 %v1922_v37  ;;  %1223 = vmatprep.subr.bf16.mxu1 %v1924_v38  ;;  %v2014_v37 = vld [vmem:[%s2255_s25 + $0x2c0] ss:$48 sps:$4 sm:$0xff]   ;;  %v2017_v38 = vld [vmem:[%s2255_s25 + $0x2c8] ss:$48 sps:$4 sm:$0xff]   ;;  %s2436_s30 = scalar_lea.vmem %s2485_s2, %s2497_s27  ;;  %s1651_s15 = sshll.u32 %s2497_s27, 3 }
  0x4a   : > { %s2446_s6 = scalar_lea.vmem %s2486_s3, %s1651_s15 }
  0x4c   : > { %1183 = vmatpush2.bf16.msra.mxu0 %v1926_v40  ;;  %1224 = vmatpush2.bf16.msra.mxu1 %v1927_v41  ;;  %v2022_v40 = vld [vmem:[%s2255_s25 + $0x264] ss:$48 sps:$4 sm:$0xff]   ;;  %v2025_v41 = vld [vmem:[%s2255_s25 + $0x26c] ss:$48 sps:$4 sm:$0xff]  }
  0x4d   : > { %1184 = vmatprep.subr.bf16.mxu0 %v1928_v42  ;;  %1225 = vmatprep.subr.bf16.mxu1 %v1930_v43  ;;  %v2020_v42 = vld [vmem:[%s2255_s25 + $0x260] ss:$48 sps:$4 sm:$0xff]   ;;  %v2023_v43 = vld [vmem:[%s2255_s25 + $0x268] ss:$48 sps:$4 sm:$0xff]  }
  0x50   : > { %1185 = vmatpush2.bf16.msra.mxu0 %v1932_v44  ;;  %1226 = vmatpush2.bf16.msra.mxu1 %v1933_v45  ;;  %v2028_v44 = vld [vmem:[%s2255_s25 + $0x204] ss:$48 sps:$4 sm:$0xff]   ;;  %v2031_v45 = vld [vmem:[%s2255_s25 + $0x20c] ss:$48 sps:$4 sm:$0xff]  }
  0x51   : > { %1186 = vmatprep.subr.bf16.mxu0 %v1934_v46  ;;  %1227 = vmatprep.subr.bf16.mxu1 %v1936_v47  ;;  %v2026_v46 = vld [vmem:[%s2255_s25 + $0x200] ss:$48 sps:$4 sm:$0xff]   ;;  %v2029_v47 = vld [vmem:[%s2255_s25 + $0x208] ss:$48 sps:$4 sm:$0xff]  }
  0x54   : > { %1187 = vmatpush2.bf16.msra.mxu0 %v1938_v48  ;;  %1228 = vmatpush2.bf16.msra.mxu1 %v1939_v49  ;;  %v2034_v48 = vld [vmem:[%s2255_s25 + $0x1a4] ss:$48 sps:$4 sm:$0xff]   ;;  %v2037_v49 = vld [vmem:[%s2255_s25 + $0x1ac] ss:$48 sps:$4 sm:$0xff]  }
  0x55   : > { %1238 = vmatprep.subr.bf16.mxu0 %v1944_v50  ;;  %1279 = vmatprep.subr.bf16.mxu1 %v1947_v51  ;;  %v2032_v50 = vld [vmem:[%s2255_s25 + $0x1a0] ss:$48 sps:$4 sm:$0xff]   ;;  %v2035_v51 = vld [vmem:[%s2255_s25 + $0x1a8] ss:$48 sps:$4 sm:$0xff]  }
  0x57   : > { %1189 = vmatmul.mubr.bf16.vlgmr.msra.gmra.mxu0 %v2320_v52  ;;  %1230 = vmatmul.mubr.bf16.vlgmr.msra.gmra.mxu1 %v2320_v52 }
  0x58   : > { %1239 = vmatpush1.bf16.msra.mxu0 %v1942_v53  ;;  %1280 = vmatpush1.bf16.msra.mxu1 %v1945_v54  ;;  %v2043_v53 = vld [vmem:[%s2255_s25 + $0x14c] ss:$48 sps:$4 sm:$0xff]   ;;  %v2038_v54 = vld [vmem:[%s2255_s25 + $0x140] ss:$48 sps:$4 sm:$0xff]  }
  0x59   : > { %1240 = vmatprep.subr.bf16.mxu0 %v1950_v55  ;;  %1281 = vmatprep.subr.bf16.mxu1 %v1953_v56  ;;  %v2041_v55 = vld [vmem:[%s2255_s25 + $0x148] ss:$48 sps:$4 sm:$0xff]   ;;  %v2046_v56 = vld [vmem:[%s2255_s25 + $0xe4] ss:$48 sps:$4 sm:$0xff]  }
  0x5a   : > { %1800 = vmatprep.mubr.msk.bf16.mxu0 %vm1152_vm0, %v2302_v39  ;;  %1801 = vmatprep.mubr.msk.bf16.mxu1 %vm1152_vm0, %v2302_v39 }
  0x5c   : > { %1241 = vmatpush1.bf16.msra.mxu0 %v1948_v57  ;;  %1282 = vmatpush1.bf16.msra.mxu1 %v1951_v58  ;;  %v2049_v57 = vld [vmem:[%s2255_s25 + $0xec] ss:$48 sps:$4 sm:$0xff]   ;;  %v2044_v58 = vld [vmem:[%s2255_s25 + $0xe0] ss:$48 sps:$4 sm:$0xff]  }
  0x5d   : > { %1242 = vmatprep.subr.bf16.mxu0 %v1956_v59  ;;  %1283 = vmatprep.subr.bf16.mxu1 %v1959_v60  ;;  %v2047_v59 = vld [vmem:[%s2255_s25 + $0xe8] ss:$48 sps:$4 sm:$0xff]   ;;  %v2052_v60 = vld [vmem:[%s2255_s25 + $0x84] ss:$48 sps:$4 sm:$0xff]  }
  0x60   : > { %1243 = vmatpush1.bf16.msra.mxu0 %v1954_v61  ;;  %1284 = vmatpush1.bf16.msra.mxu1 %v1957_v62  ;;  %v2055_v61 = vld [vmem:[%s2255_s25 + $0x8c] ss:$48 sps:$4 sm:$0xff]   ;;  %v2050_v62 = vld [vmem:[%s2255_s25 + $0x80] ss:$48 sps:$4 sm:$0xff]  }
  0x61   : > { %1244 = vmatprep.subr.bf16.mxu0 %v1962_v63  ;;  %1285 = vmatprep.subr.bf16.mxu1 %v1965_v0  ;;  %v2053_v63 = vld [vmem:[%s2255_s25 + $0x88] ss:$48 sps:$4 sm:$0xff]   ;;  %v2058_v0 = vld [vmem:[%s2255_s25 + $0x24] ss:$48 sps:$4 sm:$0xff]  }
  0x64   : > { %1245 = vmatpush1.bf16.msra.mxu0 %v1960_v1  ;;  %1286 = vmatpush1.bf16.msra.mxu1 %v1963_v2  ;;  %v2061_v1 = vld [vmem:[%s2255_s25 + $0x2c] ss:$48 sps:$4 sm:$0xff]   ;;  %v2056_v2 = vld [vmem:[%s2255_s25 + $0x20] ss:$48 sps:$4 sm:$0xff]  }
  0x65   : > { %1246 = vmatprep.subr.bf16.mxu0 %v1968_v3  ;;  %1287 = vmatprep.subr.bf16.mxu1 %v1971_v4  ;;  %v2059_v3 = vld [vmem:[%s2255_s25 + $0x28] ss:$48 sps:$4 sm:$0xff]   ;;  %v2064_v4 = vld [vmem:[%s2255_s25 + $0x444] ss:$48 sps:$4 sm:$0xff]  }
  0x68   : > { %1247 = vmatpush1.bf16.msra.mxu0 %v1966_v5  ;;  %1288 = vmatpush1.bf16.msra.mxu1 %v1969_v6  ;;  %v2067_v5 = vld [vmem:[%s2255_s25 + $0x44c] ss:$48 sps:$4 sm:$0xff]   ;;  %v2062_v6 = vld [vmem:[%s2255_s25 + $0x440] ss:$48 sps:$4 sm:$0xff]  }
  0x69   : > { %1248 = vmatprep.subr.bf16.mxu0 %v1974_v7  ;;  %1289 = vmatprep.subr.bf16.mxu1 %v1977_v8  ;;  %v2065_v7 = vld [vmem:[%s2255_s25 + $0x448] ss:$48 sps:$4 sm:$0xff]   ;;  %v2070_v8 = vld [vmem:[%s2255_s25 + $0x3e4] ss:$48 sps:$4 sm:$0xff]  }
  0x6c   : > { %1249 = vmatpush1.bf16.msra.mxu0 %v1972_v9  ;;  %1290 = vmatpush1.bf16.msra.mxu1 %v1975_v10  ;;  %v2073_v9 = vld [vmem:[%s2255_s25 + $0x3ec] ss:$48 sps:$4 sm:$0xff]   ;;  %v2068_v10 = vld [vmem:[%s2255_s25 + $0x3e0] ss:$48 sps:$4 sm:$0xff]  }
  0x6d   : > { %1250 = vmatprep.subr.bf16.mxu0 %v1980_v11  ;;  %1291 = vmatprep.subr.bf16.mxu1 %v1983_v12  ;;  %v2071_v11 = vld [vmem:[%s2255_s25 + $0x3e8] ss:$48 sps:$4 sm:$0xff]   ;;  %v2076_v12 = vld [vmem:[%s2255_s25 + $0x384] ss:$48 sps:$4 sm:$0xff]  }
  0x70   : > { %1251 = vmatpush1.bf16.msra.mxu0 %v1978_v13  ;;  %1292 = vmatpush1.bf16.msra.mxu1 %v1981_v14  ;;  %v2079_v13 = vld [vmem:[%s2255_s25 + $0x38c] ss:$48 sps:$4 sm:$0xff]   ;;  %v2074_v14 = vld [vmem:[%s2255_s25 + $0x380] ss:$48 sps:$4 sm:$0xff]  }
  0x71   : > { %1252 = vmatprep.subr.bf16.mxu0 %v1986_v15  ;;  %1293 = vmatprep.subr.bf16.mxu1 %v1989_v16  ;;  %v2077_v15 = vld [vmem:[%s2255_s25 + $0x388] ss:$48 sps:$4 sm:$0xff]   ;;  %v2082_v16 = vld [vmem:[%s2255_s25 + $0x324] ss:$48 sps:$4 sm:$0xff]  }
  0x74   : > { %1253 = vmatpush1.bf16.msra.mxu0 %v1984_v17  ;;  %1294 = vmatpush1.bf16.msra.mxu1 %v1987_v18  ;;  %v2085_v17 = vld [vmem:[%s2255_s25 + $0x32c] ss:$48 sps:$4 sm:$0xff]   ;;  %v2080_v18 = vld [vmem:[%s2255_s25 + $0x320] ss:$48 sps:$4 sm:$0xff]  }
  0x75   : > { %1262 = vmatprep.subr.bf16.mxu0 %v1992_v19  ;;  %1303 = vmatprep.subr.bf16.mxu1 %v1995_v20  ;;  %v2083_v19 = vld [vmem:[%s2255_s25 + $0x328] ss:$48 sps:$4 sm:$0xff]   ;;  %v1445_v20 = vlaneseq }
  0x78   : > { %1263 = vmatpush2.bf16.msra.mxu0 %v1990_v21  ;;  %1304 = vmatpush2.bf16.msra.mxu1 %v1993_v22  ;;  %v2431_v21 = vshrl.u32 %v1445_v20, 7 }
  0x79   : > { %1264 = vmatprep.subr.bf16.mxu0 %v1998_v23  ;;  %1305 = vmatprep.subr.bf16.mxu1 %v2001_v24  ;;  %v1441_v24 = vld [vmem:[%s2436_s30] sm:$0xff] }
  0x7a   : > { %v1447_v22 = vsub.s32 0, %v2431_v21  ;;  %v1455_v23 = vsub.s32 2, %v2431_v21 }
  0x7c   : > { %1265 = vmatpush2.bf16.msra.mxu0 %v1996_v25  ;;  %1306 = vmatpush2.bf16.msra.mxu1 %v1999_v26  ;;  %v1451_v25 = vsub.s32 1, %v2431_v21  ;;  %v1448_v26 = vrot.slane %v1441_v24, %v1447_v22 }
  0x7d   : > { %1266 = vmatprep.subr.bf16.mxu0 %v2004_v27  ;;  %1307 = vmatprep.subr.bf16.mxu1 %v2007_v28  ;;  %v1456_v27 = vrot.slane %v1441_v24, %v1455_v23 }
  0x80   : > { %1267 = vmatpush2.bf16.msra.mxu0 %v2002_v29  ;;  %1308 = vmatpush2.bf16.msra.mxu1 %v2005_v30  ;;  %v1452_v30 = vrot.slane %v1441_v24, %v1451_v25 }
  0x81   : > { %1268 = vmatprep.subr.bf16.mxu0 %v2010_v31  ;;  %1309 = vmatprep.subr.bf16.mxu1 %v2013_v32 }
  0x84   : > { %1269 = vmatpush2.bf16.msra.mxu0 %v2008_v33  ;;  %1310 = vmatpush2.bf16.msra.mxu1 %v2011_v34 }
  0x85   : > { %1320 = vmatprep.subr.bf16.mxu0 %v2016_v35  ;;  %1361 = vmatprep.subr.bf16.mxu1 %v2019_v36 }
  0x87   : > { %1271 = vmatmul.mubr.bf16.vlgmr.msra.gmra.mxu0 %v2320_v52  ;;  %1312 = vmatmul.mubr.bf16.vlgmr.msra.gmra.mxu1 %v2320_v52 }
  0x88   : > { %1321 = vmatpush1.bf16.msra.mxu0 %v2014_v37  ;;  %1362 = vmatpush1.bf16.msra.mxu1 %v2017_v38 }
  0x89   : > { %1322 = vmatprep.subr.bf16.mxu0 %v2022_v40  ;;  %1363 = vmatprep.subr.bf16.mxu1 %v2025_v41 }
  0x8a   : > { %1802 = vmatprep.mubr.msk.bf16.mxu0 %vm1152_vm0, %v2302_v39  ;;  %1803 = vmatprep.mubr.msk.bf16.mxu1 %vm1152_vm0, %v2302_v39  ;;  %v2040_v39 = vld [vmem:[%s2255_s25 + $0x144] ss:$48 sps:$4 sm:$0xff]  }
  0x8c   : > { %1323 = vmatpush1.bf16.msra.mxu0 %v2020_v42  ;;  %1364 = vmatpush1.bf16.msra.mxu1 %v2023_v43 }
  0x8d   : > { %1324 = vmatprep.subr.bf16.mxu0 %v2028_v44  ;;  %1365 = vmatprep.subr.bf16.mxu1 %v2031_v45 }
  0x90   : > { %1325 = vmatpush1.bf16.msra.mxu0 %v2026_v46  ;;  %1366 = vmatpush1.bf16.msra.mxu1 %v2029_v47  ;;  %v1463_v47 = vsub.s32 4, %v2431_v21 }
  0x91   : > { %1326 = vmatprep.subr.bf16.mxu0 %v2034_v48  ;;  %1367 = vmatprep.subr.bf16.mxu1 %v2037_v49  ;;  %v1471_v48 = vsub.s32 6, %v2431_v21  ;;  %v1467_v49 = vsub.s32 5, %v2431_v21 }
  0x94   : > { %1327 = vmatpush1.bf16.msra.mxu0 %v2032_v50  ;;  %1368 = vmatpush1.bf16.msra.mxu1 %v2035_v51  ;;  %v1475_v50 = vsub.s32 7, %v2431_v21  ;;  %v1464_v51 = vrot.slane %v1441_v24, %v1463_v47 }
  0x95   : > { %1328 = vmatprep.subr.bf16.mxu0 %v2040_v39  ;;  %1369 = vmatprep.subr.bf16.mxu1 %v2043_v53  ;;  %v1472_v39 = vrot.slane %v1441_v24, %v1471_v48 }
  0x98   : > { %1329 = vmatpush1.bf16.msra.mxu0 %v2038_v54  ;;  %1370 = vmatpush1.bf16.msra.mxu1 %v2041_v55  ;;  %v1468_v55 = vrot.slane %v1441_v24, %v1467_v49 }
  0x99   : > { %1330 = vmatprep.subr.bf16.mxu0 %v2046_v56  ;;  %1371 = vmatprep.subr.bf16.mxu1 %v2049_v57  ;;  %v1476_v56 = vrot.slane %v1441_v24, %v1475_v50 }
  0x9c   : > { %1331 = vmatpush1.bf16.msra.mxu0 %v2044_v58  ;;  %1372 = vmatpush1.bf16.msra.mxu1 %v2047_v59 }
  0x9d   : > { %1332 = vmatprep.subr.bf16.mxu0 %v2052_v60  ;;  %1373 = vmatprep.subr.bf16.mxu1 %v2055_v61 }
  0xa0   : > { %1333 = vmatpush1.bf16.msra.mxu0 %v2050_v62  ;;  %1374 = vmatpush1.bf16.msra.mxu1 %v2053_v63 }
  0xa1   : > { %1334 = vmatprep.subr.bf16.mxu0 %v2058_v0  ;;  %1375 = vmatprep.subr.bf16.mxu1 %v2061_v1 }
  0xa4   : > { %1335 = vmatpush1.bf16.msra.mxu0 %v2056_v2  ;;  %1376 = vmatpush1.bf16.msra.mxu1 %v2059_v3 }
  0xa5   : > { %1344 = vmatprep.subr.bf16.mxu0 %v2064_v4  ;;  %1385 = vmatprep.subr.bf16.mxu1 %v2067_v5 }
  0xa8   : > { %1345 = vmatpush2.bf16.msra.mxu0 %v2062_v6  ;;  %1386 = vmatpush2.bf16.msra.mxu1 %v2065_v7  ;;  %v1442_v7 = vld [vmem:[%s2436_s30 + $0x8] sm:$0xf] }
  0xa9   : > { %1346 = vmatprep.subr.bf16.mxu0 %v2070_v8  ;;  %1387 = vmatprep.subr.bf16.mxu1 %v2073_v9  ;;  %v1480_v8 = vrot.slane %v1442_v7, %v1447_v22  ;;  %v1488_v9 = vrot.slane %v1442_v7, %v1455_v23 }
  0xac   : > { %1347 = vmatpush2.bf16.msra.mxu0 %v2068_v10  ;;  %1388 = vmatpush2.bf16.msra.mxu1 %v2071_v11 }
  0xad   : > { %1348 = vmatprep.subr.bf16.mxu0 %v2076_v12  ;;  %1389 = vmatprep.subr.bf16.mxu1 %v2079_v13  ;;  %v1484_v12 = vrot.slane %v1442_v7, %v1451_v25 }
  0xb0   : > { %1349 = vmatpush2.bf16.msra.mxu0 %v2074_v14  ;;  %1390 = vmatpush2.bf16.msra.mxu1 %v2077_v15 }
  0xb1   : > { %1350 = vmatprep.subr.bf16.mxu0 %v2082_v16  ;;  %1391 = vmatprep.subr.bf16.mxu1 %v2085_v17 }
  0xb4   : > { %1351 = vmatpush2.bf16.msra.mxu0 %v2080_v18  ;;  %1392 = vmatpush2.bf16.msra.mxu1 %v2083_v19 }
  0xb7   : > { %1353 = vmatmul.mubr.bf16.vlgmr.msra.gmra.mxu0 %v2320_v52  ;;  %1394 = vmatmul.mubr.bf16.vlgmr.msra.gmra.mxu1 %v2320_v52  ;;  %v1459_v52 = vsub.s32 3, %v2431_v21 }
  0xb9   : > { %v1460_v31 = vrot.slane %v1441_v24, %v1459_v52  ;;  %v1492_v13 = vrot.slane %v1442_v7, %v1459_v52 }
 0x117   : > { %v1190_v28 = vpop.f32.mrf.mxu0  ;;  %v1231_v29 = vpop.f32.mrf.mxu1 }
 0x118   : > { %v1505_v34 = vadd.f32 %v1448_v26, %v1190_v28  ;;  %v1507_v35 = vadd.f32 %v1456_v27, %v1231_v29 }
 0x119   : > { %v1192_v32 = vpop.f32.mrf.mxu0  ;;  %v1233_v33 = vpop.f32.mrf.mxu1 }
 0x11a   : > { %v1517_v38 = vmax.f32 %v1505_v34, 0.0  ;;  %v1519_v40 = vmax.f32 %v1507_v35, 0.0  ;;  %v1506_v41 = vadd.f32 %v1452_v30, %v1192_v32  ;;  %v1508_v42 = vadd.f32 %v1460_v31, %v1233_v33 }
 0x11b   : > { %v1194_v36 = vpop.f32.mrf.mxu0  ;;  %v1235_v37 = vpop.f32.mrf.mxu1 }
 0x11c   : > { %1529 = vst [vmem:[%s2446_s6] sm:$0xff] %v1517_v38  ;;  %1531 = vst [vmem:[%s2446_s6 + $0x10] sm:$0xff] %v1519_v40  ;;  %v1518_v45 = vmax.f32 %v1506_v41, 0.0  ;;  %v1520_v46 = vmax.f32 %v1508_v42, 0.0 }
 0x11d   : > { %v1195_v43 = vpop.f32.mrf.mxu0  ;;  %v1236_v44 = vpop.f32.mrf.mxu1 }
 0x11e   : > { %1530 = vst [vmem:[%s2446_s6 + $0x8] sm:$0xff] %v1518_v45  ;;  %1532 = vst [vmem:[%s2446_s6 + $0x18] sm:$0xff] %v1520_v46 }
 0x147   : > { %v1272_v53 = vpop.f32.mrf.mxu0  ;;  %v1313_v54 = vpop.f32.mrf.mxu1 }
 0x148   : > { %v1509_v59 = vadd.f32 %v1464_v51, %v1272_v53  ;;  %v1511_v60 = vadd.f32 %v1472_v39, %v1313_v54 }
 0x149   : > { %v1274_v57 = vpop.f32.mrf.mxu0  ;;  %v1315_v58 = vpop.f32.mrf.mxu1 }
 0x14a   : > { %v1521_v63 = vmax.f32 %v1509_v59, 0.0  ;;  %v1523_v0 = vmax.f32 %v1511_v60, 0.0  ;;  %v1510_v1 = vadd.f32 %v1468_v55, %v1274_v57  ;;  %v1512_v2 = vadd.f32 %v1476_v56, %v1315_v58 }
 0x14b   : > { %v1276_v61 = vpop.f32.mrf.mxu0  ;;  %v1317_v62 = vpop.f32.mrf.mxu1 }
 0x14c   : > { %1533 = vst [vmem:[%s2446_s6 + $0x20] sm:$0xff] %v1521_v63  ;;  %1535 = vst [vmem:[%s2446_s6 + $0x30] sm:$0xff] %v1523_v0  ;;  %v1522_v5 = vmax.f32 %v1510_v1, 0.0  ;;  %v1524_v6 = vmax.f32 %v1512_v2, 0.0 }
 0x14d   : > { %v1277_v3 = vpop.f32.mrf.mxu0  ;;  %v1318_v4 = vpop.f32.mrf.mxu1 }
 0x14e   : > { %1534 = vst [vmem:[%s2446_s6 + $0x28] sm:$0xff] %v1522_v5  ;;  %1536 = vst [vmem:[%s2446_s6 + $0x38] sm:$0xff] %v1524_v6 }
 0x177   : > { %v1354_v10 = vpop.f32.mrf.mxu0  ;;  %v1395_v11 = vpop.f32.mrf.mxu1 }
 0x178   : > { %v1513_v16 = vadd.f32 %v1480_v8, %v1354_v10  ;;  %v1515_v17 = vadd.f32 %v1488_v9, %v1395_v11 }
 0x179   : > { %v1356_v14 = vpop.f32.mrf.mxu0  ;;  %v1397_v15 = vpop.f32.mrf.mxu1 }
 0x17a   : > { %v1525_v20 = vmax.f32 %v1513_v16, 0.0  ;;  %v1527_v21 = vmax.f32 %v1515_v17, 0.0  ;;  %v1514_v24 = vadd.f32 %v1484_v12, %v1356_v14  ;;  %v1516_v26 = vadd.f32 %v1492_v13, %v1397_v15 }
 0x17b   : > { %v1358_v18 = vpop.f32.mrf.mxu0  ;;  %v1399_v19 = vpop.f32.mrf.mxu1 }
 0x17c   : > { %1537 = vst [vmem:[%s2446_s6 + $0x40] sm:$0xff] %v1525_v20  ;;  %1539 = vst [vmem:[%s2446_s6 + $0x50] sm:$0xff] %v1527_v21  ;;  %v1526_v27 = vmax.f32 %v1514_v24, 0.0  ;;  %v1528_v28 = vmax.f32 %v1516_v26, 0.0 }
 0x17d   : > { %v1359_v22 = vpop.f32.mrf.mxu0  ;;  %v1400_v23 = vpop.f32.mrf.mxu1 }
 0x17e   : > { %1538 = vst [vmem:[%s2446_s6 + $0x48] sm:$0xff] %v1526_v27  ;;  %1540 = vst [vmem:[%s2446_s6 + $0x58] sm:$0xff] %v1528_v28 }
 0x17f PF: > { %s16_s17 = sadd.s32 1, %s2164_s17   ;;  %s2489_s12 = smov %s2148_s13 }
 0x180   : > { %p13_p8 = scmp.ge.s32.totalorder %s16_s17, 4   ;;  %s2490_s13 = smov %s2152_s14 }
 0x181   : > { %s2491_s14 = smov %s2235_s23  ;;  %s2492_s15 = smov %s2160_s16 }
 0x182   : > { %s2493_s16 = smov %s2495_s19  ;;  %15 = sbr.rel (!%p13_p8) target bundleno = 4 (0x4), region = 86 }
 0x187   :  { %1563 = vsyncpa [#allocation3], 1 }
 0x188   :  { %1565 = vsyncpa [#allocation3 + $0x1], 1 }

// kernel: fcn_cnsn_forward.6
= control target key start
LH: loop header
LB: loop body
LE: loop exit
PB: predicated region body
PF: predicated region fallthrough
CT: control target
= control target key end

     0   :  { %s4245_s0 = inlined_call_operand.vmem [shape: bf16[8,18432], index: 0, kind: input, shape index: {}]   ;;  %s4246_s1 = inlined_call_operand.hbm [shape: bf16[18432,512], index: 1, kind: input, shape index: {}]   ;;  %s4247_s2 = inlined_call_operand.hbm [shape: f32[1,512], index: 2, kind: input, shape index: {}]   ;;  %s4248_s3 = inlined_call_operand.hbm [shape: bf16[512,2], index: 3, kind: input, shape index: {}]   ;;  %s4249_s4 = inlined_call_operand.vmem [shape: f32[2,8,2], index: 4, kind: output, shape index: {}]  }
   0x1   :  { %4256 = sst [smem:[#allocation17_spill]] %s4245_s0 }
   0x2   :  { %4257 = sst [smem:[#allocation18_spill]] %s4247_s2 }
   0x3   :  { %4258 = sst [smem:[#allocation19_spill]] %s4249_s4 }
   0x4   :  { %9 = vsyncpa [#allocation4], 0 }
   0x5   :  { %11 = vsyncpa [#allocation4 + $0x1], 0 }
   0x6   :  { %12 = vsyncpa [#allocation6], 0 }
   0x7   :  { %14 = vsyncpa [#allocation6 + $0x1], 0  ;;  %s3683_s15 = smov 0   ;;  %s3685_s16 = smov 0  }
   0x8   :  { %s3687_s17 = smov 0   ;;  %s3689_s18 = smov 0  }
   0x9   :  { %s3691_s19 = smov 0   ;;  %s3693_s20 = smov 0  }
   0xa   :  { %s3695_s21 = smov 0   ;;  %s3697_s22 = smov 0  }
   0xb   :  { %s3699_s23 = smov 0   ;;  %s3701_s24 = smov 0  }
   0xc   :  { %s3703_s25 = smov 0  }
   0xd LB: > { %4259 = sst [smem:[#allocation10_spill]] %s3615_s17  ;;  %s4250_s26 = sadd.s32 4294967295, %s3647_s25   ;;  %s3647_s25 = sphi %s3703_s25, %s20_s25   ;;  %s3643_s24 = sphi %s3701_s24, %s4291_s24   ;;  %s3639_s23 = sphi %s3699_s23, %s4283_s23   ;;  %s3635_s22 = sphi %s3697_s22, %s4290_s22   ;;  %s3631_s21 = sphi %s3695_s21, %s4289_s21   ;;  %s3627_s20 = sphi %s3693_s20, %s4281_s20   ;;  %s3623_s19 = sphi %s3691_s19, %s4288_s19   ;;  %s3619_s18 = sphi %s3689_s18, %s4287_s18   ;;  %s3615_s17 = sphi %s3687_s17, %s4279_s17   ;;  %s3611_s16 = sphi %s3685_s16, %s4286_s16   ;;  %s3607_s15 = sphi %s3683_s15, %s4285_s15  }
   0xe   : > { %4260 = sst [smem:[#allocation11_spill]] %s3627_s20  ;;  %s29_s27 = sadd.s32 1, %s3639_s23 }
   0xf   : > { %4261 = sst [smem:[#allocation12_spill]] %s3639_s23  ;;  %p30_p0 = scmp.ge.s32.totalorder %s29_s27, 9 }
  0x10   : > { %s32_s28 = sadd.s32 1, %s3643_s24  ;;  %s67_s29 = sadd.s32 1, %s3627_s20 }
  0x11   : > { %p74_p1 = scmp.ne.s32.totalorder %s3627_s20, %s3623_s19  ;;  %s4293_s27 = smov (%p30_p0, %s29_s27), 0 }
  0x12   : > { %4262 = sst [smem:[#allocation13_spill]] %s4293_s27  ;;  %s4295_s28 = smov (!%p30_p0, %s32_s28), %s3643_s24 }
  0x13   : > { %s62_s30 = ssub.s32 %s3639_s23, %s4293_s27  ;;  %p75_p2 = scmp.eq.s32.totalorder %s3647_s25, 0 }
  0x14   : > { %p34_p3 = scmp.ge.s32.totalorder %s4295_s28, 2  ;;  %p80_p4 = scmp.ne.s32.totalorder %s3623_s19, %s3619_s18 }
  0x15   : > { %p3751_p5 = por %p75_p2, %p74_p1  ;;  %p3757_p6 = scmp.eq.s32.totalorder %s4250_s26, 0 }
  0x16   : > { %s4297_s28 = smov (%p34_p3, %s4295_s28), 0  ;;  %s93_s8 = sadd.s32 1, %s3615_s17 }
  0x17   : > { %4265 = sst [smem:[#allocation14_spill]] %s4297_s28  ;;  %p3765_p7 = por %p3757_p6, %p80_p4 }
  0x18   : > { %s63_s9 = ssub.s32 %s3643_s24, %s4297_s28  ;;  %p100_p8 = scmp.ne.s32.totalorder %s3615_s17, %s3611_s16 }
  0x19   : > { %s64_s10 = sor.u32 %s63_s9, %s62_s30  ;;  %p91_p9 = scmp.eq.s32.totalorder %s63_s9, 0 }
  0x1a   : > { %p65_p10 = scmp.eq.s32.totalorder %s64_s10, 0  ;;  %p3776_p11 = por %p100_p8, %p75_p2 }
  0x1b   : > { %s3781_s12 = scalar_select %p91_p9, %s3615_s17, %s93_s8  }
  0x1c   : > { %s3784_s13 = scalar_select %p65_p10, %s3627_s20, %s67_s29  }
  0x1d   : > { %4268 = sst [smem:[#allocation15_spill]] %s3781_s12  ;;  %p106_p12 = scmp.ne.s32.totalorder %s3611_s16, %s3607_s15 }
  0x1e   : > { %4269 = sst [smem:[#allocation16_spill]] %s3784_s13  ;;  %p2958_p13 = scmp.lt.s32.totalorder %s3647_s25, 18 }
  0x1f   : > { %s215_s14 = sand.u32 1, %s3647_s25   ;;  %p3792_p0 = por %p106_p12, %p3757_p6 }
  0x20   : > { %p3798_p1 = pnand %p2958_p13, %p3751_p5  ;;  %s217_s9 = sand.u32 1, %s3615_s17  }
  0x21   : > { %s2612_s10 = sshll.u32 %s217_s9, 1  ;;  %s2918_s8 = sshll.u32 %s3643_s24, 5 }
  0x22   : > { %s4272_s2 = sld [smem:[#allocation18_spill]]  ;;  %s219_s15 = scalar_lea.vmem [#allocation5], %s2612_s10 }
  0x23   : > { %s227_s27 = sshll.u32 %s219_s15, 4  ;;  %p3809_p2 = pnand %p2958_p13, %p3776_p11  ;;  %s228_s27 = int_to_ptr.vmem [resolvable:$true] %s227_s27 }
  0x24   : > { %s2615_s5 = sshll.u32 %s217_s9, 7  ;;  %p2618_p3 = scmp.ge.s32.totalorder %s3647_s25, 1 }
  0x25   : > { %s3814_s13 = scalar_lea.sflag [#allocation6], %s215_s14  ;;  %p3471_p4 = pneg %p3809_p2 }
  0x26   : > { %s3482_s12 = scalar_lea.vmem %s228_s27, 32  ;;  %s3649_s26 = smov [#allocation5]  }
  0x27   : > { %p3483_p5 = scmp.ne.s32.totalorder %s228_s27, %s3482_s12  ;;  %s3487_s28 = sshll.u32 %s3649_s26, 4  ;;  %s3488_s28 = int_to_ptr.vmem [resolvable:$false] %s3487_s28 }
  0x28   : > { %s225_s29 = scalar_lea.hbm %s4272_s2, %s2918_s8  ;;  %s3489_s11 = scalar_lea.vmem %s3488_s28, 64 }
  0x29   : > { %p3485_p6 = pnand %p3483_p5, %p3471_p4  ;;  %p3490_p9 = scmp.lt.s32.totalorder %s228_s27, %s3488_s28 }
  0x2a   : > { %p3491_p10 = scmp.lt.s32.totalorder %s3489_s11, %s3482_s12 }
  0x2b   : > { %p3486_p8 = pneg %p3485_p6 }
  0x2c   : > { %p3492_p11 = por %p3491_p10, %p3490_p9 }
  0x2e   : > { %p3493_p12 = pnand %p3492_p11, %p3486_p8 }
  0x30   : > { %3496 = shalt.err (!%p3493_p12)
}
  0x31   : > { %2954 = dma.hbm_to_vmem [thread:$0]  (!%p3809_p2), %s225_s29, 32, %s228_s27, %s3814_s13  }
  0x32   : > { %s238_s14 = scalar_lea.vmem [#allocation7], %s2615_s5  ;;  %p253_p13 = scmp.lt.s32.totalorder %s3647_s25, 19 }
  0x33   : > { %s245_s9 = sshll.u32 %s238_s14, 4  ;;  %s191_s10 = sand.u32 1, %s3627_s20   ;;  %s3825_s9 = int_to_ptr.vmem [resolvable:$true] %s245_s9 }
  0x34   : > { %p3829_p5 = pnand %p2618_p3, %p253_p13  ;;  %s2609_s8 = sshll.u32 %s3643_s24, 1 }
  0x35   : > { %s2607_s15 = sshll.u32 %s191_s10, 11  ;;  %s2917_s26 = sshll.u32 %s3639_s23, 10 }
  0x36   : > { %s202_s28 = sadd.s32 %s2917_s26, %s2609_s8  ;;  %s195_s11 = scalar_lea.vmem [#allocation3], %s2607_s15 }
  0x37   : > { %s205_s2 = sshll.u32 %s195_s11, 4  ;;  %s2611_s17 = sshll.u32 %s202_s28, 6  ;;  %s206_s2 = int_to_ptr.vmem [resolvable:$true] %s205_s2 }
  0x38   : > { %s204_s5 = scalar_lea.hbm %s4246_s1, %s2611_s17  ;;  %s192_s14 = scalar_lea.sflag [#allocation4], %s191_s10 }
  0x39   : > { %p3499_p6 = pneg %p3798_p1  ;;  %s3510_s4 = scalar_lea.vmem %s206_s2, 32768 }
  0x3a   : > { %p3511_p3 = scmp.ne.s32.totalorder %s206_s2, %s3510_s4  ;;  %s3650_s20 = smov [#allocation3]  }
  0x3b   : > { %s3515_s0 = sshll.u32 %s3650_s20, 4  ;;  %s3516_s0 = int_to_ptr.vmem [resolvable:$false] %s3515_s0 }
  0x3c   : > { %p3513_p8 = pnand %p3511_p3, %p3499_p6  ;;  %s3517_s23 = scalar_lea.vmem %s3516_s0, 65536 }
  0x3d   : > { %p3518_p10 = scmp.lt.s32.totalorder %s206_s2, %s3516_s0  ;;  %p3519_p11 = scmp.lt.s32.totalorder %s3517_s23, %s3510_s4 }
  0x3e   : > { %p3514_p9 = pneg %p3513_p8 }
  0x3f   : > { %p3520_p12 = por %p3519_p11, %p3518_p10 }
  0x41   : > { %p3521_p13 = pnand %p3520_p12, %p3514_p9 }
  0x43   : > { %3524 = shalt.err (!%p3521_p13)
}
  0x44   : > { %s3651_s8 = smov 256   ;;  %s3652_s17 = smov 128  }
  0x45   : > { %s3653_s10 = smov 8   ;;  %s2919_s15 = sshll.u32 %s3643_s24, 11 }
  0x46   : > { %2951 = dma.hbm_to_vmem [thread:$0]  (!%p3798_p1), %s204_s5, 32768, %s206_s2, %s192_s14, %s3651_s8, %s3652_s17, %s3653_s10  }
  0x47   : > { %s244_s0 = scalar_lea.hbm %s4248_s3, %s2919_s15  ;;  %s3538_s4 = scalar_lea.vmem %s3825_s9, 2048 }
  0x48   : > { %p3539_p6 = scmp.ne.s32.totalorder %s3825_s9, %s3538_s4  ;;  %s3654_s23 = smov [#allocation7]  }
  0x49   : > { %s3543_s28 = sshll.u32 %s3654_s23, 4  ;;  %s3544_s28 = int_to_ptr.vmem [resolvable:$false] %s3543_s28 }
  0x4a   : > { %p3541_p3 = pnand %p3539_p6, %p3471_p4  ;;  %s3545_s11 = scalar_lea.vmem %s3544_s28, 4096 }
  0x4b   : > { %p3546_p9 = scmp.lt.s32.totalorder %s3825_s9, %s3544_s28  ;;  %p3547_p10 = scmp.lt.s32.totalorder %s3545_s11, %s3538_s4 }
  0x4c   : > { %p3542_p8 = pneg %p3541_p3 }
  0x4d   : > { %p3548_p11 = por %p3547_p10, %p3546_p9 }
  0x4f   : > { %p3549_p12 = pnand %p3548_p11, %p3542_p8 }
  0x51   : > { %3552 = shalt.err (!%p3549_p12)
}
  0x52   : > { %s3655_s2 = smov 64   ;;  %s3656_s30 = smov 4  }
  0x53   : > { %2957 = dma.hbm_to_vmem [thread:$0]  (!%p3809_p2), %s244_s0, 2048, %s3825_s9, %s3814_s13, %s3655_s2, %s3655_s2, %s3656_s30  }
  0x54   : > { %257 = sbr.rel (%p3829_p5) target bundleno = 799 (0x31f), region = 36  ;;  %s259_s27 = sand.u32 (!%p3829_p5), 1, %s3623_s19  }
  0x55   : > { %s2619_s29 = sshll.u32 (!%p3829_p5), %s259_s27, 11  ;;  %s260_s5 = scalar_lea.sflag (!%p3829_p5), [#allocation4], %s259_s27 }
  0x56   : > { %s3860_s14 = scalar_lea.vmem (!%p3829_p5), [#allocation3], %s2619_s29 }
  0x59   : > { %3598 = dma.done.wait (%p3765_p7), %s260_s5, 32768  }
  0x5a   : > { %3600 = vsyncadd (%p3765_p7), %s260_s5, 4294934528  ;;  %s4275_s8 = sadd.s32 4294967295, %s3647_s25   ;;  %s270_s6 = sand.u32 1, %s3611_s16  }
  0x5b   : > { %s268_s13 = sand.u32 1, %s4275_s8   ;;  %s3869_s9 = sshll.u32 %s270_s6, 1 }
  0x5c   : > { %s269_s12 = scalar_lea.sflag [#allocation6], %s268_s13  ;;  %s272_s17 = scalar_lea.vmem [#allocation5], %s3869_s9 }
  0x5d   : > { %3602 = dma.done.wait (%p3792_p0), %s269_s12, 2080  }
  0x5e   : > { %3604 = vsyncadd (%p3792_p0), %s269_s12, 4294965216  ;;  %s2621_s7 = sshll.u32 %s270_s6, 7  ;;  %s2622_s10 = sshll.u32 %s3631_s21, 4 }
  0x5f   : > { %p321_p7 = scmp.lt.s32.totalorder %s2622_s10, 143  ;;  %p330_p1 = scmp.lt.s32.totalorder %s3635_s22, 1 }
  0x60   : > { %s4276_s0 = sld [smem:[#allocation17_spill]]  ;;  %s3889_s30 = scalar_lea.vmem [#allocation7], %s2621_s7 }
  0x61   : > { %s4299_s10 = smov (!%p321_p7, %s2622_s10), 143  ;;  %s4301_s22 = smov (!%p330_p1, %s3635_s22), 1 }
  0x62   : > { %s2623_s15 = sshll.u32 %s4299_s10, 2  ;;  %s2624_s23 = sshll.u32 %s4301_s22, 3 }
  0x63   : > { %s4277_s18 = sld [smem:[#allocation19_spill]]  ;;  %p2625_p0 = scmp.ne.s32.totalorder %s3631_s21, 0 }
  0x65   : > { %338 = sbr.rel (%p2625_p0) target bundleno = 108 (0x6c), region = 52 }
  0x66   : > { %s3882_s4 = scalar_lea.vmem %s4276_s0, %s2623_s15 }
  0x69   : > { %s3887_s2 = scalar_lea.vmem %s4277_s18, %s2624_s23 }
  0x6a   : > { %v3657_v0 = vmov 0.0  }
  0x6b   : > { %339 = vst [vmem:[#allocation2] sm:$0xff] %v3657_v0  ;;  %340 = vst [vmem:[#allocation2 + $0x8] sm:$0xff] %v3657_v0 }
  0x6c PF: > { %v3053_v1 = vld [vmem:[%s3860_s14 + $0x74] ss:$8 sps:$4 sm:$0xff]   ;;  %v3057_v3 = vld [vmem:[%s3860_s14 + $0x70] ss:$8 sps:$4 sm:$0xff]   ;;  %v3059_v5 = vld [vmem:[%s3860_s14 + $0x64] ss:$8 sps:$4 sm:$0xff]  }
  0x6d   : > { %v3055_v2 = vld [vmem:[%s3860_s14 + $0x174] ss:$8 sps:$4 sm:$0xff]   ;;  %1943 = vmatprep.subr.bf16.mxu0 %v3053_v1  ;;  %v3058_v4 = vld [vmem:[%s3860_s14 + $0x170] ss:$8 sps:$4 sm:$0xff]   ;;  %v3061_v6 = vld [vmem:[%s3860_s14 + $0x164] ss:$8 sps:$4 sm:$0xff]  }
  0x6e   : > { %1984 = vmatprep.subr.bf16.mxu1 %v3055_v2  ;;  %1944 = vmatpush1.bf16.msra.mxu0 %v3057_v3  ;;  %v3063_v7 = vld [vmem:[%s3860_s14 + $0x60] ss:$8 sps:$4 sm:$0xff]   ;;  %v3065_v9 = vld [vmem:[%s3860_s14 + $0x54] ss:$8 sps:$4 sm:$0xff]   ;;  %v3069_v11 = vld [vmem:[%s3860_s14 + $0x50] ss:$8 sps:$4 sm:$0xff]  }
  0x6f   : > { %1985 = vmatpush1.bf16.msra.mxu1 %v3058_v4  ;;  %1945 = vmatprep.subr.bf16.mxu0 %v3059_v5  ;;  %v3064_v8 = vld [vmem:[%s3860_s14 + $0x160] ss:$8 sps:$4 sm:$0xff]   ;;  %v3067_v10 = vld [vmem:[%s3860_s14 + $0x154] ss:$8 sps:$4 sm:$0xff]   ;;  %v3070_v12 = vld [vmem:[%s3860_s14 + $0x150] ss:$8 sps:$4 sm:$0xff]  }
  0x70   : > { %1986 = vmatprep.subr.bf16.mxu1 %v3061_v6  ;;  %v3071_v13 = vld [vmem:[%s3860_s14 + $0x44] ss:$8 sps:$4 sm:$0xff]   ;;  %v3075_v15 = vld [vmem:[%s3860_s14 + $0x40] ss:$8 sps:$4 sm:$0xff]   ;;  %v3077_v17 = vld [vmem:[%s3860_s14 + $0x34] ss:$8 sps:$4 sm:$0xff]  }
  0x71   : > { %v3073_v14 = vld [vmem:[%s3860_s14 + $0x144] ss:$8 sps:$4 sm:$0xff]   ;;  %v3076_v16 = vld [vmem:[%s3860_s14 + $0x140] ss:$8 sps:$4 sm:$0xff]   ;;  %v3079_v18 = vld [vmem:[%s3860_s14 + $0x134] ss:$8 sps:$4 sm:$0xff]  }
  0x72   : > { %1946 = vmatpush1.bf16.msra.mxu0 %v3063_v7  ;;  %v3081_v19 = vld [vmem:[%s3860_s14 + $0x30] ss:$8 sps:$4 sm:$0xff]   ;;  %v3083_v21 = vld [vmem:[%s3860_s14 + $0x24] ss:$8 sps:$4 sm:$0xff]   ;;  %v3087_v23 = vld [vmem:[%s3860_s14 + $0x20] ss:$8 sps:$4 sm:$0xff]  }
  0x73   : > { %1987 = vmatpush1.bf16.msra.mxu1 %v3064_v8  ;;  %1947 = vmatprep.subr.bf16.mxu0 %v3065_v9  ;;  %v3082_v20 = vld [vmem:[%s3860_s14 + $0x130] ss:$8 sps:$4 sm:$0xff]   ;;  %v3085_v22 = vld [vmem:[%s3860_s14 + $0x124] ss:$8 sps:$4 sm:$0xff]   ;;  %v3088_v24 = vld [vmem:[%s3860_s14 + $0x120] ss:$8 sps:$4 sm:$0xff]  }
  0x74   : > { %1988 = vmatprep.subr.bf16.mxu1 %v3067_v10  ;;  %v3089_v25 = vld [vmem:[%s3860_s14 + $0x14] ss:$8 sps:$4 sm:$0xff]   ;;  %v3093_v27 = vld [vmem:[%s3860_s14 + $0x10] ss:$8 sps:$4 sm:$0xff]   ;;  %v3095_v29 = vld [vmem:[%s3860_s14 + $0x4] ss:$8 sps:$4 sm:$0xff]  }
  0x75   : > { %v3091_v26 = vld [vmem:[%s3860_s14 + $0x114] ss:$8 sps:$4 sm:$0xff]   ;;  %v3094_v28 = vld [vmem:[%s3860_s14 + $0x110] ss:$8 sps:$4 sm:$0xff]   ;;  %v3097_v30 = vld [vmem:[%s3860_s14 + $0x104] ss:$8 sps:$4 sm:$0xff]  }
  0x76   : > { %1948 = vmatpush1.bf16.msra.mxu0 %v3069_v11  ;;  %v3099_v31 = vld [vmem:[%s3860_s14] ss:$8 sps:$4 sm:$0xff]   ;;  %v3101_v33 = vld [vmem:[%s3860_s14 + $0xf4] ss:$8 sps:$4 sm:$0xff]   ;;  %v3105_v35 = vld [vmem:[%s3860_s14 + $0xf0] ss:$8 sps:$4 sm:$0xff]  }
  0x77   : > { %1989 = vmatpush1.bf16.msra.mxu1 %v3070_v12  ;;  %1949 = vmatprep.subr.bf16.mxu0 %v3071_v13  ;;  %v3100_v32 = vld [vmem:[%s3860_s14 + $0x100] ss:$8 sps:$4 sm:$0xff]   ;;  %v3103_v34 = vld [vmem:[%s3860_s14 + $0x1f4] ss:$8 sps:$4 sm:$0xff]   ;;  %v3106_v36 = vld [vmem:[%s3860_s14 + $0x1f0] ss:$8 sps:$4 sm:$0xff]  }
  0x78   : > { %1990 = vmatprep.subr.bf16.mxu1 %v3073_v14  ;;  %v3107_v37 = vld [vmem:[%s3860_s14 + $0xe4] ss:$8 sps:$4 sm:$0xff]   ;;  %v3111_v39 = vld [vmem:[%s3860_s14 + $0xe0] ss:$8 sps:$4 sm:$0xff]   ;;  %v3113_v41 = vld [vmem:[%s3860_s14 + $0xd4] ss:$8 sps:$4 sm:$0xff]  }
  0x79   : > { %v3109_v38 = vld [vmem:[%s3860_s14 + $0x1e4] ss:$8 sps:$4 sm:$0xff]   ;;  %v3112_v40 = vld [vmem:[%s3860_s14 + $0x1e0] ss:$8 sps:$4 sm:$0xff]   ;;  %v3115_v42 = vld [vmem:[%s3860_s14 + $0x1d4] ss:$8 sps:$4 sm:$0xff]  }
  0x7a   : > { %1950 = vmatpush1.bf16.msra.mxu0 %v3075_v15  ;;  %v3117_v43 = vld [vmem:[%s3860_s14 + $0xd0] ss:$8 sps:$4 sm:$0xff]   ;;  %v3119_v45 = vld [vmem:[%s3860_s14 + $0xc4] ss:$8 sps:$4 sm:$0xff]   ;;  %v3123_v50 = vld [vmem:[%s3860_s14 + $0xc0] ss:$8 sps:$4 sm:$0xff]  }
  0x7b   : > { %1991 = vmatpush1.bf16.msra.mxu1 %v3076_v16  ;;  %1951 = vmatprep.subr.bf16.mxu0 %v3077_v17  ;;  %v3118_v44 = vld [vmem:[%s3860_s14 + $0x1d0] ss:$8 sps:$4 sm:$0xff]   ;;  %v3121_v46 = vld [vmem:[%s3860_s14 + $0x1c4] ss:$8 sps:$4 sm:$0xff]   ;;  %v3124_v51 = vld [vmem:[%s3860_s14 + $0x1c0] ss:$8 sps:$4 sm:$0xff]  }
  0x7c   : > { %1992 = vmatprep.subr.bf16.mxu1 %v3079_v18  ;;  %v343_v47 = vld [vmem:[%s3882_s4] sm:$0xff]  ;;  %v344_v49 = vld [vmem:[%s3882_s4 + $0x8] sm:$0xff]  ;;  %v3131_v57 = vld [vmem:[%s3860_s14 + $0xa4] ss:$8 sps:$4 sm:$0xff]   ;;  %p2898_p2 = scmp.ne.s32.totalorder %s3631_s21, 8 }
  0x7d   : > { %v2627_v48 = vcombine.high %v343_v47, %v343_v47  ;;  %v2629_v52 = vcombine.high %v344_v49, %v344_v49  ;;  %v3125_v53 = vld [vmem:[%s3860_s14 + $0xb4] ss:$8 sps:$4 sm:$0xff]   ;;  %v3129_v55 = vld [vmem:[%s3860_s14 + $0xb0] ss:$8 sps:$4 sm:$0xff]   ;;  %v3133_v58 = vld [vmem:[%s3860_s14 + $0x1a4] ss:$8 sps:$4 sm:$0xff]   ;;  %v2626_v7 = vcombine.low %v343_v47, %v343_v47  ;;  %v2628_v8 = vcombine.low %v344_v49, %v344_v49 }
  0x7e   : > { %1952 = vmatpush1.bf16.msra.mxu0 %v3081_v19  ;;  %v3127_v54 = vld [vmem:[%s3860_s14 + $0x1b4] ss:$8 sps:$4 sm:$0xff]   ;;  %v3130_v56 = vld [vmem:[%s3860_s14 + $0x1b0] ss:$8 sps:$4 sm:$0xff]   ;;  %v3135_v59 = vld [vmem:[%s3860_s14 + $0xa0] ss:$8 sps:$4 sm:$0xff]  }
  0x7f   : > { %1993 = vmatpush1.bf16.msra.mxu1 %v3082_v20  ;;  %1953 = vmatprep.subr.bf16.mxu0 %v3083_v21  ;;  %v3136_v60 = vld [vmem:[%s3860_s14 + $0x1a0] ss:$8 sps:$4 sm:$0xff]   ;;  %v3137_v61 = vld [vmem:[%s3860_s14 + $0x94] ss:$8 sps:$4 sm:$0xff]   ;;  %v3141_v63 = vld [vmem:[%s3860_s14 + $0x90] ss:$8 sps:$4 sm:$0xff]  }
  0x80   : > { %1994 = vmatprep.subr.bf16.mxu1 %v3085_v22  ;;  %1975 = vmatprep.mubr.bf16.mxu0 %v2627_v48  ;;  %v3139_v62 = vld [vmem:[%s3860_s14 + $0x194] ss:$8 sps:$4 sm:$0xff]   ;;  %v3142_v0 = vld [vmem:[%s3860_s14 + $0x190] ss:$8 sps:$4 sm:$0xff]   ;;  %v3143_v1 = vld [vmem:[%s3860_s14 + $0x84] ss:$8 sps:$4 sm:$0xff]  }
  0x81   : > { %2016 = vmatprep.mubr.bf16.mxu1 %v2629_v52  ;;  %v3145_v2 = vld [vmem:[%s3860_s14 + $0x184] ss:$8 sps:$4 sm:$0xff]   ;;  %v3147_v3 = vld [vmem:[%s3860_s14 + $0x80] ss:$8 sps:$4 sm:$0xff]   ;;  %v3155_v5 = vld [vmem:[%s3860_s14 + $0x274] ss:$8 sps:$4 sm:$0xff]  }
  0x82   : > { %1954 = vmatpush1.bf16.msra.mxu0 %v3087_v23  ;;  %v3148_v4 = vld [vmem:[%s3860_s14 + $0x180] ss:$8 sps:$4 sm:$0xff]   ;;  %v3158_v6 = vld [vmem:[%s3860_s14 + $0x374] ss:$8 sps:$4 sm:$0xff]   ;;  %v3153_v9 = vld [vmem:[%s3860_s14 + $0x270] ss:$8 sps:$4 sm:$0xff]  }
  0x83   : > { %1995 = vmatpush1.bf16.msra.mxu1 %v3088_v24  ;;  %1955 = vmatprep.subr.bf16.mxu0 %v3089_v25  ;;  %v3156_v10 = vld [vmem:[%s3860_s14 + $0x370] ss:$8 sps:$4 sm:$0xff]   ;;  %v3161_v11 = vld [vmem:[%s3860_s14 + $0x264] ss:$8 sps:$4 sm:$0xff]   ;;  %v3159_v13 = vld [vmem:[%s3860_s14 + $0x260] ss:$8 sps:$4 sm:$0xff]  }
  0x84   : > { %1996 = vmatprep.subr.bf16.mxu1 %v3091_v26  ;;  %v3164_v12 = vld [vmem:[%s3860_s14 + $0x364] ss:$8 sps:$4 sm:$0xff]   ;;  %v3162_v14 = vld [vmem:[%s3860_s14 + $0x360] ss:$8 sps:$4 sm:$0xff]   ;;  %v3167_v15 = vld [vmem:[%s3860_s14 + $0x254] ss:$8 sps:$4 sm:$0xff]  }
  0x85   : > { %v3170_v16 = vld [vmem:[%s3860_s14 + $0x354] ss:$8 sps:$4 sm:$0xff]   ;;  %v3165_v17 = vld [vmem:[%s3860_s14 + $0x250] ss:$8 sps:$4 sm:$0xff]   ;;  %v3173_v19 = vld [vmem:[%s3860_s14 + $0x244] ss:$8 sps:$4 sm:$0xff]  }
  0x86   : > { %1956 = vmatpush1.bf16.msra.mxu0 %v3093_v27  ;;  %v3168_v18 = vld [vmem:[%s3860_s14 + $0x350] ss:$8 sps:$4 sm:$0xff]   ;;  %v3176_v20 = vld [vmem:[%s3860_s14 + $0x344] ss:$8 sps:$4 sm:$0xff]   ;;  %v3171_v21 = vld [vmem:[%s3860_s14 + $0x240] ss:$8 sps:$4 sm:$0xff]  }
  0x87   : > { %1997 = vmatpush1.bf16.msra.mxu1 %v3094_v28  ;;  %1957 = vmatprep.subr.bf16.mxu0 %v3095_v29  ;;  %v3174_v22 = vld [vmem:[%s3860_s14 + $0x340] ss:$8 sps:$4 sm:$0xff]   ;;  %v3179_v23 = vld [vmem:[%s3860_s14 + $0x234] ss:$8 sps:$4 sm:$0xff]   ;;  %v3177_v25 = vld [vmem:[%s3860_s14 + $0x230] ss:$8 sps:$4 sm:$0xff]  }
  0x88   : > { %1998 = vmatprep.subr.bf16.mxu1 %v3097_v30  ;;  %v3182_v24 = vld [vmem:[%s3860_s14 + $0x334] ss:$8 sps:$4 sm:$0xff]   ;;  %v3180_v26 = vld [vmem:[%s3860_s14 + $0x330] ss:$8 sps:$4 sm:$0xff]   ;;  %v3185_v27 = vld [vmem:[%s3860_s14 + $0x224] ss:$8 sps:$4 sm:$0xff]  }
  0x89   : > { %v3188_v28 = vld [vmem:[%s3860_s14 + $0x324] ss:$8 sps:$4 sm:$0xff]   ;;  %v3183_v29 = vld [vmem:[%s3860_s14 + $0x220] ss:$8 sps:$4 sm:$0xff]   ;;  %v3218_v52 = vld [vmem:[%s3860_s14 + $0x3d4] ss:$8 sps:$4 sm:$0xff]  }
  0x8a   : > { %1958 = vmatpush1.bf16.msra.mxu0 %v3099_v31  ;;  %v3186_v30 = vld [vmem:[%s3860_s14 + $0x320] ss:$8 sps:$4 sm:$0xff]   ;;  %v3191_v31 = vld [vmem:[%s3860_s14 + $0x214] ss:$8 sps:$4 sm:$0xff]   ;;  %v3209_v47 = vld [vmem:[%s3860_s14 + $0x2e4] ss:$8 sps:$4 sm:$0xff]  }
  0x8b   : > { %1999 = vmatpush1.bf16.msra.mxu1 %v3100_v32  ;;  %1959 = vmatprep.subr.bf16.mxu0 %v3101_v33  ;;  %v3194_v32 = vld [vmem:[%s3860_s14 + $0x314] ss:$8 sps:$4 sm:$0xff]   ;;  %v3985_v33 = vld [vmem:[%s3882_s4 + $0x10] sm:$0xff] }
  0x8c   : > { %2000 = vmatprep.subr.bf16.mxu1 %v3103_v34  ;;  %v3988_v34 = vld [vmem:[%s3882_s4 + $0x18] sm:$0xff] }
  0x8d   : > { %v3212_v48 = vld [vmem:[%s3860_s14 + $0x3e4] ss:$8 sps:$4 sm:$0xff]   ;;  %v3207_v49 = vld [vmem:[%s3860_s14 + $0x2e0] ss:$8 sps:$4 sm:$0xff]  }
  0x8e   : > { %1960 = vmatpush2.bf16.msra.mxu0 %v3105_v35  ;;  %v3189_v35 = vld [vmem:[%s3860_s14 + $0x210] ss:$8 sps:$4 sm:$0xff]  }
  0x8f   : > { %2001 = vmatpush2.bf16.msra.mxu1 %v3106_v36  ;;  %1961 = vmatprep.subr.bf16.mxu0 %v3107_v37  ;;  %v3192_v36 = vld [vmem:[%s3860_s14 + $0x310] ss:$8 sps:$4 sm:$0xff]   ;;  %v2631_v37 = vcombine.high %v3985_v33, %v3985_v33 }
  0x90   : > { %2002 = vmatprep.subr.bf16.mxu1 %v3109_v38  ;;  %v2633_v38 = vcombine.high %v3988_v34, %v3988_v34 }
  0x92   : > { %1962 = vmatpush2.bf16.msra.mxu0 %v3111_v39  ;;  %v3197_v39 = vld [vmem:[%s3860_s14 + $0x204] ss:$8 sps:$4 sm:$0xff]  }
  0x93   : > { %2003 = vmatpush2.bf16.msra.mxu1 %v3112_v40  ;;  %1963 = vmatprep.subr.bf16.mxu0 %v3113_v41  ;;  %v3200_v40 = vld [vmem:[%s3860_s14 + $0x304] ss:$8 sps:$4 sm:$0xff]   ;;  %v3195_v41 = vld [vmem:[%s3860_s14 + $0x200] ss:$8 sps:$4 sm:$0xff]  }
  0x94   : > { %2004 = vmatprep.subr.bf16.mxu1 %v3115_v42  ;;  %v3198_v42 = vld [vmem:[%s3860_s14 + $0x300] ss:$8 sps:$4 sm:$0xff]  }
  0x96   : > { %1964 = vmatpush2.bf16.msra.mxu0 %v3117_v43  ;;  %v3203_v43 = vld [vmem:[%s3860_s14 + $0x2f4] ss:$8 sps:$4 sm:$0xff]  }
  0x97   : > { %2005 = vmatpush2.bf16.msra.mxu1 %v3118_v44  ;;  %1965 = vmatprep.subr.bf16.mxu0 %v3119_v45  ;;  %v3206_v44 = vld [vmem:[%s3860_s14 + $0x3f4] ss:$8 sps:$4 sm:$0xff]   ;;  %v3201_v45 = vld [vmem:[%s3860_s14 + $0x2f0] ss:$8 sps:$4 sm:$0xff]  }
  0x98   : > { %2006 = vmatprep.subr.bf16.mxu1 %v3121_v46  ;;  %v3204_v46 = vld [vmem:[%s3860_s14 + $0x3f0] ss:$8 sps:$4 sm:$0xff]  }
  0x9a   : > { %1966 = vmatpush2.bf16.msra.mxu0 %v3123_v50  ;;  %v3210_v50 = vld [vmem:[%s3860_s14 + $0x3e0] ss:$8 sps:$4 sm:$0xff]  }
  0x9b   : > { %2007 = vmatpush2.bf16.msra.mxu1 %v3124_v51  ;;  %1967 = vmatprep.subr.bf16.mxu0 %v3125_v53  ;;  %v3215_v51 = vld [vmem:[%s3860_s14 + $0x2d4] ss:$8 sps:$4 sm:$0xff]   ;;  %v3213_v53 = vld [vmem:[%s3860_s14 + $0x2d0] ss:$8 sps:$4 sm:$0xff]  }
  0x9c   : > { %2008 = vmatprep.subr.bf16.mxu1 %v3127_v54  ;;  %v3216_v54 = vld [vmem:[%s3860_s14 + $0x3d0] ss:$8 sps:$4 sm:$0xff]  }
  0x9e   : > { %1968 = vmatpush2.bf16.msra.mxu0 %v3129_v55  ;;  %v3221_v55 = vld [vmem:[%s3860_s14 + $0x2c4] ss:$8 sps:$4 sm:$0xff]  }
  0x9f   : > { %2009 = vmatpush2.bf16.msra.mxu1 %v3130_v56  ;;  %1969 = vmatprep.subr.bf16.mxu0 %v3131_v57  ;;  %v3224_v56 = vld [vmem:[%s3860_s14 + $0x3c4] ss:$8 sps:$4 sm:$0xff]   ;;  %v3219_v57 = vld [vmem:[%s3860_s14 + $0x2c0] ss:$8 sps:$4 sm:$0xff]  }
  0xa0   : > { %2010 = vmatprep.subr.bf16.mxu1 %v3133_v58  ;;  %v3222_v58 = vld [vmem:[%s3860_s14 + $0x3c0] ss:$8 sps:$4 sm:$0xff]  }
  0xa2   : > { %1970 = vmatpush2.bf16.msra.mxu0 %v3135_v59  ;;  %v3227_v59 = vld [vmem:[%s3860_s14 + $0x2b4] ss:$8 sps:$4 sm:$0xff]  }
  0xa3   : > { %2011 = vmatpush2.bf16.msra.mxu1 %v3136_v60  ;;  %1971 = vmatprep.subr.bf16.mxu0 %v3137_v61  ;;  %v3230_v60 = vld [vmem:[%s3860_s14 + $0x3b4] ss:$8 sps:$4 sm:$0xff]   ;;  %v3225_v61 = vld [vmem:[%s3860_s14 + $0x2b0] ss:$8 sps:$4 sm:$0xff]  }
  0xa4   : > { %2012 = vmatprep.subr.bf16.mxu1 %v3139_v62  ;;  %v3228_v62 = vld [vmem:[%s3860_s14 + $0x3b0] ss:$8 sps:$4 sm:$0xff]  }
  0xa6   : > { %1972 = vmatpush2.bf16.msra.mxu0 %v3141_v63  ;;  %v3233_v63 = vld [vmem:[%s3860_s14 + $0x2a4] ss:$8 sps:$4 sm:$0xff]  }
  0xa7   : > { %2013 = vmatpush2.bf16.msra.mxu1 %v3142_v0  ;;  %1973 = vmatprep.subr.bf16.mxu0 %v3143_v1  ;;  %v3236_v0 = vld [vmem:[%s3860_s14 + $0x3a4] ss:$8 sps:$4 sm:$0xff]   ;;  %v3231_v1 = vld [vmem:[%s3860_s14 + $0x2a0] ss:$8 sps:$4 sm:$0xff]  }
  0xa8   : > { %2014 = vmatprep.subr.bf16.mxu1 %v3145_v2  ;;  %v3234_v2 = vld [vmem:[%s3860_s14 + $0x3a0] ss:$8 sps:$4 sm:$0xff]  }
  0xaa   : > { %1974 = vmatpush2.bf16.msra.mxu0 %v3147_v3  ;;  %v3239_v3 = vld [vmem:[%s3860_s14 + $0x294] ss:$8 sps:$4 sm:$0xff]  }
  0xab   : > { %2015 = vmatpush2.bf16.msra.mxu1 %v3148_v4  ;;  %2025 = vmatprep.subr.bf16.mxu0 %v3155_v5  ;;  %v3242_v4 = vld [vmem:[%s3860_s14 + $0x394] ss:$8 sps:$4 sm:$0xff]   ;;  %v3237_v5 = vld [vmem:[%s3860_s14 + $0x290] ss:$8 sps:$4 sm:$0xff]  }
  0xac   : > { %2066 = vmatprep.subr.bf16.mxu1 %v3158_v6  ;;  %v3240_v6 = vld [vmem:[%s3860_s14 + $0x390] ss:$8 sps:$4 sm:$0xff]  }
  0xad   : > { %1976 = vmatmul.mubr.bf16.vlgmr.msra.gmra.mxu0 %v2626_v7  ;;  %v3245_v7 = vld [vmem:[%s3860_s14 + $0x284] ss:$8 sps:$4 sm:$0xff]  }
  0xae   : > { %2017 = vmatmul.mubr.bf16.vlgmr.msra.gmra.mxu1 %v2628_v8  ;;  %2026 = vmatpush1.bf16.msra.mxu0 %v3153_v9  ;;  %v3248_v8 = vld [vmem:[%s3860_s14 + $0x384] ss:$8 sps:$4 sm:$0xff]   ;;  %v3243_v9 = vld [vmem:[%s3860_s14 + $0x280] ss:$8 sps:$4 sm:$0xff]  }
  0xaf   : > { %2067 = vmatpush1.bf16.msra.mxu1 %v3156_v10  ;;  %2027 = vmatprep.subr.bf16.mxu0 %v3161_v11  ;;  %v3246_v10 = vld [vmem:[%s3860_s14 + $0x380] ss:$8 sps:$4 sm:$0xff]   ;;  %v3255_v11 = vld [vmem:[%s3860_s14 + $0x474] ss:$8 sps:$4 sm:$0xff]  }
  0xb0   : > { %2068 = vmatprep.subr.bf16.mxu1 %v3164_v12  ;;  %2057 = vmatprep.mubr.bf16.mxu0 %v2631_v37  ;;  %v3258_v12 = vld [vmem:[%s3860_s14 + $0x574] ss:$8 sps:$4 sm:$0xff]   ;;  %v3285_v37 = vld [vmem:[%s3860_s14 + $0x424] ss:$8 sps:$4 sm:$0xff]  }
  0xb1   : > { %2098 = vmatprep.mubr.bf16.mxu1 %v2633_v38  ;;  %v3288_v38 = vld [vmem:[%s3860_s14 + $0x524] ss:$8 sps:$4 sm:$0xff]  }
  0xb2   : > { %2028 = vmatpush1.bf16.msra.mxu0 %v3159_v13  ;;  %v2630_v13 = vcombine.low %v3985_v33, %v3985_v33  ;;  %v3279_v33 = vld [vmem:[%s3860_s14 + $0x434] ss:$8 sps:$4 sm:$0xff]  }
  0xb3   : > { %2069 = vmatpush1.bf16.msra.mxu1 %v3162_v14  ;;  %2029 = vmatprep.subr.bf16.mxu0 %v3167_v15  ;;  %v2632_v14 = vcombine.low %v3988_v34, %v3988_v34  ;;  %v3253_v15 = vld [vmem:[%s3860_s14 + $0x470] ss:$8 sps:$4 sm:$0xff]   ;;  %v3282_v34 = vld [vmem:[%s3860_s14 + $0x534] ss:$8 sps:$4 sm:$0xff]  }
  0xb4   : > { %2070 = vmatprep.subr.bf16.mxu1 %v3170_v16  ;;  %v3256_v16 = vld [vmem:[%s3860_s14 + $0x570] ss:$8 sps:$4 sm:$0xff]  }
  0xb6   : > { %2030 = vmatpush1.bf16.msra.mxu0 %v3165_v17  ;;  %v3261_v17 = vld [vmem:[%s3860_s14 + $0x464] ss:$8 sps:$4 sm:$0xff]  }
  0xb7   : > { %2071 = vmatpush1.bf16.msra.mxu1 %v3168_v18  ;;  %2031 = vmatprep.subr.bf16.mxu0 %v3173_v19  ;;  %v3264_v18 = vld [vmem:[%s3860_s14 + $0x564] ss:$8 sps:$4 sm:$0xff]   ;;  %v4043_v19 = vld [vmem:[%s3882_s4 + $0x20] sm:$0xff] }
  0xb8   : > { %2072 = vmatprep.subr.bf16.mxu1 %v3176_v20  ;;  %v4046_v20 = vld [vmem:[%s3882_s4 + $0x28] sm:$0xff] }
  0xba   : > { %2032 = vmatpush1.bf16.msra.mxu0 %v3171_v21  ;;  %v2635_v21 = vcombine.high %v4043_v19, %v4043_v19 }
  0xbb   : > { %2073 = vmatpush1.bf16.msra.mxu1 %v3174_v22  ;;  %2033 = vmatprep.subr.bf16.mxu0 %v3179_v23  ;;  %v2637_v22 = vcombine.high %v4046_v20, %v4046_v20  ;;  %v3259_v23 = vld [vmem:[%s3860_s14 + $0x460] ss:$8 sps:$4 sm:$0xff]  }
  0xbc   : > { %2074 = vmatprep.subr.bf16.mxu1 %v3182_v24  ;;  %v3262_v24 = vld [vmem:[%s3860_s14 + $0x560] ss:$8 sps:$4 sm:$0xff]  }
  0xbe   : > { %2034 = vmatpush1.bf16.msra.mxu0 %v3177_v25  ;;  %v3267_v25 = vld [vmem:[%s3860_s14 + $0x454] ss:$8 sps:$4 sm:$0xff]  }
  0xbf   : > { %2075 = vmatpush1.bf16.msra.mxu1 %v3180_v26  ;;  %2035 = vmatprep.subr.bf16.mxu0 %v3185_v27  ;;  %v3270_v26 = vld [vmem:[%s3860_s14 + $0x554] ss:$8 sps:$4 sm:$0xff]   ;;  %v3265_v27 = vld [vmem:[%s3860_s14 + $0x450] ss:$8 sps:$4 sm:$0xff]  }
  0xc0   : > { %2076 = vmatprep.subr.bf16.mxu1 %v3188_v28  ;;  %v3268_v28 = vld [vmem:[%s3860_s14 + $0x550] ss:$8 sps:$4 sm:$0xff]  }
  0xc2   : > { %2036 = vmatpush1.bf16.msra.mxu0 %v3183_v29  ;;  %v3273_v29 = vld [vmem:[%s3860_s14 + $0x444] ss:$8 sps:$4 sm:$0xff]  }
  0xc3   : > { %2077 = vmatpush1.bf16.msra.mxu1 %v3186_v30  ;;  %2037 = vmatprep.subr.bf16.mxu0 %v3191_v31  ;;  %v3276_v30 = vld [vmem:[%s3860_s14 + $0x544] ss:$8 sps:$4 sm:$0xff]   ;;  %v3271_v31 = vld [vmem:[%s3860_s14 + $0x440] ss:$8 sps:$4 sm:$0xff]  }
  0xc4   : > { %2078 = vmatprep.subr.bf16.mxu1 %v3194_v32  ;;  %v3274_v32 = vld [vmem:[%s3860_s14 + $0x540] ss:$8 sps:$4 sm:$0xff]  }
  0xc6   : > { %2038 = vmatpush1.bf16.msra.mxu0 %v3189_v35  ;;  %v3277_v35 = vld [vmem:[%s3860_s14 + $0x430] ss:$8 sps:$4 sm:$0xff]  }
  0xc7   : > { %2079 = vmatpush1.bf16.msra.mxu1 %v3192_v36  ;;  %2039 = vmatprep.subr.bf16.mxu0 %v3197_v39  ;;  %v3280_v36 = vld [vmem:[%s3860_s14 + $0x530] ss:$8 sps:$4 sm:$0xff]   ;;  %v3283_v39 = vld [vmem:[%s3860_s14 + $0x420] ss:$8 sps:$4 sm:$0xff]  }
  0xc8   : > { %2080 = vmatprep.subr.bf16.mxu1 %v3200_v40  ;;  %v3286_v40 = vld [vmem:[%s3860_s14 + $0x520] ss:$8 sps:$4 sm:$0xff]  }
  0xca   : > { %2040 = vmatpush1.bf16.msra.mxu0 %v3195_v41  ;;  %v3291_v41 = vld [vmem:[%s3860_s14 + $0x414] ss:$8 sps:$4 sm:$0xff]  }
  0xcb   : > { %2081 = vmatpush1.bf16.msra.mxu1 %v3198_v42  ;;  %2041 = vmatprep.subr.bf16.mxu0 %v3203_v43  ;;  %v3294_v42 = vld [vmem:[%s3860_s14 + $0x514] ss:$8 sps:$4 sm:$0xff]   ;;  %v3289_v43 = vld [vmem:[%s3860_s14 + $0x410] ss:$8 sps:$4 sm:$0xff]  }
  0xcc   : > { %2082 = vmatprep.subr.bf16.mxu1 %v3206_v44  ;;  %v3292_v44 = vld [vmem:[%s3860_s14 + $0x510] ss:$8 sps:$4 sm:$0xff]  }
  0xce   : > { %2042 = vmatpush2.bf16.msra.mxu0 %v3201_v45  ;;  %v3297_v45 = vld [vmem:[%s3860_s14 + $0x404] ss:$8 sps:$4 sm:$0xff]  }
  0xcf   : > { %2083 = vmatpush2.bf16.msra.mxu1 %v3204_v46  ;;  %2043 = vmatprep.subr.bf16.mxu0 %v3209_v47  ;;  %v3300_v46 = vld [vmem:[%s3860_s14 + $0x504] ss:$8 sps:$4 sm:$0xff]   ;;  %v3295_v47 = vld [vmem:[%s3860_s14 + $0x400] ss:$8 sps:$4 sm:$0xff]  }
  0xd0   : > { %2084 = vmatprep.subr.bf16.mxu1 %v3212_v48  ;;  %v3298_v48 = vld [vmem:[%s3860_s14 + $0x500] ss:$8 sps:$4 sm:$0xff]  }
  0xd2   : > { %2044 = vmatpush2.bf16.msra.mxu0 %v3207_v49  ;;  %v3303_v49 = vld [vmem:[%s3860_s14 + $0x4f4] ss:$8 sps:$4 sm:$0xff]  }
  0xd3   : > { %2085 = vmatpush2.bf16.msra.mxu1 %v3210_v50  ;;  %2045 = vmatprep.subr.bf16.mxu0 %v3215_v51  ;;  %v3306_v50 = vld [vmem:[%s3860_s14 + $0x5f4] ss:$8 sps:$4 sm:$0xff]   ;;  %v3301_v51 = vld [vmem:[%s3860_s14 + $0x4f0] ss:$8 sps:$4 sm:$0xff]  }
  0xd4   : > { %2086 = vmatprep.subr.bf16.mxu1 %v3218_v52  ;;  %v3304_v52 = vld [vmem:[%s3860_s14 + $0x5f0] ss:$8 sps:$4 sm:$0xff]  }
  0xd6   : > { %2046 = vmatpush2.bf16.msra.mxu0 %v3213_v53  ;;  %v3309_v53 = vld [vmem:[%s3860_s14 + $0x4e4] ss:$8 sps:$4 sm:$0xff]  }
  0xd7   : > { %2087 = vmatpush2.bf16.msra.mxu1 %v3216_v54  ;;  %2047 = vmatprep.subr.bf16.mxu0 %v3221_v55  ;;  %v3312_v54 = vld [vmem:[%s3860_s14 + $0x5e4] ss:$8 sps:$4 sm:$0xff]   ;;  %v3307_v55 = vld [vmem:[%s3860_s14 + $0x4e0] ss:$8 sps:$4 sm:$0xff]  }
  0xd8   : > { %2088 = vmatprep.subr.bf16.mxu1 %v3224_v56  ;;  %v3310_v56 = vld [vmem:[%s3860_s14 + $0x5e0] ss:$8 sps:$4 sm:$0xff]  }
  0xda   : > { %2048 = vmatpush2.bf16.msra.mxu0 %v3219_v57  ;;  %v3315_v57 = vld [vmem:[%s3860_s14 + $0x4d4] ss:$8 sps:$4 sm:$0xff]  }
  0xdb   : > { %2089 = vmatpush2.bf16.msra.mxu1 %v3222_v58  ;;  %2049 = vmatprep.subr.bf16.mxu0 %v3227_v59  ;;  %v3318_v58 = vld [vmem:[%s3860_s14 + $0x5d4] ss:$8 sps:$4 sm:$0xff]   ;;  %v3313_v59 = vld [vmem:[%s3860_s14 + $0x4d0] ss:$8 sps:$4 sm:$0xff]  }
  0xdc   : > { %2090 = vmatprep.subr.bf16.mxu1 %v3230_v60  ;;  %v3316_v60 = vld [vmem:[%s3860_s14 + $0x5d0] ss:$8 sps:$4 sm:$0xff]  }
  0xde   : > { %2050 = vmatpush2.bf16.msra.mxu0 %v3225_v61  ;;  %v3321_v61 = vld [vmem:[%s3860_s14 + $0x4c4] ss:$8 sps:$4 sm:$0xff]  }
  0xdf   : > { %2091 = vmatpush2.bf16.msra.mxu1 %v3228_v62  ;;  %2051 = vmatprep.subr.bf16.mxu0 %v3233_v63  ;;  %v3324_v62 = vld [vmem:[%s3860_s14 + $0x5c4] ss:$8 sps:$4 sm:$0xff]   ;;  %v3319_v63 = vld [vmem:[%s3860_s14 + $0x4c0] ss:$8 sps:$4 sm:$0xff]  }
  0xe0   : > { %2092 = vmatprep.subr.bf16.mxu1 %v3236_v0  ;;  %v3322_v0 = vld [vmem:[%s3860_s14 + $0x5c0] ss:$8 sps:$4 sm:$0xff]  }
  0xe2   : > { %2052 = vmatpush2.bf16.msra.mxu0 %v3231_v1  ;;  %v3327_v1 = vld [vmem:[%s3860_s14 + $0x4b4] ss:$8 sps:$4 sm:$0xff]  }
  0xe3   : > { %2093 = vmatpush2.bf16.msra.mxu1 %v3234_v2  ;;  %2053 = vmatprep.subr.bf16.mxu0 %v3239_v3  ;;  %v3330_v2 = vld [vmem:[%s3860_s14 + $0x5b4] ss:$8 sps:$4 sm:$0xff]   ;;  %v3325_v3 = vld [vmem:[%s3860_s14 + $0x4b0] ss:$8 sps:$4 sm:$0xff]  }
  0xe4   : > { %2094 = vmatprep.subr.bf16.mxu1 %v3242_v4  ;;  %v3328_v4 = vld [vmem:[%s3860_s14 + $0x5b0] ss:$8 sps:$4 sm:$0xff]  }
  0xe6   : > { %2054 = vmatpush2.bf16.msra.mxu0 %v3237_v5  ;;  %v3333_v5 = vld [vmem:[%s3860_s14 + $0x4a4] ss:$8 sps:$4 sm:$0xff]  }
  0xe7   : > { %2095 = vmatpush2.bf16.msra.mxu1 %v3240_v6  ;;  %2055 = vmatprep.subr.bf16.mxu0 %v3245_v7  ;;  %v3336_v6 = vld [vmem:[%s3860_s14 + $0x5a4] ss:$8 sps:$4 sm:$0xff]   ;;  %v3331_v7 = vld [vmem:[%s3860_s14 + $0x4a0] ss:$8 sps:$4 sm:$0xff]  }
  0xe8   : > { %2096 = vmatprep.subr.bf16.mxu1 %v3248_v8  ;;  %v3334_v8 = vld [vmem:[%s3860_s14 + $0x5a0] ss:$8 sps:$4 sm:$0xff]  }
  0xea   : > { %2056 = vmatpush2.bf16.msra.mxu0 %v3243_v9  ;;  %v3339_v9 = vld [vmem:[%s3860_s14 + $0x494] ss:$8 sps:$4 sm:$0xff]  }
  0xeb   : > { %2097 = vmatpush2.bf16.msra.mxu1 %v3246_v10  ;;  %2107 = vmatprep.subr.bf16.mxu0 %v3255_v11  ;;  %v3342_v10 = vld [vmem:[%s3860_s14 + $0x594] ss:$8 sps:$4 sm:$0xff]   ;;  %v3337_v11 = vld [vmem:[%s3860_s14 + $0x490] ss:$8 sps:$4 sm:$0xff]  }
  0xec   : > { %2148 = vmatprep.subr.bf16.mxu1 %v3258_v12  ;;  %v3340_v12 = vld [vmem:[%s3860_s14 + $0x590] ss:$8 sps:$4 sm:$0xff]  }
  0xed   : > { %2058 = vmatmul.mubr.bf16.vlgmr.msra.gmra.mxu0 %v2630_v13  ;;  %v3345_v13 = vld [vmem:[%s3860_s14 + $0x484] ss:$8 sps:$4 sm:$0xff]  }
  0xee   : > { %2099 = vmatmul.mubr.bf16.vlgmr.msra.gmra.mxu1 %v2632_v14  ;;  %2108 = vmatpush1.bf16.msra.mxu0 %v3253_v15  ;;  %v3348_v14 = vld [vmem:[%s3860_s14 + $0x584] ss:$8 sps:$4 sm:$0xff]   ;;  %v3343_v15 = vld [vmem:[%s3860_s14 + $0x480] ss:$8 sps:$4 sm:$0xff]  }
  0xef   : > { %2149 = vmatpush1.bf16.msra.mxu1 %v3256_v16  ;;  %2109 = vmatprep.subr.bf16.mxu0 %v3261_v17  ;;  %v3346_v16 = vld [vmem:[%s3860_s14 + $0x580] ss:$8 sps:$4 sm:$0xff]   ;;  %v3355_v17 = vld [vmem:[%s3860_s14 + $0x674] ss:$8 sps:$4 sm:$0xff]  }
  0xf0   : > { %2150 = vmatprep.subr.bf16.mxu1 %v3264_v18  ;;  %2139 = vmatprep.mubr.bf16.mxu0 %v2635_v21  ;;  %v3358_v18 = vld [vmem:[%s3860_s14 + $0x774] ss:$8 sps:$4 sm:$0xff]   ;;  %v2634_v21 = vcombine.low %v4043_v19, %v4043_v19 }
  0xf1   : > { %2180 = vmatprep.mubr.bf16.mxu1 %v2637_v22  ;;  %v2636_v22 = vcombine.low %v4046_v20, %v4046_v20 }
  0xf2   : > { %2110 = vmatpush1.bf16.msra.mxu0 %v3259_v23  ;;  %v4117_v23 = vld [vmem:[%s3882_s4 + $0x30] sm:$0xff] }
  0xf3   : > { %2151 = vmatpush1.bf16.msra.mxu1 %v3262_v24  ;;  %2111 = vmatprep.subr.bf16.mxu0 %v3267_v25  ;;  %v4120_v24 = vld [vmem:[%s3882_s4 + $0x38] sm:$0xff]  ;;  %v3353_v25 = vld [vmem:[%s3860_s14 + $0x670] ss:$8 sps:$4 sm:$0xff]   ;;  %v2639_v19 = vcombine.high %v4117_v23, %v4117_v23 }
  0xf4   : > { %2152 = vmatprep.subr.bf16.mxu1 %v3270_v26  ;;  %v3356_v26 = vld [vmem:[%s3860_s14 + $0x770] ss:$8 sps:$4 sm:$0xff]   ;;  %v2641_v20 = vcombine.high %v4120_v24, %v4120_v24 }
  0xf6   : > { %2112 = vmatpush1.bf16.msra.mxu0 %v3265_v27  ;;  %v3361_v27 = vld [vmem:[%s3860_s14 + $0x664] ss:$8 sps:$4 sm:$0xff]  }
  0xf7   : > { %2153 = vmatpush1.bf16.msra.mxu1 %v3268_v28  ;;  %2113 = vmatprep.subr.bf16.mxu0 %v3273_v29  ;;  %v3364_v28 = vld [vmem:[%s3860_s14 + $0x764] ss:$8 sps:$4 sm:$0xff]   ;;  %v3359_v29 = vld [vmem:[%s3860_s14 + $0x660] ss:$8 sps:$4 sm:$0xff]  }
  0xf8   : > { %2154 = vmatprep.subr.bf16.mxu1 %v3276_v30  ;;  %v3362_v30 = vld [vmem:[%s3860_s14 + $0x760] ss:$8 sps:$4 sm:$0xff]  }
  0xfa   : > { %2114 = vmatpush1.bf16.msra.mxu0 %v3271_v31  ;;  %v3367_v31 = vld [vmem:[%s3860_s14 + $0x654] ss:$8 sps:$4 sm:$0xff]  }
  0xfb   : > { %2155 = vmatpush1.bf16.msra.mxu1 %v3274_v32  ;;  %2115 = vmatprep.subr.bf16.mxu0 %v3279_v33  ;;  %v3370_v32 = vld [vmem:[%s3860_s14 + $0x754] ss:$8 sps:$4 sm:$0xff]   ;;  %v3365_v33 = vld [vmem:[%s3860_s14 + $0x650] ss:$8 sps:$4 sm:$0xff]  }
  0xfc   : > { %2156 = vmatprep.subr.bf16.mxu1 %v3282_v34  ;;  %v3368_v34 = vld [vmem:[%s3860_s14 + $0x750] ss:$8 sps:$4 sm:$0xff]  }
  0xfe   : > { %2116 = vmatpush1.bf16.msra.mxu0 %v3277_v35  ;;  %v3373_v35 = vld [vmem:[%s3860_s14 + $0x644] ss:$8 sps:$4 sm:$0xff]  }
  0xff   : > { %2157 = vmatpush1.bf16.msra.mxu1 %v3280_v36  ;;  %2117 = vmatprep.subr.bf16.mxu0 %v3285_v37  ;;  %v3376_v36 = vld [vmem:[%s3860_s14 + $0x744] ss:$8 sps:$4 sm:$0xff]   ;;  %v3371_v37 = vld [vmem:[%s3860_s14 + $0x640] ss:$8 sps:$4 sm:$0xff]  }
 0x100   : > { %2158 = vmatprep.subr.bf16.mxu1 %v3288_v38  ;;  %v3374_v38 = vld [vmem:[%s3860_s14 + $0x740] ss:$8 sps:$4 sm:$0xff]  }
 0x102   : > { %2118 = vmatpush1.bf16.msra.mxu0 %v3283_v39  ;;  %v3379_v39 = vld [vmem:[%s3860_s14 + $0x634] ss:$8 sps:$4 sm:$0xff]  }
 0x103   : > { %2159 = vmatpush1.bf16.msra.mxu1 %v3286_v40  ;;  %2119 = vmatprep.subr.bf16.mxu0 %v3291_v41  ;;  %v3382_v40 = vld [vmem:[%s3860_s14 + $0x734] ss:$8 sps:$4 sm:$0xff]   ;;  %v3377_v41 = vld [vmem:[%s3860_s14 + $0x630] ss:$8 sps:$4 sm:$0xff]  }
 0x104   : > { %2160 = vmatprep.subr.bf16.mxu1 %v3294_v42  ;;  %v3380_v42 = vld [vmem:[%s3860_s14 + $0x730] ss:$8 sps:$4 sm:$0xff]  }
 0x106   : > { %2120 = vmatpush1.bf16.msra.mxu0 %v3289_v43  ;;  %v3385_v43 = vld [vmem:[%s3860_s14 + $0x624] ss:$8 sps:$4 sm:$0xff]  }
 0x107   : > { %2161 = vmatpush1.bf16.msra.mxu1 %v3292_v44  ;;  %2121 = vmatprep.subr.bf16.mxu0 %v3297_v45  ;;  %v3388_v44 = vld [vmem:[%s3860_s14 + $0x724] ss:$8 sps:$4 sm:$0xff]   ;;  %v3383_v45 = vld [vmem:[%s3860_s14 + $0x620] ss:$8 sps:$4 sm:$0xff]  }
 0x108   : > { %2162 = vmatprep.subr.bf16.mxu1 %v3300_v46  ;;  %v3386_v46 = vld [vmem:[%s3860_s14 + $0x720] ss:$8 sps:$4 sm:$0xff]  }
 0x10a   : > { %2122 = vmatpush1.bf16.msra.mxu0 %v3295_v47  ;;  %v3391_v47 = vld [vmem:[%s3860_s14 + $0x614] ss:$8 sps:$4 sm:$0xff]  }
 0x10b   : > { %2163 = vmatpush1.bf16.msra.mxu1 %v3298_v48  ;;  %2123 = vmatprep.subr.bf16.mxu0 %v3303_v49  ;;  %v3394_v48 = vld [vmem:[%s3860_s14 + $0x714] ss:$8 sps:$4 sm:$0xff]   ;;  %v3389_v49 = vld [vmem:[%s3860_s14 + $0x610] ss:$8 sps:$4 sm:$0xff]  }
 0x10c   : > { %2164 = vmatprep.subr.bf16.mxu1 %v3306_v50  ;;  %v3392_v50 = vld [vmem:[%s3860_s14 + $0x710] ss:$8 sps:$4 sm:$0xff]  }
 0x10e   : > { %2124 = vmatpush2.bf16.msra.mxu0 %v3301_v51  ;;  %v3397_v51 = vld [vmem:[%s3860_s14 + $0x604] ss:$8 sps:$4 sm:$0xff]  }
 0x10f   : > { %2165 = vmatpush2.bf16.msra.mxu1 %v3304_v52  ;;  %2125 = vmatprep.subr.bf16.mxu0 %v3309_v53  ;;  %v3400_v52 = vld [vmem:[%s3860_s14 + $0x704] ss:$8 sps:$4 sm:$0xff]   ;;  %v3395_v53 = vld [vmem:[%s3860_s14 + $0x600] ss:$8 sps:$4 sm:$0xff]  }
 0x110   : > { %2166 = vmatprep.subr.bf16.mxu1 %v3312_v54  ;;  %v3398_v54 = vld [vmem:[%s3860_s14 + $0x700] ss:$8 sps:$4 sm:$0xff]  }
 0x112   : > { %2126 = vmatpush2.bf16.msra.mxu0 %v3307_v55  ;;  %v3403_v55 = vld [vmem:[%s3860_s14 + $0x6f4] ss:$8 sps:$4 sm:$0xff]  }
 0x113   : > { %2167 = vmatpush2.bf16.msra.mxu1 %v3310_v56  ;;  %2127 = vmatprep.subr.bf16.mxu0 %v3315_v57  ;;  %v3406_v56 = vld [vmem:[%s3860_s14 + $0x7f4] ss:$8 sps:$4 sm:$0xff]   ;;  %v3401_v57 = vld [vmem:[%s3860_s14 + $0x6f0] ss:$8 sps:$4 sm:$0xff]  }
 0x114   : > { %2168 = vmatprep.subr.bf16.mxu1 %v3318_v58  ;;  %v3404_v58 = vld [vmem:[%s3860_s14 + $0x7f0] ss:$8 sps:$4 sm:$0xff]  }
 0x116   : > { %2128 = vmatpush2.bf16.msra.mxu0 %v3313_v59  ;;  %v3409_v59 = vld [vmem:[%s3860_s14 + $0x6e4] ss:$8 sps:$4 sm:$0xff]  }
 0x117   : > { %2169 = vmatpush2.bf16.msra.mxu1 %v3316_v60  ;;  %2129 = vmatprep.subr.bf16.mxu0 %v3321_v61  ;;  %v3412_v60 = vld [vmem:[%s3860_s14 + $0x7e4] ss:$8 sps:$4 sm:$0xff]   ;;  %v3407_v61 = vld [vmem:[%s3860_s14 + $0x6e0] ss:$8 sps:$4 sm:$0xff]  }
 0x118   : > { %2170 = vmatprep.subr.bf16.mxu1 %v3324_v62  ;;  %v3410_v62 = vld [vmem:[%s3860_s14 + $0x7e0] ss:$8 sps:$4 sm:$0xff]  }
 0x11a   : > { %2130 = vmatpush2.bf16.msra.mxu0 %v3319_v63  ;;  %v3415_v63 = vld [vmem:[%s3860_s14 + $0x6d4] ss:$8 sps:$4 sm:$0xff]  }
 0x11b   : > { %2171 = vmatpush2.bf16.msra.mxu1 %v3322_v0  ;;  %2131 = vmatprep.subr.bf16.mxu0 %v3327_v1  ;;  %v3418_v0 = vld [vmem:[%s3860_s14 + $0x7d4] ss:$8 sps:$4 sm:$0xff]   ;;  %v3413_v1 = vld [vmem:[%s3860_s14 + $0x6d0] ss:$8 sps:$4 sm:$0xff]  }
 0x11c   : > { %2172 = vmatprep.subr.bf16.mxu1 %v3330_v2  ;;  %v3416_v2 = vld [vmem:[%s3860_s14 + $0x7d0] ss:$8 sps:$4 sm:$0xff]  }
 0x11e   : > { %2132 = vmatpush2.bf16.msra.mxu0 %v3325_v3  ;;  %v3421_v3 = vld [vmem:[%s3860_s14 + $0x6c4] ss:$8 sps:$4 sm:$0xff]  }
 0x11f   : > { %2173 = vmatpush2.bf16.msra.mxu1 %v3328_v4  ;;  %2133 = vmatprep.subr.bf16.mxu0 %v3333_v5  ;;  %v3424_v4 = vld [vmem:[%s3860_s14 + $0x7c4] ss:$8 sps:$4 sm:$0xff]   ;;  %v3419_v5 = vld [vmem:[%s3860_s14 + $0x6c0] ss:$8 sps:$4 sm:$0xff]  }
 0x120   : > { %2174 = vmatprep.subr.bf16.mxu1 %v3336_v6  ;;  %v3422_v6 = vld [vmem:[%s3860_s14 + $0x7c0] ss:$8 sps:$4 sm:$0xff]  }
 0x122   : > { %2134 = vmatpush2.bf16.msra.mxu0 %v3331_v7  ;;  %v3427_v7 = vld [vmem:[%s3860_s14 + $0x6b4] ss:$8 sps:$4 sm:$0xff]  }
 0x123   : > { %2175 = vmatpush2.bf16.msra.mxu1 %v3334_v8  ;;  %2135 = vmatprep.subr.bf16.mxu0 %v3339_v9  ;;  %v3430_v8 = vld [vmem:[%s3860_s14 + $0x7b4] ss:$8 sps:$4 sm:$0xff]   ;;  %v3425_v9 = vld [vmem:[%s3860_s14 + $0x6b0] ss:$8 sps:$4 sm:$0xff]  }
 0x124   : > { %2176 = vmatprep.subr.bf16.mxu1 %v3342_v10  ;;  %v3428_v10 = vld [vmem:[%s3860_s14 + $0x7b0] ss:$8 sps:$4 sm:$0xff]  }
 0x126   : > { %2136 = vmatpush2.bf16.msra.mxu0 %v3337_v11  ;;  %v3433_v11 = vld [vmem:[%s3860_s14 + $0x6a4] ss:$8 sps:$4 sm:$0xff]  }
 0x127   : > { %2177 = vmatpush2.bf16.msra.mxu1 %v3340_v12  ;;  %2137 = vmatprep.subr.bf16.mxu0 %v3345_v13  ;;  %v3436_v12 = vld [vmem:[%s3860_s14 + $0x7a4] ss:$8 sps:$4 sm:$0xff]   ;;  %v3431_v13 = vld [vmem:[%s3860_s14 + $0x6a0] ss:$8 sps:$4 sm:$0xff]  }
 0x128   : > { %2178 = vmatprep.subr.bf16.mxu1 %v3348_v14  ;;  %v3434_v14 = vld [vmem:[%s3860_s14 + $0x7a0] ss:$8 sps:$4 sm:$0xff]  }
 0x12a   : > { %2138 = vmatpush2.bf16.msra.mxu0 %v3343_v15  ;;  %v3439_v15 = vld [vmem:[%s3860_s14 + $0x694] ss:$8 sps:$4 sm:$0xff]  }
 0x12b   : > { %2179 = vmatpush2.bf16.msra.mxu1 %v3346_v16  ;;  %2189 = vmatprep.subr.bf16.mxu0 %v3355_v17  ;;  %v3442_v16 = vld [vmem:[%s3860_s14 + $0x794] ss:$8 sps:$4 sm:$0xff]   ;;  %v3437_v17 = vld [vmem:[%s3860_s14 + $0x690] ss:$8 sps:$4 sm:$0xff]  }
 0x12c   : > { %2230 = vmatprep.subr.bf16.mxu1 %v3358_v18  ;;  %v3440_v18 = vld [vmem:[%s3860_s14 + $0x790] ss:$8 sps:$4 sm:$0xff]  }
 0x12d   : > { %2140 = vmatmul.mubr.bf16.vlgmr.msra.gmra.mxu0 %v2634_v21  ;;  %v3445_v21 = vld [vmem:[%s3860_s14 + $0x684] ss:$8 sps:$4 sm:$0xff]  }
 0x12e   : > { %2181 = vmatmul.mubr.bf16.vlgmr.msra.gmra.mxu1 %v2636_v22  ;;  %2190 = vmatpush1.bf16.msra.mxu0 %v3353_v25  ;;  %v3448_v22 = vld [vmem:[%s3860_s14 + $0x784] ss:$8 sps:$4 sm:$0xff]   ;;  %v3443_v25 = vld [vmem:[%s3860_s14 + $0x680] ss:$8 sps:$4 sm:$0xff]  }
 0x12f   : > { %2231 = vmatpush1.bf16.msra.mxu1 %v3356_v26  ;;  %2191 = vmatprep.subr.bf16.mxu0 %v3361_v27  ;;  %v3446_v26 = vld [vmem:[%s3860_s14 + $0x780] ss:$8 sps:$4 sm:$0xff]   ;;  %v2638_v27 = vcombine.low %v4117_v23, %v4117_v23 }
 0x130   : > { %2232 = vmatprep.subr.bf16.mxu1 %v3364_v28  ;;  %2221 = vmatprep.mubr.bf16.mxu0 %v2639_v19  ;;  %v2640_v28 = vcombine.low %v4120_v24, %v4120_v24 }
 0x131   : > { %2262 = vmatprep.mubr.bf16.mxu1 %v2641_v20 }
 0x132   : > { %2192 = vmatpush1.bf16.msra.mxu0 %v3359_v29 }
 0x133   : > { %2233 = vmatpush1.bf16.msra.mxu1 %v3362_v30  ;;  %2193 = vmatprep.subr.bf16.mxu0 %v3367_v31 }
 0x134   : > { %2234 = vmatprep.subr.bf16.mxu1 %v3370_v32 }
 0x136   : > { %2194 = vmatpush1.bf16.msra.mxu0 %v3365_v33 }
 0x137   : > { %2235 = vmatpush1.bf16.msra.mxu1 %v3368_v34  ;;  %2195 = vmatprep.subr.bf16.mxu0 %v3373_v35 }
 0x138   : > { %2236 = vmatprep.subr.bf16.mxu1 %v3376_v36 }
 0x13a   : > { %2196 = vmatpush1.bf16.msra.mxu0 %v3371_v37 }
 0x13b   : > { %2237 = vmatpush1.bf16.msra.mxu1 %v3374_v38  ;;  %2197 = vmatprep.subr.bf16.mxu0 %v3379_v39 }
 0x13c   : > { %2238 = vmatprep.subr.bf16.mxu1 %v3382_v40 }
 0x13e   : > { %2198 = vmatpush1.bf16.msra.mxu0 %v3377_v41 }
 0x13f   : > { %2239 = vmatpush1.bf16.msra.mxu1 %v3380_v42  ;;  %2199 = vmatprep.subr.bf16.mxu0 %v3385_v43 }
 0x140   : > { %2240 = vmatprep.subr.bf16.mxu1 %v3388_v44 }
 0x142   : > { %2200 = vmatpush1.bf16.msra.mxu0 %v3383_v45 }
 0x143   : > { %2241 = vmatpush1.bf16.msra.mxu1 %v3386_v46  ;;  %2201 = vmatprep.subr.bf16.mxu0 %v3391_v47 }
 0x144   : > { %2242 = vmatprep.subr.bf16.mxu1 %v3394_v48 }
 0x146   : > { %2202 = vmatpush1.bf16.msra.mxu0 %v3389_v49 }
 0x147   : > { %2243 = vmatpush1.bf16.msra.mxu1 %v3392_v50  ;;  %2203 = vmatprep.subr.bf16.mxu0 %v3397_v51 }
 0x148   : > { %2244 = vmatprep.subr.bf16.mxu1 %v3400_v52 }
 0x14a   : > { %2204 = vmatpush1.bf16.msra.mxu0 %v3395_v53 }
 0x14b   : > { %2245 = vmatpush1.bf16.msra.mxu1 %v3398_v54  ;;  %2205 = vmatprep.subr.bf16.mxu0 %v3403_v55 }
 0x14c   : > { %2246 = vmatprep.subr.bf16.mxu1 %v3406_v56 }
 0x14e   : > { %2206 = vmatpush2.bf16.msra.mxu0 %v3401_v57 }
 0x14f   : > { %2247 = vmatpush2.bf16.msra.mxu1 %v3404_v58  ;;  %2207 = vmatprep.subr.bf16.mxu0 %v3409_v59 }
 0x150   : > { %2248 = vmatprep.subr.bf16.mxu1 %v3412_v60 }
 0x152   : > { %2208 = vmatpush2.bf16.msra.mxu0 %v3407_v61 }
 0x153   : > { %2249 = vmatpush2.bf16.msra.mxu1 %v3410_v62  ;;  %2209 = vmatprep.subr.bf16.mxu0 %v3415_v63  ;;  %v341_v62 = vld [vmem:[#allocation2] sm:$0xff] }
 0x154   : > { %2250 = vmatprep.subr.bf16.mxu1 %v3418_v0 }
 0x156   : > { %2210 = vmatpush2.bf16.msra.mxu0 %v3413_v1 }
 0x157   : > { %2251 = vmatpush2.bf16.msra.mxu1 %v3416_v2  ;;  %2211 = vmatprep.subr.bf16.mxu0 %v3421_v3  ;;  %v342_v3 = vld [vmem:[#allocation2 + $0x8] sm:$0xff] }
 0x158   : > { %2252 = vmatprep.subr.bf16.mxu1 %v3424_v4 }
 0x15a   : > { %2212 = vmatpush2.bf16.msra.mxu0 %v3419_v5 }
 0x15b   : > { %2253 = vmatpush2.bf16.msra.mxu1 %v3422_v6  ;;  %2213 = vmatprep.subr.bf16.mxu0 %v3427_v7 }
 0x15c   : > { %2254 = vmatprep.subr.bf16.mxu1 %v3430_v8 }
 0x15e   : > { %2214 = vmatpush2.bf16.msra.mxu0 %v3425_v9 }
 0x15f   : > { %2255 = vmatpush2.bf16.msra.mxu1 %v3428_v10  ;;  %2215 = vmatprep.subr.bf16.mxu0 %v3433_v11 }
 0x160   : > { %2256 = vmatprep.subr.bf16.mxu1 %v3436_v12 }
 0x162   : > { %2216 = vmatpush2.bf16.msra.mxu0 %v3431_v13 }
 0x163   : > { %2257 = vmatpush2.bf16.msra.mxu1 %v3434_v14  ;;  %2217 = vmatprep.subr.bf16.mxu0 %v3439_v15 }
 0x164   : > { %2258 = vmatprep.subr.bf16.mxu1 %v3442_v16 }
 0x166   : > { %2218 = vmatpush2.bf16.msra.mxu0 %v3437_v17 }
 0x167   : > { %2259 = vmatpush2.bf16.msra.mxu1 %v3440_v18  ;;  %2219 = vmatprep.subr.bf16.mxu0 %v3445_v21 }
 0x168   : > { %2260 = vmatprep.subr.bf16.mxu1 %v3448_v22 }
 0x16a   : > { %2220 = vmatpush2.bf16.msra.mxu0 %v3443_v25 }
 0x16b   : > { %2261 = vmatpush2.bf16.msra.mxu1 %v3446_v26 }
 0x16d   : > { %v1977_v19 = vpop.f32.mrf.mxu0  ;;  %2222 = vmatmul.mubr.bf16.vlgmr.msra.gmra.mxu0 %v2638_v27 }
 0x16e   : > { %v2018_v20 = vpop.f32.mrf.mxu1  ;;  %2263 = vmatmul.mubr.bf16.vlgmr.msra.gmra.mxu1 %v2640_v28 }
 0x16f   : > { %v2019_v29 = vadd.f32 %v2018_v20, %v1977_v19  ;;  %v1979_v30 = vpop.f32.mrf.mxu0 }
 0x170   : > { %v2020_v31 = vpop.f32.mrf.mxu1 }
 0x171   : > { %v2021_v32 = vadd.f32 %v2020_v31, %v1979_v30  ;;  %v1981_v33 = vpop.f32.mrf.mxu0 }
 0x172   : > { %v2022_v34 = vpop.f32.mrf.mxu1 }
 0x173   : > { %v1982_v35 = vpop.f32.mrf.mxu0 }
 0x174   : > { %v2023_v36 = vpop.f32.mrf.mxu1 }
 0x1ad   : > { %v2059_v37 = vpop.f32.mrf.mxu0 }
 0x1ae   : > { %v2100_v38 = vpop.f32.mrf.mxu1  ;;  %v2060_v23 = vadd.f32 %v2059_v37, %v2019_v29 }
 0x1af   : > { %v2061_v39 = vpop.f32.mrf.mxu0 }
 0x1b0   : > { %v2102_v40 = vpop.f32.mrf.mxu1  ;;  %v2101_v24 = vadd.f32 %v2100_v38, %v2060_v23  ;;  %v2062_v41 = vadd.f32 %v2061_v39, %v2021_v32 }
 0x1b1   : > { %v2063_v42 = vpop.f32.mrf.mxu0 }
 0x1b2   : > { %v2104_v43 = vpop.f32.mrf.mxu1  ;;  %v2103_v44 = vadd.f32 %v2102_v40, %v2062_v41 }
 0x1b3   : > { %v2064_v45 = vpop.f32.mrf.mxu0 }
 0x1b4   : > { %v2105_v46 = vpop.f32.mrf.mxu1 }
 0x1ed   : > { %v2141_v47 = vpop.f32.mrf.mxu0 }
 0x1ee   : > { %v2182_v48 = vpop.f32.mrf.mxu1  ;;  %v2142_v55 = vadd.f32 %v2141_v47, %v2101_v24 }
 0x1ef   : > { %v2143_v49 = vpop.f32.mrf.mxu0 }
 0x1f0   : > { %v2184_v50 = vpop.f32.mrf.mxu1  ;;  %v2144_v56 = vadd.f32 %v2143_v49, %v2103_v44  ;;  %v2183_v57 = vadd.f32 %v2182_v48, %v2142_v55 }
 0x1f1   : > { %v2145_v51 = vpop.f32.mrf.mxu0 }
 0x1f2   : > { %v2186_v52 = vpop.f32.mrf.mxu1  ;;  %v2185_v60 = vadd.f32 %v2184_v50, %v2144_v56 }
 0x1f3   : > { %v2146_v53 = vpop.f32.mrf.mxu0 }
 0x1f4   : > { %v2187_v54 = vpop.f32.mrf.mxu1 }
 0x22d   : > { %v2223_v58 = vpop.f32.mrf.mxu0 }
 0x22e   : > { %v2264_v59 = vpop.f32.mrf.mxu1  ;;  %v2224_v61 = vadd.f32 %v2223_v58, %v2183_v57 }
 0x22f   : > { %v2225_v63 = vpop.f32.mrf.mxu0 }
 0x230   : > { %v2266_v0 = vpop.f32.mrf.mxu1  ;;  %v2265_v1 = vadd.f32 %v2264_v59, %v2224_v61  ;;  %v2226_v2 = vadd.f32 %v2225_v63, %v2185_v60 }
 0x231   : > { %v2227_v4 = vpop.f32.mrf.mxu0 }
 0x232   : > { %v2268_v5 = vpop.f32.mrf.mxu1  ;;  %v2271_v6 = vadd.f32 %v2265_v1, %v341_v62  ;;  %v2267_v7 = vadd.f32 %v2266_v0, %v2226_v2  ;;  %2278 = sbr.rel (%p2898_p2) target bundleno = 799 (0x31f), region = 56 }
 0x233   : > { %v2228_v8 = vpop.f32.mrf.mxu0 }
 0x234   : > { %v2269_v9 = vpop.f32.mrf.mxu1  ;;  %2273 = vst [vmem:[#allocation2] sm:$0xff] %v2271_v6  ;;  %v2272_v10 = vadd.f32 %v2267_v7, %v342_v3 }
 0x236   : > { %2274 = vst [vmem:[#allocation2 + $0x8] sm:$0xff] %v2272_v10 }
 0x237   : > { %v3453_v11 = vld [vmem:[%s3889_s30 + $0x78] sm:$0xff]   ;;  %v3455_v13 = vld [vmem:[%s3889_s30 + $0x70] sm:$0xff]   ;;  %v3457_v15 = vld [vmem:[%s3889_s30 + $0x68] sm:$0xff]   ;;  %v2283_v16 = vlaneseq  ;;  %vm2467_vm0 = vcmask 15360  }
 0x238   : > { %v3454_v12 = vld [vmem:[%s3889_s30 + $0x38] sm:$0xff]   ;;  %2920 = vmatprep.subr.bf16.mxu0 %v3453_v11  ;;  %v3456_v14 = vld [vmem:[%s3889_s30 + $0x30] sm:$0xff]   ;;  %v3458_v17 = vld [vmem:[%s3889_s30 + $0x28] sm:$0xff]  }
 0x239   : > { %2921 = vmatpush3.bf16.msra.mxu0 %v3454_v12  ;;  %v3459_v18 = vld [vmem:[%s3889_s30 + $0x60] sm:$0xff]   ;;  %v2284_v21 = vshrl.u32 %v2283_v16, 7  ;;  %v3461_v25 = vld [vmem:[%s3889_s30 + $0x58] sm:$0xff]   ;;  %v3463_v19 = vld [vmem:[%s3889_s30 + $0x50] sm:$0xff]  }
 0x23a   : > { %2922 = vmatprep.subr.bf16.mxu0 %v3455_v13  ;;  %v3460_v22 = vld [vmem:[%s3889_s30 + $0x20] sm:$0xff]   ;;  %v3462_v28 = vld [vmem:[%s3889_s30 + $0x18] sm:$0xff]   ;;  %v3464_v32 = vld [vmem:[%s3889_s30 + $0x10] sm:$0xff]  }
 0x23b   : > { %v2289_v26 = vsub.s32 1, %v2284_v21  ;;  %v2285_v27 = vsub.s32 0, %v2284_v21  ;;  %v2281_v29 = vld [vmem:[%s272_s17] sm:$0x3]  ;;  %v2279_v34 = vld [vmem:[#allocation2] sm:$0xff]  ;;  %v3467_v39 = vld [vmem:[%s3889_s30 + $0x40] sm:$0xff]  }
 0x23c   : > { %v3465_v35 = vld [vmem:[%s3889_s30 + $0x48] sm:$0xff]   ;;  %v3468_v24 = vld [vmem:[%s3889_s30] sm:$0xff]  }
 0x23d   : > { %2923 = vmatpush3.bf16.msra.mxu0 %v3456_v14  ;;  %v2280_v20 = vld [vmem:[#allocation2 + $0x8] sm:$0xff]  ;;  %v2290_v30 = vrot.slane %v2281_v29, %v2289_v26  ;;  %v2286_v31 = vrot.slane %v2281_v29, %v2285_v27  ;;  %v3466_v38 = vld [vmem:[%s3889_s30 + $0x8] sm:$0xff]  }
 0x23e   : > { %2924 = vmatprep.subr.bf16.mxu0 %v3457_v15 }
 0x23f   : > { %v2294_v33 = vadd.f32 %v2290_v30, %v2280_v20  ;;  %v2293_v37 = vadd.f32 %v2286_v31, %v2279_v34 }
 0x241   : > { %2925 = vmatpush3.bf16.msra.mxu0 %v3458_v17  ;;  %v2296_v36 = vmax.f32 %v2294_v33, 0.0  ;;  %v2295_v40 = vmax.f32 %v2293_v37, 0.0 }
 0x242   : > { %2926 = vmatprep.subr.bf16.mxu0 %v3459_v18 }
 0x243   : > { %v2298_v23 = vpack.c.bf16 %v2296_v36, %v2296_v36  ;;  %v2297_v41 = vpack.c.bf16 %v2295_v40, %v2295_v40 }
 0x245   : > { %2927 = vmatpush3.bf16.msra.mxu0 %v3460_v22  ;;  %2459 = vmatprep.mubr.bf16.mxu0 %v2298_v23 }
 0x246   : > { %2928 = vmatprep.subr.bf16.mxu0 %v3461_v25 }
 0x249   : > { %2929 = vmatpush3.bf16.msra.mxu0 %v3462_v28 }
 0x24a   : > { %2930 = vmatprep.subr.bf16.mxu0 %v3463_v19 }
 0x24d   : > { %2931 = vmatpush3.bf16.msra.mxu0 %v3464_v32 }
 0x24e   : > { %2932 = vmatprep.subr.bf16.mxu0 %v3465_v35 }
 0x251   : > { %2933 = vmatpush3.bf16.msra.mxu0 %v3466_v38 }
 0x252   : > { %2934 = vmatprep.subr.bf16.mxu0 %v3467_v39 }
 0x255   : > { %2935 = vmatpush3.bf16.msra.mxu0 %v3468_v24 }
 0x258   : > { %2460 = vmatmul.mubr.bf16.vlgmr.msra.gmra.mxu0 %v2297_v41 }
 0x318   : > { %v2936_v42 = vpop.f32.mrf.mxu0 }
 0x31a   : > { %v2937_v43 = vpop.f32.mrf.mxu0 }
 0x31b   : > { %v2938_v44 = vadd.f32 %v2937_v43, %v2936_v42 }
 0x31c   : > { %v2939_v45 = vpop.f32.mrf.mxu0 }
 0x31d   : > { %2468 = vst.msk [vmem:[%s3887_s2] sm:$0xff] %vm2467_vm0, %v2938_v44 }
 0x31e   : > { %v2940_v46 = vpop.f32.mrf.mxu0 }
 0x31f PF: > { %s20_s25 = sadd.s32 1, %s3647_s25   ;;  %s4278_s21 = sld [smem:[#allocation10_spill]] }
 0x320   : > { %p17_p4 = scmp.ge.s32.totalorder %s20_s25, 20   ;;  %s4279_s17 = sld [smem:[#allocation15_spill]] }
 0x321   : > { %s4280_s22 = sld [smem:[#allocation11_spill]]  ;;  %s4285_s15 = smov %s3611_s16 }
 0x322   : > { %s4281_s20 = sld [smem:[#allocation16_spill]]  ;;  %s4287_s18 = smov %s3623_s19 }
 0x323   : > { %s4282_s27 = sld [smem:[#allocation12_spill]] }
 0x324   : > { %s4283_s23 = sld [smem:[#allocation13_spill]] }
 0x325   : > { %s4284_s29 = sld [smem:[#allocation14_spill]]  ;;  %s4286_s16 = smov %s4278_s21 }
 0x327   : > { %s4288_s19 = smov %s4280_s22  ;;  %s4290_s22 = smov %s3643_s24 }
 0x328   :  { %19 = sbr.rel (!%p17_p4) target bundleno = 13 (0xd), region = 111 }
 0x329   : > { %s4289_s21 = smov %s4282_s27 }
 0x32b   : > { %s4291_s24 = smov %s4284_s29 }
 0x32d   :  { %2488 = vsyncpa [#allocation4], 1 }
 0x32e   :  { %2490 = vsyncpa [#allocation4 + $0x1], 1 }
 0x32f   :  { %2491 = vsyncpa [#allocation6], 1 }
 0x330   :  { %2493 = vsyncpa [#allocation6 + $0x1], 1 }

// kernel: fcn_cnsn_forward.7
= control target key start
LH: loop header
LB: loop body
LE: loop exit
PB: predicated region body
PF: predicated region fallthrough
CT: control target
= control target key end

     0   :  { %s2203_s15 = smov 0   ;;  %s2205_s16 = smov 0   ;;  %s2659_s0 = inlined_call_operand.vmem [shape: bf16[8,9216], index: 0, kind: input, shape index: {}]   ;;  %s2660_s1 = inlined_call_operand.vmem [shape: bf16[9216,256], index: 1, kind: input, shape index: {}]   ;;  %s2661_s2 = inlined_call_operand.vmem [shape: f32[1,256], index: 2, kind: input, shape index: {}]   ;;  %s2662_s3 = inlined_call_operand.vmem [shape: bf16[256,2], index: 3, kind: input, shape index: {}]   ;;  %s2663_s4 = inlined_call_operand.vmem [shape: f32[2,8,2], index: 4, kind: output, shape index: {}]  }
   0x1   :  { %s2207_s17 = smov 0   ;;  %s2209_s18 = smov 0  }
   0x2   :  { %s2211_s19 = smov 0   ;;  %s2213_s20 = smov 0  }
   0x3   :  { %s2215_s21 = smov 0  }
   0x4 LB: > { %s23_s22 = sadd.s32 1, %s2165_s19  ;;  %s26_s23 = sadd.s32 1, %s2169_s20  ;;  %s2173_s21 = sphi %s2215_s21, %s14_s21   ;;  %s2169_s20 = sphi %s2213_s20, %s2669_s20   ;;  %s2165_s19 = sphi %s2211_s19, %s2668_s19   ;;  %s2161_s18 = sphi %s2209_s18, %s2667_s18   ;;  %s2157_s17 = sphi %s2207_s17, %s2666_s17   ;;  %s2153_s16 = sphi %s2205_s16, %s2665_s16   ;;  %s2149_s15 = sphi %s2203_s15, %s2664_s15  }
   0x5   : > { %p24_p0 = scmp.ge.s32.totalorder %s23_s22, 9  ;;  %p68_p1 = scmp.ne.s32.totalorder %s2153_s16, %s2149_s15 }
   0x6   : > { %p69_p2 = scmp.eq.s32.totalorder %s2173_s21, 0  ;;  %s61_s27 = sadd.s32 1, %s2153_s16 }
   0x7   : > { %s2671_s22 = smov (%p24_p0, %s23_s22), 0  ;;  %s2673_s23 = smov (!%p24_p0, %s26_s23), %s2169_s20 }
   0x8   : > { %p70_p3 = por %p69_p2, %p68_p1  ;;  %p28_p4 = scmp.ge.s32.totalorder %s2673_s23, 2 }
   0x9   : > { %s56_s24 = ssub.s32 %s2165_s19, %s2671_s22  ;;  %p1765_p6 = scmp.ge.s32.totalorder %s2173_s21, 18 }
   0xa   : > { %s2675_s23 = smov (%p28_p4, %s2673_s23), 0 }
   0xb   : > { %s57_s25 = ssub.s32 %s2169_s20, %s2675_s23  ;;  %172 = sbr.rel (%p1765_p6) target bundleno = 107 (0x6b), region = 16 }
   0xc   : > { %s58_s26 = sor.u32 %s57_s25, %s56_s24 }
   0xd   : > { %p59_p5 = scmp.eq.s32.totalorder %s58_s26, 0 }
   0xf   : > { %s2254_s28 = scalar_select %p59_p5, %s2153_s16, %s61_s27  }
  0x10   : > { %184 = sbr.rel (!%p70_p3) target bundleno = 107 (0x6b), region = 24  ;;  %s186_s29 = sand.u32 (%p70_p3), 1, %s2153_s16  }
  0x11   : > { %s1862_s30 = sshll.u32 (%p70_p3), %s2165_s19, 8  ;;  %s1766_s5 = sshll.u32 (%p70_p3), %s186_s29, 9 }
  0x12   : > { %s191_s6 = sadd.s32 (%p70_p3), %s2169_s20, %s1862_s30  ;;  %s2268_s11 = scalar_lea.vmem (%p70_p3), [#allocation3], %s1766_s5 }
  0x13   : > { %s1769_s7 = sshll.u32 (%p70_p3), %s191_s6, 2 }
  0x14   : > { %s2263_s10 = scalar_lea.vmem (%p70_p3), %s2660_s1, %s1769_s7 }
  0x15   : > { %v210_v0 = vld [vmem:[%s2263_s10] sm:$0xf]  ;;  %v212_v1 = vld [vmem:[%s2263_s10 + $0x8] sm:$0xf]  ;;  %v214_v2 = vld [vmem:[%s2263_s10 + $0x10] sm:$0xf] }
  0x16   : > { %211 = vst [vmem:[%s2268_s11] sm:$0xf] %v210_v0  ;;  %213 = vst [vmem:[%s2268_s11 + $0x4] sm:$0xf] %v212_v1  ;;  %v216_v3 = vld [vmem:[%s2263_s10 + $0x18] sm:$0xf] }
  0x17   : > { %215 = vst [vmem:[%s2268_s11 + $0x8] sm:$0xf] %v214_v2  ;;  %v218_v4 = vld [vmem:[%s2263_s10 + $0x20] sm:$0xf]  ;;  %v220_v5 = vld [vmem:[%s2263_s10 + $0x28] sm:$0xf] }
  0x18   : > { %217 = vst [vmem:[%s2268_s11 + $0xc] sm:$0xf] %v216_v3  ;;  %219 = vst [vmem:[%s2268_s11 + $0x10] sm:$0xf] %v218_v4  ;;  %v222_v6 = vld [vmem:[%s2263_s10 + $0x30] sm:$0xf] }
  0x19   : > { %221 = vst [vmem:[%s2268_s11 + $0x14] sm:$0xf] %v220_v5  ;;  %v224_v7 = vld [vmem:[%s2263_s10 + $0x38] sm:$0xf]  ;;  %v226_v8 = vld [vmem:[%s2263_s10 + $0x40] sm:$0xf] }
  0x1a   : > { %223 = vst [vmem:[%s2268_s11 + $0x18] sm:$0xf] %v222_v6  ;;  %225 = vst [vmem:[%s2268_s11 + $0x1c] sm:$0xf] %v224_v7  ;;  %v228_v9 = vld [vmem:[%s2263_s10 + $0x48] sm:$0xf] }
  0x1b   : > { %227 = vst [vmem:[%s2268_s11 + $0x20] sm:$0xf] %v226_v8  ;;  %v230_v10 = vld [vmem:[%s2263_s10 + $0x50] sm:$0xf]  ;;  %v232_v11 = vld [vmem:[%s2263_s10 + $0x58] sm:$0xf] }
  0x1c   : > { %229 = vst [vmem:[%s2268_s11 + $0x24] sm:$0xf] %v228_v9  ;;  %231 = vst [vmem:[%s2268_s11 + $0x28] sm:$0xf] %v230_v10  ;;  %v234_v12 = vld [vmem:[%s2263_s10 + $0x60] sm:$0xf] }
  0x1d   : > { %233 = vst [vmem:[%s2268_s11 + $0x2c] sm:$0xf] %v232_v11  ;;  %v236_v13 = vld [vmem:[%s2263_s10 + $0x68] sm:$0xf]  ;;  %v238_v14 = vld [vmem:[%s2263_s10 + $0x70] sm:$0xf] }
  0x1e   : > { %235 = vst [vmem:[%s2268_s11 + $0x30] sm:$0xf] %v234_v12  ;;  %237 = vst [vmem:[%s2268_s11 + $0x34] sm:$0xf] %v236_v13  ;;  %v240_v15 = vld [vmem:[%s2263_s10 + $0x78] sm:$0xf] }
  0x1f   : > { %239 = vst [vmem:[%s2268_s11 + $0x38] sm:$0xf] %v238_v14  ;;  %v242_v16 = vld [vmem:[%s2263_s10 + $0x80] sm:$0xf]  ;;  %v244_v17 = vld [vmem:[%s2263_s10 + $0x88] sm:$0xf] }
  0x20   : > { %241 = vst [vmem:[%s2268_s11 + $0x3c] sm:$0xf] %v240_v15  ;;  %243 = vst [vmem:[%s2268_s11 + $0x40] sm:$0xf] %v242_v16  ;;  %v246_v18 = vld [vmem:[%s2263_s10 + $0x90] sm:$0xf] }
  0x21   : > { %245 = vst [vmem:[%s2268_s11 + $0x44] sm:$0xf] %v244_v17  ;;  %v248_v19 = vld [vmem:[%s2263_s10 + $0x98] sm:$0xf]  ;;  %v250_v20 = vld [vmem:[%s2263_s10 + $0xa0] sm:$0xf] }
  0x22   : > { %247 = vst [vmem:[%s2268_s11 + $0x48] sm:$0xf] %v246_v18  ;;  %249 = vst [vmem:[%s2268_s11 + $0x4c] sm:$0xf] %v248_v19  ;;  %v252_v21 = vld [vmem:[%s2263_s10 + $0xa8] sm:$0xf] }
  0x23   : > { %251 = vst [vmem:[%s2268_s11 + $0x50] sm:$0xf] %v250_v20  ;;  %v254_v22 = vld [vmem:[%s2263_s10 + $0xb0] sm:$0xf]  ;;  %v256_v23 = vld [vmem:[%s2263_s10 + $0xb8] sm:$0xf] }
  0x24   : > { %253 = vst [vmem:[%s2268_s11 + $0x54] sm:$0xf] %v252_v21  ;;  %255 = vst [vmem:[%s2268_s11 + $0x58] sm:$0xf] %v254_v22  ;;  %v258_v24 = vld [vmem:[%s2263_s10 + $0xc0] sm:$0xf] }
  0x25   : > { %257 = vst [vmem:[%s2268_s11 + $0x5c] sm:$0xf] %v256_v23  ;;  %v260_v25 = vld [vmem:[%s2263_s10 + $0xc8] sm:$0xf]  ;;  %v262_v26 = vld [vmem:[%s2263_s10 + $0xd0] sm:$0xf] }
  0x26   : > { %259 = vst [vmem:[%s2268_s11 + $0x60] sm:$0xf] %v258_v24  ;;  %261 = vst [vmem:[%s2268_s11 + $0x64] sm:$0xf] %v260_v25  ;;  %v264_v27 = vld [vmem:[%s2263_s10 + $0xd8] sm:$0xf] }
  0x27   : > { %263 = vst [vmem:[%s2268_s11 + $0x68] sm:$0xf] %v262_v26  ;;  %v266_v28 = vld [vmem:[%s2263_s10 + $0xe0] sm:$0xf]  ;;  %v268_v29 = vld [vmem:[%s2263_s10 + $0xe8] sm:$0xf] }
  0x28   : > { %265 = vst [vmem:[%s2268_s11 + $0x6c] sm:$0xf] %v264_v27  ;;  %267 = vst [vmem:[%s2268_s11 + $0x70] sm:$0xf] %v266_v28  ;;  %v270_v30 = vld [vmem:[%s2263_s10 + $0xf0] sm:$0xf] }
  0x29   : > { %269 = vst [vmem:[%s2268_s11 + $0x74] sm:$0xf] %v268_v29  ;;  %v272_v31 = vld [vmem:[%s2263_s10 + $0xf8] sm:$0xf]  ;;  %v274_v32 = vld [vmem:[%s2263_s10 + $0x100] sm:$0xf] }
  0x2a   : > { %271 = vst [vmem:[%s2268_s11 + $0x78] sm:$0xf] %v270_v30  ;;  %273 = vst [vmem:[%s2268_s11 + $0x7c] sm:$0xf] %v272_v31  ;;  %v276_v33 = vld [vmem:[%s2263_s10 + $0x108] sm:$0xf] }
  0x2b   : > { %275 = vst [vmem:[%s2268_s11 + $0x80] sm:$0xf] %v274_v32  ;;  %v278_v34 = vld [vmem:[%s2263_s10 + $0x110] sm:$0xf]  ;;  %v280_v35 = vld [vmem:[%s2263_s10 + $0x118] sm:$0xf] }
  0x2c   : > { %277 = vst [vmem:[%s2268_s11 + $0x84] sm:$0xf] %v276_v33  ;;  %279 = vst [vmem:[%s2268_s11 + $0x88] sm:$0xf] %v278_v34  ;;  %v282_v36 = vld [vmem:[%s2263_s10 + $0x120] sm:$0xf] }
  0x2d   : > { %281 = vst [vmem:[%s2268_s11 + $0x8c] sm:$0xf] %v280_v35  ;;  %v284_v37 = vld [vmem:[%s2263_s10 + $0x128] sm:$0xf]  ;;  %v286_v38 = vld [vmem:[%s2263_s10 + $0x130] sm:$0xf] }
  0x2e   : > { %283 = vst [vmem:[%s2268_s11 + $0x90] sm:$0xf] %v282_v36  ;;  %285 = vst [vmem:[%s2268_s11 + $0x94] sm:$0xf] %v284_v37  ;;  %v288_v39 = vld [vmem:[%s2263_s10 + $0x138] sm:$0xf] }
  0x2f   : > { %287 = vst [vmem:[%s2268_s11 + $0x98] sm:$0xf] %v286_v38  ;;  %v290_v40 = vld [vmem:[%s2263_s10 + $0x140] sm:$0xf]  ;;  %v292_v41 = vld [vmem:[%s2263_s10 + $0x148] sm:$0xf] }
  0x30   : > { %289 = vst [vmem:[%s2268_s11 + $0x9c] sm:$0xf] %v288_v39  ;;  %291 = vst [vmem:[%s2268_s11 + $0xa0] sm:$0xf] %v290_v40  ;;  %v294_v42 = vld [vmem:[%s2263_s10 + $0x150] sm:$0xf] }
  0x31   : > { %293 = vst [vmem:[%s2268_s11 + $0xa4] sm:$0xf] %v292_v41  ;;  %v296_v43 = vld [vmem:[%s2263_s10 + $0x158] sm:$0xf]  ;;  %v298_v44 = vld [vmem:[%s2263_s10 + $0x160] sm:$0xf] }
  0x32   : > { %295 = vst [vmem:[%s2268_s11 + $0xa8] sm:$0xf] %v294_v42  ;;  %297 = vst [vmem:[%s2268_s11 + $0xac] sm:$0xf] %v296_v43  ;;  %v300_v45 = vld [vmem:[%s2263_s10 + $0x168] sm:$0xf] }
  0x33   : > { %299 = vst [vmem:[%s2268_s11 + $0xb0] sm:$0xf] %v298_v44  ;;  %v302_v46 = vld [vmem:[%s2263_s10 + $0x170] sm:$0xf]  ;;  %v304_v47 = vld [vmem:[%s2263_s10 + $0x178] sm:$0xf] }
  0x34   : > { %301 = vst [vmem:[%s2268_s11 + $0xb4] sm:$0xf] %v300_v45  ;;  %303 = vst [vmem:[%s2268_s11 + $0xb8] sm:$0xf] %v302_v46  ;;  %v306_v48 = vld [vmem:[%s2263_s10 + $0x180] sm:$0xf] }
  0x35   : > { %305 = vst [vmem:[%s2268_s11 + $0xbc] sm:$0xf] %v304_v47  ;;  %v308_v49 = vld [vmem:[%s2263_s10 + $0x188] sm:$0xf]  ;;  %v310_v50 = vld [vmem:[%s2263_s10 + $0x190] sm:$0xf] }
  0x36   : > { %307 = vst [vmem:[%s2268_s11 + $0xc0] sm:$0xf] %v306_v48  ;;  %309 = vst [vmem:[%s2268_s11 + $0xc4] sm:$0xf] %v308_v49  ;;  %v312_v51 = vld [vmem:[%s2263_s10 + $0x198] sm:$0xf] }
  0x37   : > { %311 = vst [vmem:[%s2268_s11 + $0xc8] sm:$0xf] %v310_v50  ;;  %v314_v52 = vld [vmem:[%s2263_s10 + $0x1a0] sm:$0xf]  ;;  %v316_v53 = vld [vmem:[%s2263_s10 + $0x1a8] sm:$0xf] }
  0x38   : > { %313 = vst [vmem:[%s2268_s11 + $0xcc] sm:$0xf] %v312_v51  ;;  %315 = vst [vmem:[%s2268_s11 + $0xd0] sm:$0xf] %v314_v52  ;;  %v318_v54 = vld [vmem:[%s2263_s10 + $0x1b0] sm:$0xf] }
  0x39   : > { %317 = vst [vmem:[%s2268_s11 + $0xd4] sm:$0xf] %v316_v53  ;;  %v320_v55 = vld [vmem:[%s2263_s10 + $0x1b8] sm:$0xf]  ;;  %v322_v56 = vld [vmem:[%s2263_s10 + $0x1c0] sm:$0xf] }
  0x3a   : > { %319 = vst [vmem:[%s2268_s11 + $0xd8] sm:$0xf] %v318_v54  ;;  %321 = vst [vmem:[%s2268_s11 + $0xdc] sm:$0xf] %v320_v55  ;;  %v324_v57 = vld [vmem:[%s2263_s10 + $0x1c8] sm:$0xf] }
  0x3b   : > { %323 = vst [vmem:[%s2268_s11 + $0xe0] sm:$0xf] %v322_v56  ;;  %v326_v58 = vld [vmem:[%s2263_s10 + $0x1d0] sm:$0xf]  ;;  %v328_v59 = vld [vmem:[%s2263_s10 + $0x1d8] sm:$0xf] }
  0x3c   : > { %325 = vst [vmem:[%s2268_s11 + $0xe4] sm:$0xf] %v324_v57  ;;  %327 = vst [vmem:[%s2268_s11 + $0xe8] sm:$0xf] %v326_v58  ;;  %v330_v60 = vld [vmem:[%s2263_s10 + $0x1e0] sm:$0xf] }
  0x3d   : > { %329 = vst [vmem:[%s2268_s11 + $0xec] sm:$0xf] %v328_v59  ;;  %v332_v61 = vld [vmem:[%s2263_s10 + $0x1e8] sm:$0xf]  ;;  %v334_v62 = vld [vmem:[%s2263_s10 + $0x1f0] sm:$0xf] }
  0x3e   : > { %331 = vst [vmem:[%s2268_s11 + $0xf0] sm:$0xf] %v330_v60  ;;  %333 = vst [vmem:[%s2268_s11 + $0xf4] sm:$0xf] %v332_v61  ;;  %v336_v63 = vld [vmem:[%s2263_s10 + $0x1f8] sm:$0xf] }
  0x3f   : > { %335 = vst [vmem:[%s2268_s11 + $0xf8] sm:$0xf] %v334_v62  ;;  %v338_v0 = vld [vmem:[%s2263_s10 + $0x200] sm:$0xf]  ;;  %v340_v1 = vld [vmem:[%s2263_s10 + $0x208] sm:$0xf] }
  0x40   : > { %337 = vst [vmem:[%s2268_s11 + $0xfc] sm:$0xf] %v336_v63  ;;  %339 = vst [vmem:[%s2268_s11 + $0x100] sm:$0xf] %v338_v0  ;;  %v342_v2 = vld [vmem:[%s2263_s10 + $0x210] sm:$0xf] }
  0x41   : > { %341 = vst [vmem:[%s2268_s11 + $0x104] sm:$0xf] %v340_v1  ;;  %v344_v3 = vld [vmem:[%s2263_s10 + $0x218] sm:$0xf]  ;;  %v346_v4 = vld [vmem:[%s2263_s10 + $0x220] sm:$0xf] }
  0x42   : > { %343 = vst [vmem:[%s2268_s11 + $0x108] sm:$0xf] %v342_v2  ;;  %345 = vst [vmem:[%s2268_s11 + $0x10c] sm:$0xf] %v344_v3  ;;  %v348_v5 = vld [vmem:[%s2263_s10 + $0x228] sm:$0xf] }
  0x43   : > { %347 = vst [vmem:[%s2268_s11 + $0x110] sm:$0xf] %v346_v4  ;;  %v350_v6 = vld [vmem:[%s2263_s10 + $0x230] sm:$0xf]  ;;  %v352_v7 = vld [vmem:[%s2263_s10 + $0x238] sm:$0xf] }
  0x44   : > { %349 = vst [vmem:[%s2268_s11 + $0x114] sm:$0xf] %v348_v5  ;;  %351 = vst [vmem:[%s2268_s11 + $0x118] sm:$0xf] %v350_v6  ;;  %v354_v8 = vld [vmem:[%s2263_s10 + $0x240] sm:$0xf] }
  0x45   : > { %353 = vst [vmem:[%s2268_s11 + $0x11c] sm:$0xf] %v352_v7  ;;  %v356_v9 = vld [vmem:[%s2263_s10 + $0x248] sm:$0xf]  ;;  %v358_v10 = vld [vmem:[%s2263_s10 + $0x250] sm:$0xf] }
  0x46   : > { %355 = vst [vmem:[%s2268_s11 + $0x120] sm:$0xf] %v354_v8  ;;  %357 = vst [vmem:[%s2268_s11 + $0x124] sm:$0xf] %v356_v9  ;;  %v360_v11 = vld [vmem:[%s2263_s10 + $0x258] sm:$0xf] }
  0x47   : > { %359 = vst [vmem:[%s2268_s11 + $0x128] sm:$0xf] %v358_v10  ;;  %v362_v12 = vld [vmem:[%s2263_s10 + $0x260] sm:$0xf]  ;;  %v364_v13 = vld [vmem:[%s2263_s10 + $0x268] sm:$0xf] }
  0x48   : > { %361 = vst [vmem:[%s2268_s11 + $0x12c] sm:$0xf] %v360_v11  ;;  %363 = vst [vmem:[%s2268_s11 + $0x130] sm:$0xf] %v362_v12  ;;  %v366_v14 = vld [vmem:[%s2263_s10 + $0x270] sm:$0xf] }
  0x49   : > { %365 = vst [vmem:[%s2268_s11 + $0x134] sm:$0xf] %v364_v13  ;;  %v368_v15 = vld [vmem:[%s2263_s10 + $0x278] sm:$0xf]  ;;  %v370_v16 = vld [vmem:[%s2263_s10 + $0x280] sm:$0xf] }
  0x4a   : > { %367 = vst [vmem:[%s2268_s11 + $0x138] sm:$0xf] %v366_v14  ;;  %369 = vst [vmem:[%s2268_s11 + $0x13c] sm:$0xf] %v368_v15  ;;  %v372_v17 = vld [vmem:[%s2263_s10 + $0x288] sm:$0xf] }
  0x4b   : > { %371 = vst [vmem:[%s2268_s11 + $0x140] sm:$0xf] %v370_v16  ;;  %v374_v18 = vld [vmem:[%s2263_s10 + $0x290] sm:$0xf]  ;;  %v376_v19 = vld [vmem:[%s2263_s10 + $0x298] sm:$0xf] }
  0x4c   : > { %373 = vst [vmem:[%s2268_s11 + $0x144] sm:$0xf] %v372_v17  ;;  %375 = vst [vmem:[%s2268_s11 + $0x148] sm:$0xf] %v374_v18  ;;  %v378_v20 = vld [vmem:[%s2263_s10 + $0x2a0] sm:$0xf] }
  0x4d   : > { %377 = vst [vmem:[%s2268_s11 + $0x14c] sm:$0xf] %v376_v19  ;;  %v380_v21 = vld [vmem:[%s2263_s10 + $0x2a8] sm:$0xf]  ;;  %v382_v22 = vld [vmem:[%s2263_s10 + $0x2b0] sm:$0xf] }
  0x4e   : > { %379 = vst [vmem:[%s2268_s11 + $0x150] sm:$0xf] %v378_v20  ;;  %381 = vst [vmem:[%s2268_s11 + $0x154] sm:$0xf] %v380_v21  ;;  %v384_v23 = vld [vmem:[%s2263_s10 + $0x2b8] sm:$0xf] }
  0x4f   : > { %383 = vst [vmem:[%s2268_s11 + $0x158] sm:$0xf] %v382_v22  ;;  %v386_v24 = vld [vmem:[%s2263_s10 + $0x2c0] sm:$0xf]  ;;  %v388_v25 = vld [vmem:[%s2263_s10 + $0x2c8] sm:$0xf] }
  0x50   : > { %385 = vst [vmem:[%s2268_s11 + $0x15c] sm:$0xf] %v384_v23  ;;  %387 = vst [vmem:[%s2268_s11 + $0x160] sm:$0xf] %v386_v24  ;;  %v390_v26 = vld [vmem:[%s2263_s10 + $0x2d0] sm:$0xf] }
  0x51   : > { %389 = vst [vmem:[%s2268_s11 + $0x164] sm:$0xf] %v388_v25  ;;  %v392_v27 = vld [vmem:[%s2263_s10 + $0x2d8] sm:$0xf]  ;;  %v394_v28 = vld [vmem:[%s2263_s10 + $0x2e0] sm:$0xf] }
  0x52   : > { %391 = vst [vmem:[%s2268_s11 + $0x168] sm:$0xf] %v390_v26  ;;  %393 = vst [vmem:[%s2268_s11 + $0x16c] sm:$0xf] %v392_v27  ;;  %v396_v29 = vld [vmem:[%s2263_s10 + $0x2e8] sm:$0xf] }
  0x53   : > { %395 = vst [vmem:[%s2268_s11 + $0x170] sm:$0xf] %v394_v28  ;;  %v398_v30 = vld [vmem:[%s2263_s10 + $0x2f0] sm:$0xf]  ;;  %v400_v31 = vld [vmem:[%s2263_s10 + $0x2f8] sm:$0xf] }
  0x54   : > { %397 = vst [vmem:[%s2268_s11 + $0x174] sm:$0xf] %v396_v29  ;;  %399 = vst [vmem:[%s2268_s11 + $0x178] sm:$0xf] %v398_v30  ;;  %v402_v32 = vld [vmem:[%s2263_s10 + $0x300] sm:$0xf] }
  0x55   : > { %401 = vst [vmem:[%s2268_s11 + $0x17c] sm:$0xf] %v400_v31  ;;  %v404_v33 = vld [vmem:[%s2263_s10 + $0x308] sm:$0xf]  ;;  %v406_v34 = vld [vmem:[%s2263_s10 + $0x310] sm:$0xf] }
  0x56   : > { %403 = vst [vmem:[%s2268_s11 + $0x180] sm:$0xf] %v402_v32  ;;  %405 = vst [vmem:[%s2268_s11 + $0x184] sm:$0xf] %v404_v33  ;;  %v408_v35 = vld [vmem:[%s2263_s10 + $0x318] sm:$0xf] }
  0x57   : > { %407 = vst [vmem:[%s2268_s11 + $0x188] sm:$0xf] %v406_v34  ;;  %v410_v36 = vld [vmem:[%s2263_s10 + $0x320] sm:$0xf]  ;;  %v412_v37 = vld [vmem:[%s2263_s10 + $0x328] sm:$0xf] }
  0x58   : > { %409 = vst [vmem:[%s2268_s11 + $0x18c] sm:$0xf] %v408_v35  ;;  %411 = vst [vmem:[%s2268_s11 + $0x190] sm:$0xf] %v410_v36  ;;  %v414_v38 = vld [vmem:[%s2263_s10 + $0x330] sm:$0xf] }
  0x59   : > { %413 = vst [vmem:[%s2268_s11 + $0x194] sm:$0xf] %v412_v37  ;;  %v416_v39 = vld [vmem:[%s2263_s10 + $0x338] sm:$0xf]  ;;  %v418_v40 = vld [vmem:[%s2263_s10 + $0x340] sm:$0xf] }
  0x5a   : > { %415 = vst [vmem:[%s2268_s11 + $0x198] sm:$0xf] %v414_v38  ;;  %417 = vst [vmem:[%s2268_s11 + $0x19c] sm:$0xf] %v416_v39  ;;  %v420_v41 = vld [vmem:[%s2263_s10 + $0x348] sm:$0xf] }
  0x5b   : > { %419 = vst [vmem:[%s2268_s11 + $0x1a0] sm:$0xf] %v418_v40  ;;  %v422_v42 = vld [vmem:[%s2263_s10 + $0x350] sm:$0xf]  ;;  %v424_v43 = vld [vmem:[%s2263_s10 + $0x358] sm:$0xf] }
  0x5c   : > { %421 = vst [vmem:[%s2268_s11 + $0x1a4] sm:$0xf] %v420_v41  ;;  %423 = vst [vmem:[%s2268_s11 + $0x1a8] sm:$0xf] %v422_v42  ;;  %v426_v44 = vld [vmem:[%s2263_s10 + $0x360] sm:$0xf] }
  0x5d   : > { %425 = vst [vmem:[%s2268_s11 + $0x1ac] sm:$0xf] %v424_v43  ;;  %v428_v45 = vld [vmem:[%s2263_s10 + $0x368] sm:$0xf]  ;;  %v430_v46 = vld [vmem:[%s2263_s10 + $0x370] sm:$0xf] }
  0x5e   : > { %427 = vst [vmem:[%s2268_s11 + $0x1b0] sm:$0xf] %v426_v44  ;;  %429 = vst [vmem:[%s2268_s11 + $0x1b4] sm:$0xf] %v428_v45  ;;  %v432_v47 = vld [vmem:[%s2263_s10 + $0x378] sm:$0xf] }
  0x5f   : > { %431 = vst [vmem:[%s2268_s11 + $0x1b8] sm:$0xf] %v430_v46  ;;  %v434_v48 = vld [vmem:[%s2263_s10 + $0x380] sm:$0xf]  ;;  %v436_v49 = vld [vmem:[%s2263_s10 + $0x388] sm:$0xf] }
  0x60   : > { %433 = vst [vmem:[%s2268_s11 + $0x1bc] sm:$0xf] %v432_v47  ;;  %435 = vst [vmem:[%s2268_s11 + $0x1c0] sm:$0xf] %v434_v48  ;;  %v438_v50 = vld [vmem:[%s2263_s10 + $0x390] sm:$0xf] }
  0x61   : > { %437 = vst [vmem:[%s2268_s11 + $0x1c4] sm:$0xf] %v436_v49  ;;  %v440_v51 = vld [vmem:[%s2263_s10 + $0x398] sm:$0xf]  ;;  %v442_v52 = vld [vmem:[%s2263_s10 + $0x3a0] sm:$0xf] }
  0x62   : > { %439 = vst [vmem:[%s2268_s11 + $0x1c8] sm:$0xf] %v438_v50  ;;  %441 = vst [vmem:[%s2268_s11 + $0x1cc] sm:$0xf] %v440_v51  ;;  %v444_v53 = vld [vmem:[%s2263_s10 + $0x3a8] sm:$0xf] }
  0x63   : > { %443 = vst [vmem:[%s2268_s11 + $0x1d0] sm:$0xf] %v442_v52  ;;  %v446_v54 = vld [vmem:[%s2263_s10 + $0x3b0] sm:$0xf]  ;;  %v448_v55 = vld [vmem:[%s2263_s10 + $0x3b8] sm:$0xf] }
  0x64   : > { %445 = vst [vmem:[%s2268_s11 + $0x1d4] sm:$0xf] %v444_v53  ;;  %447 = vst [vmem:[%s2268_s11 + $0x1d8] sm:$0xf] %v446_v54  ;;  %v450_v56 = vld [vmem:[%s2263_s10 + $0x3c0] sm:$0xf] }
  0x65   : > { %449 = vst [vmem:[%s2268_s11 + $0x1dc] sm:$0xf] %v448_v55  ;;  %v452_v57 = vld [vmem:[%s2263_s10 + $0x3c8] sm:$0xf]  ;;  %v454_v58 = vld [vmem:[%s2263_s10 + $0x3d0] sm:$0xf] }
  0x66   : > { %451 = vst [vmem:[%s2268_s11 + $0x1e0] sm:$0xf] %v450_v56  ;;  %453 = vst [vmem:[%s2268_s11 + $0x1e4] sm:$0xf] %v452_v57  ;;  %v456_v59 = vld [vmem:[%s2263_s10 + $0x3d8] sm:$0xf] }
  0x67   : > { %455 = vst [vmem:[%s2268_s11 + $0x1e8] sm:$0xf] %v454_v58  ;;  %v458_v60 = vld [vmem:[%s2263_s10 + $0x3e0] sm:$0xf]  ;;  %v460_v61 = vld [vmem:[%s2263_s10 + $0x3e8] sm:$0xf] }
  0x68   : > { %457 = vst [vmem:[%s2268_s11 + $0x1ec] sm:$0xf] %v456_v59  ;;  %459 = vst [vmem:[%s2268_s11 + $0x1f0] sm:$0xf] %v458_v60  ;;  %v462_v62 = vld [vmem:[%s2263_s10 + $0x3f0] sm:$0xf] }
  0x69   : > { %461 = vst [vmem:[%s2268_s11 + $0x1f4] sm:$0xf] %v460_v61  ;;  %v464_v63 = vld [vmem:[%s2263_s10 + $0x3f8] sm:$0xf]  ;;  %463 = vst [vmem:[%s2268_s11 + $0x1f8] sm:$0xf] %v462_v62 }
  0x6a   : > { %465 = vst [vmem:[%s2268_s11 + $0x1fc] sm:$0xf] %v464_v63 }
  0x6b PF: > { %p1770_p7 = scmp.ge.s32.totalorder %s2173_s21, 1  ;;  %p759_p8 = scmp.lt.s32.totalorder %s2173_s21, 19 }
  0x6d   : > { %p760_p9 = pnand %p1770_p7, %p759_p8 }
  0x6e   : > { %s766_s12 = sand.u32 (!%p760_p9), 1, %s2149_s15   ;;  %s1772_s13 = sshll.u32 (!%p760_p9), %s2157_s17, 3 }
  0x6f   : > { %763 = sbr.rel (%p760_p9) target bundleno = 631 (0x277), region = 73  ;;  %s1771_s14 = sshll.u32 (!%p760_p9), %s766_s12, 9 }
  0x70   : > { %p804_p10 = scmp.lt.s32.totalorder (!%p760_p9), %s1772_s13, 71  ;;  %p810_p11 = scmp.lt.s32.totalorder (!%p760_p9), %s2161_s18, 1 }
  0x71   : > { %s1774_s26 = sshll.u32 (!%p760_p9), %s2161_s18, 4  ;;  %p1777_p13 = scmp.ne.s32.totalorder (!%p760_p9), %s2157_s17, 0 }
  0x72   : > { %p814_p12 = scmp.lt.s32.totalorder (!%p760_p9), %s1774_s26, 31 }
  0x74   : > { %s2677_s13 = smov (!%p804_p10, %s1772_s13), 71  ;;  %s2679_s26 = smov (!%p814_p12, %s1774_s26), 31 }
  0x75   : > { %s2529_s24 = scalar_select %p810_p11, %s2161_s18, 1 }
  0x76   : > { %s1773_s25 = sshll.u32 %s2677_s13, 2  ;;  %s1775_s11 = sshll.u32 %s2679_s26, 2 }
  0x77   : > { %s2535_s30 = scalar_lea.vmem %s2659_s0, %s1773_s25  ;;  %s812_s15 = scalar_lea.vmem %s2661_s2, %s2529_s24 }
  0x78   : > { %s1776_s7 = sshll.u32 %s2529_s24, 3  ;;  %s2550_s13 = scalar_lea.vmem %s2662_s3, %s1775_s11 }
  0x79   : > { %s2545_s10 = scalar_lea.vmem %s2663_s4, %s1776_s7  ;;  %s2552_s25 = scalar_lea.vmem [#allocation3], %s1771_s14 }
  0x7a   : > { %827 = sbr.rel (%p1777_p13) target bundleno = 129 (0x81), region = 81 }
  0x7f   : > { %v2175_v0 = vmov 0.0  }
  0x80   : > { %828 = vst [vmem:[#allocation2] sm:$0xff] %v2175_v0 }
  0x81 PF: > { %v2039_v1 = vld [vmem:[%s2552_s25 + $0x78] sm:$0xff]   ;;  %v2043_v5 = vld [vmem:[%s2552_s25 + $0x70] sm:$0xff]   ;;  %v2047_v9 = vld [vmem:[%s2552_s25 + $0x68] sm:$0xff]   ;;  %p1850_p0 = scmp.ne.s32.totalorder %s2157_s17, 8 }
  0x82   : > { %v2040_v2 = vld [vmem:[%s2552_s25 + $0xf8] sm:$0xff]   ;;  %1863 = vmatprep.subr.bf16.mxu0 %v2039_v1  ;;  %v2044_v6 = vld [vmem:[%s2552_s25 + $0xf0] sm:$0xff]   ;;  %v2048_v10 = vld [vmem:[%s2552_s25 + $0xe8] sm:$0xff]  }
  0x83   : > { %v2041_v3 = vld [vmem:[%s2552_s25 + $0x38] sm:$0xff]   ;;  %1885 = vmatprep.subr.bf16.mxu1 %v2040_v2  ;;  %v2045_v7 = vld [vmem:[%s2552_s25 + $0x30] sm:$0xff]   ;;  %v2049_v11 = vld [vmem:[%s2552_s25 + $0x28] sm:$0xff]  }
  0x84   : > { %v2042_v4 = vld [vmem:[%s2552_s25 + $0xb8] sm:$0xff]   ;;  %1864 = vmatpush3.bf16.msra.mxu0 %v2041_v3  ;;  %v2046_v8 = vld [vmem:[%s2552_s25 + $0xb0] sm:$0xff]   ;;  %v2050_v12 = vld [vmem:[%s2552_s25 + $0xa8] sm:$0xff]  }
  0x85   : > { %1886 = vmatpush3.bf16.msra.mxu1 %v2042_v4  ;;  %1865 = vmatprep.subr.bf16.mxu0 %v2043_v5  ;;  %v2051_v13 = vld [vmem:[%s2552_s25 + $0x60] sm:$0xff]   ;;  %v2055_v17 = vld [vmem:[%s2552_s25 + $0x58] sm:$0xff]   ;;  %v2059_v21 = vld [vmem:[%s2552_s25 + $0x50] sm:$0xff]  }
  0x86   : > { %1887 = vmatprep.subr.bf16.mxu1 %v2044_v6  ;;  %v2052_v14 = vld [vmem:[%s2552_s25 + $0xe0] sm:$0xff]   ;;  %v2056_v18 = vld [vmem:[%s2552_s25 + $0xd8] sm:$0xff]   ;;  %v2060_v22 = vld [vmem:[%s2552_s25 + $0xd0] sm:$0xff]  }
  0x87   : > { %v2053_v15 = vld [vmem:[%s2552_s25 + $0x20] sm:$0xff]   ;;  %v2057_v19 = vld [vmem:[%s2552_s25 + $0x18] sm:$0xff]   ;;  %v2061_v23 = vld [vmem:[%s2552_s25 + $0x10] sm:$0xff]  }
  0x88   : > { %1866 = vmatpush3.bf16.msra.mxu0 %v2045_v7  ;;  %v2054_v16 = vld [vmem:[%s2552_s25 + $0xa0] sm:$0xff]   ;;  %v2058_v20 = vld [vmem:[%s2552_s25 + $0x98] sm:$0xff]   ;;  %v2062_v24 = vld [vmem:[%s2552_s25 + $0x90] sm:$0xff]  }
  0x89   : > { %1888 = vmatpush3.bf16.msra.mxu1 %v2046_v8  ;;  %1867 = vmatprep.subr.bf16.mxu0 %v2047_v9  ;;  %v2063_v25 = vld [vmem:[%s2552_s25 + $0x48] sm:$0xff]   ;;  %v2067_v29 = vld [vmem:[%s2552_s25 + $0x40] sm:$0xff]   ;;  %v830_v33 = vld [vmem:[%s2535_s30] sm:$0xff] }
  0x8a   : > { %1889 = vmatprep.subr.bf16.mxu1 %v2048_v10  ;;  %v2064_v26 = vld [vmem:[%s2552_s25 + $0xc8] sm:$0xff]   ;;  %v2068_v30 = vld [vmem:[%s2552_s25 + $0xc0] sm:$0xff]   ;;  %v1778_v35 = vcombine.low %v830_v33, %v830_v33  ;;  %v1779_v36 = vcombine.high %v830_v33, %v830_v33  ;;  %v2075_v39 = vld [vmem:[%s2552_s25 + $0x178] sm:$0xff]  }
  0x8b   : > { %v2065_v27 = vld [vmem:[%s2552_s25 + $0x8] sm:$0xff]   ;;  %v2069_v31 = vld [vmem:[%s2552_s25] sm:$0xff]   ;;  %v2076_v40 = vld [vmem:[%s2552_s25 + $0x1f8] sm:$0xff]  }
  0x8c   : > { %1868 = vmatpush3.bf16.msra.mxu0 %v2049_v11  ;;  %v2066_v28 = vld [vmem:[%s2552_s25 + $0x88] sm:$0xff]   ;;  %v2070_v32 = vld [vmem:[%s2552_s25 + $0x80] sm:$0xff]   ;;  %1406 = vmatprep.mubr.bf16.mxu0 %v1779_v36  ;;  %v2077_v41 = vld [vmem:[%s2552_s25 + $0x138] sm:$0xff]  }
  0x8d   : > { %1890 = vmatpush3.bf16.msra.mxu1 %v2050_v12  ;;  %1869 = vmatprep.subr.bf16.mxu0 %v2051_v13  ;;  %v831_v34 = vld [vmem:[%s2535_s30 + $0x8] sm:$0xff]  ;;  %v2078_v42 = vld [vmem:[%s2552_s25 + $0x1b8] sm:$0xff]   ;;  %v2079_v43 = vld [vmem:[%s2552_s25 + $0x170] sm:$0xff]  }
  0x8e   : > { %1891 = vmatprep.subr.bf16.mxu1 %v2052_v14  ;;  %v1780_v37 = vcombine.low %v831_v34, %v831_v34  ;;  %v1781_v38 = vcombine.high %v831_v34, %v831_v34  ;;  %v2080_v44 = vld [vmem:[%s2552_s25 + $0x1f0] sm:$0xff]   ;;  %v2083_v47 = vld [vmem:[%s2552_s25 + $0x168] sm:$0xff]   ;;  %v2087_v51 = vld [vmem:[%s2552_s25 + $0x160] sm:$0xff]  }
  0x8f   : > { %v2081_v45 = vld [vmem:[%s2552_s25 + $0x130] sm:$0xff]   ;;  %v2084_v48 = vld [vmem:[%s2552_s25 + $0x1e8] sm:$0xff]   ;;  %v2088_v52 = vld [vmem:[%s2552_s25 + $0x1e0] sm:$0xff]  }
  0x90   : > { %1870 = vmatpush3.bf16.msra.mxu0 %v2053_v15  ;;  %1446 = vmatprep.mubr.bf16.mxu1 %v1781_v38  ;;  %v2082_v46 = vld [vmem:[%s2552_s25 + $0x1b0] sm:$0xff]   ;;  %v2085_v49 = vld [vmem:[%s2552_s25 + $0x128] sm:$0xff]   ;;  %v2089_v53 = vld [vmem:[%s2552_s25 + $0x120] sm:$0xff]  }
  0x91   : > { %1892 = vmatpush3.bf16.msra.mxu1 %v2054_v16  ;;  %1871 = vmatprep.subr.bf16.mxu0 %v2055_v17  ;;  %v2086_v50 = vld [vmem:[%s2552_s25 + $0x1a8] sm:$0xff]   ;;  %v2090_v54 = vld [vmem:[%s2552_s25 + $0x1a0] sm:$0xff]   ;;  %v2091_v55 = vld [vmem:[%s2552_s25 + $0x158] sm:$0xff]  }
  0x92   : > { %1893 = vmatprep.subr.bf16.mxu1 %v2056_v18  ;;  %v2092_v56 = vld [vmem:[%s2552_s25 + $0x1d8] sm:$0xff]   ;;  %v2095_v59 = vld [vmem:[%s2552_s25 + $0x150] sm:$0xff]   ;;  %v2099_v63 = vld [vmem:[%s2552_s25 + $0x148] sm:$0xff]  }
  0x93   : > { %v2093_v57 = vld [vmem:[%s2552_s25 + $0x118] sm:$0xff]   ;;  %v2096_v60 = vld [vmem:[%s2552_s25 + $0x1d0] sm:$0xff]   ;;  %v2100_v0 = vld [vmem:[%s2552_s25 + $0x1c8] sm:$0xff]  }
  0x94   : > { %1872 = vmatpush3.bf16.msra.mxu0 %v2057_v19  ;;  %v2094_v58 = vld [vmem:[%s2552_s25 + $0x198] sm:$0xff]   ;;  %v2097_v61 = vld [vmem:[%s2552_s25 + $0x110] sm:$0xff]   ;;  %v2101_v1 = vld [vmem:[%s2552_s25 + $0x108] sm:$0xff]  }
  0x95   : > { %1894 = vmatpush3.bf16.msra.mxu1 %v2058_v20  ;;  %1873 = vmatprep.subr.bf16.mxu0 %v2059_v21  ;;  %v2098_v62 = vld [vmem:[%s2552_s25 + $0x190] sm:$0xff]   ;;  %v2102_v2 = vld [vmem:[%s2552_s25 + $0x188] sm:$0xff]   ;;  %v2103_v3 = vld [vmem:[%s2552_s25 + $0x140] sm:$0xff]  }
  0x96   : > { %1895 = vmatprep.subr.bf16.mxu1 %v2060_v22  ;;  %v2104_v4 = vld [vmem:[%s2552_s25 + $0x1c0] sm:$0xff]   ;;  %v832_v7 = vld [vmem:[%s2535_s30 + $0x10] sm:$0xff]  ;;  %v833_v10 = vld [vmem:[%s2535_s30 + $0x18] sm:$0xff] }
  0x97   : > { %v2105_v5 = vld [vmem:[%s2552_s25 + $0x100] sm:$0xff]   ;;  %v1782_v8 = vcombine.low %v832_v7, %v832_v7  ;;  %v1783_v9 = vcombine.high %v832_v7, %v832_v7  ;;  %v1784_v11 = vcombine.low %v833_v10, %v833_v10  ;;  %v1785_v12 = vcombine.high %v833_v10, %v833_v10  ;;  %v829_v33 = vld [vmem:[#allocation2] sm:$0xff] }
  0x98   : > { %1874 = vmatpush3.bf16.msra.mxu0 %v2061_v23  ;;  %v2106_v6 = vld [vmem:[%s2552_s25 + $0x180] sm:$0xff]  }
  0x99   : > { %1896 = vmatpush3.bf16.msra.mxu1 %v2062_v24  ;;  %1875 = vmatprep.subr.bf16.mxu0 %v2063_v25 }
  0x9a   : > { %1897 = vmatprep.subr.bf16.mxu1 %v2064_v26 }
  0x9c   : > { %1876 = vmatpush3.bf16.msra.mxu0 %v2065_v27 }
  0x9d   : > { %1898 = vmatpush3.bf16.msra.mxu1 %v2066_v28  ;;  %1877 = vmatprep.subr.bf16.mxu0 %v2067_v29 }
  0x9e   : > { %1899 = vmatprep.subr.bf16.mxu1 %v2068_v30 }
  0xa0   : > { %1878 = vmatpush3.bf16.msra.mxu0 %v2069_v31 }
  0xa1   : > { %1900 = vmatpush3.bf16.msra.mxu1 %v2070_v32  ;;  %1907 = vmatprep.subr.bf16.mxu0 %v2075_v39 }
  0xa2   : > { %1929 = vmatprep.subr.bf16.mxu1 %v2076_v40 }
  0xa3   : > { %1407 = vmatmul.mubr.bf16.vlgmr.msra.gmra.mxu0 %v1778_v35 }
  0xa4   : > { %1447 = vmatmul.mubr.bf16.vlgmr.msra.gmra.mxu1 %v1780_v37  ;;  %1908 = vmatpush3.bf16.msra.mxu0 %v2077_v41 }
  0xa5   : > { %1930 = vmatpush3.bf16.msra.mxu1 %v2078_v42  ;;  %1909 = vmatprep.subr.bf16.mxu0 %v2079_v43 }
  0xa6   : > { %1931 = vmatprep.subr.bf16.mxu1 %v2080_v44  ;;  %1486 = vmatprep.mubr.bf16.mxu0 %v1783_v9 }
  0xa7   : > { %1526 = vmatprep.mubr.bf16.mxu1 %v1785_v12 }
  0xa8   : > { %1910 = vmatpush3.bf16.msra.mxu0 %v2081_v45 }
  0xa9   : > { %1932 = vmatpush3.bf16.msra.mxu1 %v2082_v46  ;;  %1911 = vmatprep.subr.bf16.mxu0 %v2083_v47 }
  0xaa   : > { %1933 = vmatprep.subr.bf16.mxu1 %v2084_v48 }
  0xac   : > { %1912 = vmatpush3.bf16.msra.mxu0 %v2085_v49 }
  0xad   : > { %1934 = vmatpush3.bf16.msra.mxu1 %v2086_v50  ;;  %1913 = vmatprep.subr.bf16.mxu0 %v2087_v51 }
  0xae   : > { %1935 = vmatprep.subr.bf16.mxu1 %v2088_v52 }
  0xb0   : > { %1914 = vmatpush3.bf16.msra.mxu0 %v2089_v53 }
  0xb1   : > { %1936 = vmatpush3.bf16.msra.mxu1 %v2090_v54  ;;  %1915 = vmatprep.subr.bf16.mxu0 %v2091_v55 }
  0xb2   : > { %1937 = vmatprep.subr.bf16.mxu1 %v2092_v56 }
  0xb4   : > { %1916 = vmatpush3.bf16.msra.mxu0 %v2093_v57 }
  0xb5   : > { %1938 = vmatpush3.bf16.msra.mxu1 %v2094_v58  ;;  %1917 = vmatprep.subr.bf16.mxu0 %v2095_v59 }
  0xb6   : > { %1939 = vmatprep.subr.bf16.mxu1 %v2096_v60 }
  0xb8   : > { %1918 = vmatpush3.bf16.msra.mxu0 %v2097_v61 }
  0xb9   : > { %1940 = vmatpush3.bf16.msra.mxu1 %v2098_v62  ;;  %1919 = vmatprep.subr.bf16.mxu0 %v2099_v63 }
  0xba   : > { %1941 = vmatprep.subr.bf16.mxu1 %v2100_v0 }
  0xbc   : > { %1920 = vmatpush3.bf16.msra.mxu0 %v2101_v1 }
  0xbd   : > { %1942 = vmatpush3.bf16.msra.mxu1 %v2102_v2  ;;  %1921 = vmatprep.subr.bf16.mxu0 %v2103_v3 }
  0xbe   : > { %1943 = vmatprep.subr.bf16.mxu1 %v2104_v4 }
  0xc0   : > { %1922 = vmatpush3.bf16.msra.mxu0 %v2105_v5 }
  0xc1   : > { %1944 = vmatpush3.bf16.msra.mxu1 %v2106_v6 }
  0xc3   : > { %1487 = vmatmul.mubr.bf16.vlgmr.msra.gmra.mxu0 %v1782_v8 }
  0xc4   : > { %1527 = vmatmul.mubr.bf16.vlgmr.msra.gmra.mxu1 %v1784_v11 }
 0x163   : > { %v1879_v13 = vpop.f32.mrf.mxu0 }
 0x164   : > { %v1901_v14 = vpop.f32.mrf.mxu1 }
 0x165   : > { %v1880_v15 = vpop.f32.mrf.mxu0 }
 0x166   : > { %v1902_v16 = vpop.f32.mrf.mxu1  ;;  %v1881_v21 = vadd.f32 %v1880_v15, %v1879_v13 }
 0x167   : > { %v1882_v17 = vpop.f32.mrf.mxu0  ;;  %v1903_v22 = vadd.f32 %v1902_v16, %v1901_v14 }
 0x168   : > { %v1904_v18 = vpop.f32.mrf.mxu1 }
 0x169   : > { %v1883_v19 = vpop.f32.mrf.mxu0  ;;  %v1449_v27 = vadd.f32 %v1903_v22, %v1881_v21 }
 0x16a   : > { %v1905_v20 = vpop.f32.mrf.mxu1 }
 0x183   : > { %v1923_v23 = vpop.f32.mrf.mxu0 }
 0x184   : > { %v1945_v24 = vpop.f32.mrf.mxu1 }
 0x185   : > { %v1924_v25 = vpop.f32.mrf.mxu0 }
 0x186   : > { %v1946_v26 = vpop.f32.mrf.mxu1  ;;  %v1925_v28 = vadd.f32 %v1924_v25, %v1923_v23 }
 0x187   : > { %v1926_v29 = vpop.f32.mrf.mxu0  ;;  %v1947_v32 = vadd.f32 %v1946_v26, %v1945_v24 }
 0x188   : > { %v1948_v30 = vpop.f32.mrf.mxu1  ;;  %v1489_v31 = vadd.f32 %v1925_v28, %v1449_v27 }
 0x189   : > { %v1927_v34 = vpop.f32.mrf.mxu0 }
 0x18a   : > { %v1949_v35 = vpop.f32.mrf.mxu1  ;;  %v1529_v36 = vadd.f32 %v1947_v32, %v1489_v31  ;;  %1539 = sbr.rel (%p1850_p0) target bundleno = 631 (0x277), region = 85 }
 0x18c   : > { %v1534_v37 = vadd.f32 %v1529_v36, %v829_v33 }
 0x18e   : > { %1535 = vst [vmem:[#allocation2] sm:$0xff] %v1534_v37 }
 0x18f   : > { %v2111_v38 = vld [vmem:[%s2550_s13 + $0x38] sm:$0xff]   ;;  %v2176_v39 = vmov 0.0   ;;  %v2112_v40 = vld [vmem:[%s2550_s13 + $0x30] sm:$0xff]   ;;  %vm2177_vm0 = vmmov 0   ;;  %v2113_v41 = vld [vmem:[%s2550_s13 + $0x28] sm:$0xff]   ;;  %vm1655_vm1 = vcmask 15360  }
 0x190   : > { %1960 = vmatprep.subr.bf16.mxu0 %v2176_v39  ;;  %1976 = vmatprep.mubr.msk.bf16.mxu0 %vm2177_vm0, %v2176_v39  ;;  %v2114_v42 = vld [vmem:[%s2550_s13 + $0x20] sm:$0xff]   ;;  %v2115_v43 = vld [vmem:[%s2550_s13 + $0x18] sm:$0xff]   ;;  %v2116_v44 = vld [vmem:[%s2550_s13 + $0x10] sm:$0xff]  }
 0x191   : > { %1961 = vmatpush3.bf16.msra.mxu0 %v2111_v38  ;;  %v1851_v46 = vld [vmem:[%s812_s15] ss:$0 sm:$0xff]  ;;  %v2117_v48 = vld [vmem:[%s2550_s13 + $0x8] sm:$0xff]  }
 0x192   : > { %1962 = vmatprep.subr.bf16.mxu0 %v2176_v39  ;;  %v2118_v50 = vld [vmem:[%s2550_s13] sm:$0xff]  }
 0x195   : > { %1963 = vmatpush3.bf16.msra.mxu0 %v2112_v40  ;;  %v1540_v45 = vld [vmem:[#allocation2] sm:$0xff] }
 0x196   : > { %1964 = vmatprep.subr.bf16.mxu0 %v2176_v39  ;;  %v1548_v47 = vadd.f32 %v1851_v46, %v1540_v45 }
 0x198   : > { %v1549_v49 = vmax.f32 %v1548_v47, 0.0 }
 0x199   : > { %1965 = vmatpush3.bf16.msra.mxu0 %v2113_v41 }
 0x19a   : > { %1966 = vmatprep.subr.bf16.mxu0 %v2176_v39  ;;  %v1550_v51 = vpack.c.bf16 %v1549_v49, %v1549_v49 }
 0x19d   : > { %1967 = vmatpush3.bf16.msra.mxu0 %v2114_v42 }
 0x19e   : > { %1968 = vmatprep.subr.bf16.mxu0 %v2176_v39 }
 0x1a1   : > { %1969 = vmatpush3.bf16.msra.mxu0 %v2115_v43 }
 0x1a2   : > { %1970 = vmatprep.subr.bf16.mxu0 %v2176_v39 }
 0x1a5   : > { %1971 = vmatpush3.bf16.msra.mxu0 %v2116_v44 }
 0x1a6   : > { %1972 = vmatprep.subr.bf16.mxu0 %v2176_v39 }
 0x1a9   : > { %1973 = vmatpush3.bf16.msra.mxu0 %v2117_v48 }
 0x1aa   : > { %1974 = vmatprep.subr.bf16.mxu0 %v2176_v39 }
 0x1ad   : > { %1975 = vmatpush3.bf16.msra.mxu0 %v2118_v50 }
 0x1b0   : > { %1977 = vmatmul.mubr.bf16.vlgmr.msra.gmra.mxu0 %v1550_v51 }
 0x270   : > { %v1649_v52 = vpop.f32.mrf.mxu0 }
 0x271   : > { %1656 = vst.msk [vmem:[%s2545_s10] sm:$0xff] %vm1655_vm1, %v1649_v52 }
 0x272   : > { %v1978_v53 = vpop.f32.mrf.mxu0 }
 0x274   : > { %v1652_v54 = vpop.f32.mrf.mxu0 }
 0x276   : > { %v1979_v55 = vpop.f32.mrf.mxu0 }
 0x277 PF: > { %s14_s21 = sadd.s32 1, %s2173_s21   ;;  %s2664_s15 = smov %s2153_s16 }
 0x278   : > { %p11_p1 = scmp.ge.s32.totalorder %s14_s21, 20   ;;  %s2665_s16 = smov %s2254_s28 }
 0x279   : > { %s2666_s17 = smov %s2165_s19  ;;  %s2667_s18 = smov %s2169_s20 }
 0x27a   : > { %s2668_s19 = smov %s2671_s22  ;;  %s2669_s20 = smov %s2675_s23 }
 0x27b   :  { %13 = sbr.rel (!%p11_p1) target bundleno = 4 (0x4), region = 129 }

// kernel: fcn_cnsn_forward.8
= control target key start
LH: loop header
LB: loop body
LE: loop exit
PB: predicated region body
PF: predicated region fallthrough
CT: control target
= control target key end

     0   :  { %vm19_vm0 = vcmask 130048   ;;  %vm36_vm1 = vcmask 1040384   ;;  %v120_v0 = vmov 0.0   ;;  %vm121_vm2 = vmmov 0   ;;  %s187_s3 = inlined_call_operand.vmem [shape: f32[16,16], index: 3, kind: output, shape index: {}]   ;;  %s188_s1 = inlined_call_operand.vmem [shape: bf16[2,16], index: 1, kind: input, shape index: {}]   ;;  %s189_s0 = inlined_call_operand.vmem [shape: bf16[16,2], index: 0, kind: input, shape index: {}]   ;;  %s190_s2 = inlined_call_operand.vmem [shape: f32[1,16], index: 2, kind: input, shape index: {}]  }
   0x1   :  { %20 = vst.msk [vmem:[%s187_s3] sm:$0xff] %vm19_vm0, %v120_v0  ;;  %21 = vst.msk [vmem:[%s187_s3 + $0x8] sm:$0xff] %vm19_vm0, %v120_v0  ;;  %111 = vmatprep.subr.bf16.mxu0 %v120_v0  ;;  %v26_v1 = vld [vmem:[%s188_s1] sm:$0x1]  ;;  %113 = vmatprep.mubr.msk.bf16.mxu0 %vm121_vm2, %v120_v0  ;;  %vm32_vm3 = vcmask 15360  }
   0x2   :  { %v38_v2 = vsel %vm36_vm1, %v26_v1, 0  ;;  %v119_v3 = vld [vmem:[%s189_s0] sm:$0xff]  }
   0x3   :  { %112 = vmatpush3.bf16.msra.mxu0 %v38_v2  ;;  %v108_v12 = vld [vmem:[%s190_s2] ss:$0 sm:$0xff] }
   0x6   :  { %114 = vmatmul.mubr.msk.bf16.vlgmr.msra.gmra.mxu0 %vm32_vm3, %v119_v3 }
   0x8   :  { %v22_v4 = vld [vmem:[%s187_s3] sm:$0xff]  ;;  %v23_v8 = vld [vmem:[%s187_s3 + $0x8] sm:$0xff] }
  0xc6   :  { %v74_v5 = vpop.f32.mrf.mxu0 }
  0xc7   :  { %v81_v6 = vadd.f32 %v74_v5, %v22_v4 }
  0xc8   :  { %v115_v7 = vpop.f32.mrf.mxu0 }
  0xc9   :  { %84 = vst.msk [vmem:[%s187_s3] sm:$0xff] %vm19_vm0, %v81_v6 }
  0xca   :  { %v77_v9 = vpop.f32.mrf.mxu0 }
  0xcb   :  { %v82_v10 = vadd.f32 %v77_v9, %v23_v8 }
  0xcc   :  { %v116_v11 = vpop.f32.mrf.mxu0 }
  0xcd   :  { %85 = vst.msk [vmem:[%s187_s3 + $0x8] sm:$0xff] %vm19_vm0, %v82_v10 }
  0xd0   :  { %v89_v13 = vld [vmem:[%s187_s3] sm:$0xff] }
  0xd1   :  { %v98_v14 = vadd.f32 %v108_v12, %v89_v13 }
  0xd3   :  { %100 = vst.msk [vmem:[%s187_s3] sm:$0xff] %vm19_vm0, %v98_v14 }
  0xd4   :  { %v90_v15 = vld [vmem:[%s187_s3 + $0x8] sm:$0xff] }
  0xd5   :  { %v99_v16 = vadd.f32 %v108_v12, %v90_v15 }
  0xd7   :  { %101 = vst.msk [vmem:[%s187_s3 + $0x8] sm:$0xff] %vm19_vm0, %v99_v16 }

// kernel: fcn_cnsn_forward.9
= control target key start
LH: loop header
LB: loop body
LE: loop exit
PB: predicated region body
PF: predicated region fallthrough
CT: control target
= control target key end

     0   :  { %vm134_vm0 = vcmask 1040384   ;;  %vm109_vm1 = vcmask 15360   ;;  %vm19_vm2 = vcmask 130048   ;;  %v387_v1 = vmov 0.0   ;;  %s755_s1 = inlined_call_operand.vmem [shape: bf16[2,16], index: 1, kind: input, shape index: {}]   ;;  %s756_s0 = inlined_call_operand.vmem [shape: bf16[128,2], index: 0, kind: input, shape index: {}]   ;;  %s757_s3 = inlined_call_operand.vmem [shape: f32[128,16], index: 3, kind: output, shape index: {}]   ;;  %s758_s2 = inlined_call_operand.vmem [shape: f32[1,16], index: 2, kind: input, shape index: {}]  }
   0x1   :  { %v68_v0 = vld [vmem:[%s755_s1] sm:$0x1]  ;;  %22 = vst.msk [vmem:[%s757_s3 + $0x10] sm:$0xff] %vm19_vm2, %v387_v1  ;;  %20 = vst.msk [vmem:[%s757_s3] sm:$0xff] %vm19_vm2, %v387_v1  ;;  %v381_v5 = vld [vmem:[%s756_s0 + $0x8] sm:$0xff]  }
   0x2   :  { %21 = vst.msk [vmem:[%s757_s3 + $0x8] sm:$0xff] %vm19_vm2, %v387_v1  ;;  %23 = vst.msk [vmem:[%s757_s3 + $0x18] sm:$0xff] %vm19_vm2, %v387_v1  ;;  %376 = vmatprep.subr.msk.bf16.mxu0 %vm134_vm0, %v68_v0  ;;  %377 = vmatprep.subr.msk.bf16.mxu1 %vm134_vm0, %v68_v0  ;;  %v136_v2 = vsel %vm134_vm0, %v68_v0, 0  ;;  %v379_v3 = vld [vmem:[%s756_s0] sm:$0xff]   ;;  %v382_v6 = vld [vmem:[%s756_s0 + $0x28] sm:$0xff]  }
   0x3   :  { %24 = vst.msk [vmem:[%s757_s3 + $0x20] sm:$0xff] %vm19_vm2, %v387_v1  ;;  %25 = vst.msk [vmem:[%s757_s3 + $0x28] sm:$0xff] %vm19_vm2, %v387_v1  ;;  %357 = vmatpush3.bf16.msra.mxu0 %v136_v2  ;;  %375 = vmatpush3.bf16.msra.mxu1 %v136_v2  ;;  %v380_v4 = vld [vmem:[%s756_s0 + $0x20] sm:$0xff]   ;;  %v383_v7 = vld [vmem:[%s756_s0 + $0x10] sm:$0xff]  }
   0x4   :  { %26 = vst.msk [vmem:[%s757_s3 + $0x30] sm:$0xff] %vm19_vm2, %v387_v1  ;;  %27 = vst.msk [vmem:[%s757_s3 + $0x38] sm:$0xff] %vm19_vm2, %v387_v1  ;;  %358 = vmatprep.mubr.msk.bf16.mxu0 %vm109_vm1, %v379_v3  ;;  %366 = vmatprep.mubr.msk.bf16.mxu1 %vm109_vm1, %v380_v4  ;;  %v384_v8 = vld [vmem:[%s756_s0 + $0x30] sm:$0xff]   ;;  %v385_v9 = vld [vmem:[%s756_s0 + $0x18] sm:$0xff]  }
   0x5   :  { %28 = vst.msk [vmem:[%s757_s3 + $0x40] sm:$0xff] %vm19_vm2, %v387_v1  ;;  %29 = vst.msk [vmem:[%s757_s3 + $0x48] sm:$0xff] %vm19_vm2, %v387_v1  ;;  %v386_v10 = vld [vmem:[%s756_s0 + $0x38] sm:$0xff]   ;;  %v563_v36 = vld [vmem:[%s758_s2] ss:$0 sm:$0xff] }
   0x6   :  { %30 = vst.msk [vmem:[%s757_s3 + $0x50] sm:$0xff] %vm19_vm2, %v387_v1  ;;  %31 = vst.msk [vmem:[%s757_s3 + $0x58] sm:$0xff] %vm19_vm2, %v387_v1  ;;  %359 = vmatmul.mubr.msk.bf16.vlgmr.msra.gmra.mxu0 %vm109_vm1, %v381_v5  ;;  %367 = vmatmul.mubr.msk.bf16.vlgmr.msra.gmra.mxu1 %vm109_vm1, %v382_v6 }
   0x7   :  { %32 = vst.msk [vmem:[%s757_s3 + $0x60] sm:$0xff] %vm19_vm2, %v387_v1  ;;  %33 = vst.msk [vmem:[%s757_s3 + $0x68] sm:$0xff] %vm19_vm2, %v387_v1  ;;  %362 = vmatprep.mubr.msk.bf16.mxu0 %vm109_vm1, %v383_v7  ;;  %370 = vmatprep.mubr.msk.bf16.mxu1 %vm109_vm1, %v384_v8 }
   0x8   :  { %34 = vst.msk [vmem:[%s757_s3 + $0x70] sm:$0xff] %vm19_vm2, %v387_v1  ;;  %35 = vst.msk [vmem:[%s757_s3 + $0x78] sm:$0xff] %vm19_vm2, %v387_v1  ;;  %v38_v11 = vld [vmem:[%s757_s3 + $0x10] sm:$0xff]  ;;  %v36_v14 = vld [vmem:[%s757_s3] sm:$0xff] }
   0x9   :  { %v39_v20 = vld [vmem:[%s757_s3 + $0x18] sm:$0xff]  ;;  %v37_v26 = vld [vmem:[%s757_s3 + $0x8] sm:$0xff] }
   0xa   :  { %v40_v39 = vld [vmem:[%s757_s3 + $0x20] sm:$0xff]  ;;  %v41_v56 = vld [vmem:[%s757_s3 + $0x28] sm:$0xff] }
   0xb   :  { %v42_v32 = vld [vmem:[%s757_s3 + $0x30] sm:$0xff]  ;;  %v43_v46 = vld [vmem:[%s757_s3 + $0x38] sm:$0xff] }
   0xc   :  { %v44_v17 = vld [vmem:[%s757_s3 + $0x40] sm:$0xff]  ;;  %v45_v29 = vld [vmem:[%s757_s3 + $0x48] sm:$0xff] }
   0xd   :  { %v46_v12 = vld [vmem:[%s757_s3 + $0x50] sm:$0xff]  ;;  %v47_v23 = vld [vmem:[%s757_s3 + $0x58] sm:$0xff] }
   0xe   :  { %363 = vmatmul.mubr.msk.bf16.gmra.mxu0 %vm109_vm1, %v385_v9  ;;  %371 = vmatmul.mubr.msk.bf16.gmra.mxu1 %vm109_vm1, %v386_v10  ;;  %v48_v42 = vld [vmem:[%s757_s3 + $0x60] sm:$0xff]  ;;  %v49_v61 = vld [vmem:[%s757_s3 + $0x68] sm:$0xff] }
   0xf   :  { %v50_v35 = vld [vmem:[%s757_s3 + $0x70] sm:$0xff]  ;;  %v51_v51 = vld [vmem:[%s757_s3 + $0x78] sm:$0xff] }
  0xc6   :  { %v360_v13 = vpop.f32.mrf.mxu0  ;;  %v368_v16 = vpop.f32.mrf.mxu1 }
  0xc7   :  { %v237_v15 = vadd.f32 %v360_v13, %v38_v11  ;;  %v245_v18 = vadd.f32 %v368_v16, %v46_v12 }
  0xc8   :  { %v172_v19 = vpop.f32.mrf.mxu0  ;;  %v204_v22 = vpop.f32.mrf.mxu1 }
  0xc9   :  { %254 = vst.msk [vmem:[%s757_s3 + $0x10] sm:$0xff] %vm19_vm2, %v237_v15  ;;  %v235_v21 = vadd.f32 %v172_v19, %v36_v14  ;;  %262 = vst.msk [vmem:[%s757_s3 + $0x50] sm:$0xff] %vm19_vm2, %v245_v18  ;;  %v243_v24 = vadd.f32 %v204_v22, %v44_v17 }
  0xca   :  { %v361_v25 = vpop.f32.mrf.mxu0  ;;  %v369_v28 = vpop.f32.mrf.mxu1 }
  0xcb   :  { %252 = vst.msk [vmem:[%s757_s3] sm:$0xff] %vm19_vm2, %v235_v21  ;;  %v238_v27 = vadd.f32 %v361_v25, %v39_v20  ;;  %260 = vst.msk [vmem:[%s757_s3 + $0x40] sm:$0xff] %vm19_vm2, %v243_v24  ;;  %v246_v30 = vadd.f32 %v369_v28, %v47_v23 }
  0xcc   :  { %v175_v31 = vpop.f32.mrf.mxu0  ;;  %v207_v34 = vpop.f32.mrf.mxu1 }
  0xcd   :  { %255 = vst.msk [vmem:[%s757_s3 + $0x18] sm:$0xff] %vm19_vm2, %v238_v27  ;;  %v236_v33 = vadd.f32 %v175_v31, %v37_v26  ;;  %263 = vst.msk [vmem:[%s757_s3 + $0x58] sm:$0xff] %vm19_vm2, %v246_v30  ;;  %v244_v37 = vadd.f32 %v207_v34, %v45_v29 }
  0xce   :  { %v364_v38 = vpop.f32.mrf.mxu0  ;;  %v372_v41 = vpop.f32.mrf.mxu1 }
  0xcf   :  { %253 = vst.msk [vmem:[%s757_s3 + $0x8] sm:$0xff] %vm19_vm2, %v236_v33  ;;  %v241_v40 = vadd.f32 %v364_v38, %v42_v32  ;;  %261 = vst.msk [vmem:[%s757_s3 + $0x48] sm:$0xff] %vm19_vm2, %v244_v37  ;;  %v249_v44 = vadd.f32 %v372_v41, %v50_v35 }
  0xd0   :  { %v273_v43 = vld [vmem:[%s757_s3 + $0x10] sm:$0xff]  ;;  %v188_v45 = vpop.f32.mrf.mxu0  ;;  %v220_v50 = vpop.f32.mrf.mxu1 }
  0xd1   :  { %v296_v47 = vadd.f32 %v563_v36, %v273_v43  ;;  %v281_v48 = vld [vmem:[%s757_s3 + $0x50] sm:$0xff]  ;;  %258 = vst.msk [vmem:[%s757_s3 + $0x30] sm:$0xff] %vm19_vm2, %v241_v40  ;;  %v239_v49 = vadd.f32 %v188_v45, %v40_v39  ;;  %266 = vst.msk [vmem:[%s757_s3 + $0x70] sm:$0xff] %vm19_vm2, %v249_v44  ;;  %v247_v54 = vadd.f32 %v220_v50, %v48_v42 }
  0xd2   :  { %v304_v52 = vadd.f32 %v563_v36, %v281_v48  ;;  %v271_v53 = vld [vmem:[%s757_s3] sm:$0xff]  ;;  %v365_v55 = vpop.f32.mrf.mxu0  ;;  %v373_v60 = vpop.f32.mrf.mxu1 }
  0xd3   :  { %312 = vst.msk [vmem:[%s757_s3 + $0x10] sm:$0xff] %vm19_vm2, %v296_v47  ;;  %v294_v57 = vadd.f32 %v563_v36, %v271_v53  ;;  %v279_v58 = vld [vmem:[%s757_s3 + $0x40] sm:$0xff]  ;;  %256 = vst.msk [vmem:[%s757_s3 + $0x20] sm:$0xff] %vm19_vm2, %v239_v49  ;;  %v242_v59 = vadd.f32 %v365_v55, %v43_v46  ;;  %v250_v0 = vadd.f32 %v373_v60, %v51_v51 }
  0xd4   :  { %320 = vst.msk [vmem:[%s757_s3 + $0x50] sm:$0xff] %vm19_vm2, %v304_v52  ;;  %v302_v62 = vadd.f32 %v563_v36, %v279_v58  ;;  %v274_v63 = vld [vmem:[%s757_s3 + $0x18] sm:$0xff]  ;;  %264 = vst.msk [vmem:[%s757_s3 + $0x60] sm:$0xff] %vm19_vm2, %v247_v54  ;;  %v191_v1 = vpop.f32.mrf.mxu0  ;;  %v223_v5 = vpop.f32.mrf.mxu1 }
  0xd5   :  { %310 = vst.msk [vmem:[%s757_s3] sm:$0xff] %vm19_vm2, %v294_v57  ;;  %v297_v2 = vadd.f32 %v563_v36, %v274_v63  ;;  %v282_v3 = vld [vmem:[%s757_s3 + $0x58] sm:$0xff]  ;;  %259 = vst.msk [vmem:[%s757_s3 + $0x38] sm:$0xff] %vm19_vm2, %v242_v59  ;;  %v240_v4 = vadd.f32 %v191_v1, %v41_v56  ;;  %v248_v8 = vadd.f32 %v223_v5, %v49_v61 }
  0xd6   :  { %318 = vst.msk [vmem:[%s757_s3 + $0x40] sm:$0xff] %vm19_vm2, %v302_v62  ;;  %v305_v6 = vadd.f32 %v563_v36, %v282_v3  ;;  %v272_v7 = vld [vmem:[%s757_s3 + $0x8] sm:$0xff]  ;;  %267 = vst.msk [vmem:[%s757_s3 + $0x78] sm:$0xff] %vm19_vm2, %v250_v0 }
  0xd7   :  { %313 = vst.msk [vmem:[%s757_s3 + $0x18] sm:$0xff] %vm19_vm2, %v297_v2  ;;  %v295_v9 = vadd.f32 %v563_v36, %v272_v7  ;;  %v280_v10 = vld [vmem:[%s757_s3 + $0x48] sm:$0xff]  ;;  %257 = vst.msk [vmem:[%s757_s3 + $0x28] sm:$0xff] %vm19_vm2, %v240_v4 }
  0xd8   :  { %321 = vst.msk [vmem:[%s757_s3 + $0x58] sm:$0xff] %vm19_vm2, %v305_v6  ;;  %v303_v11 = vadd.f32 %v563_v36, %v280_v10  ;;  %v277_v12 = vld [vmem:[%s757_s3 + $0x30] sm:$0xff]  ;;  %265 = vst.msk [vmem:[%s757_s3 + $0x68] sm:$0xff] %vm19_vm2, %v248_v8 }
  0xd9   :  { %311 = vst.msk [vmem:[%s757_s3 + $0x8] sm:$0xff] %vm19_vm2, %v295_v9  ;;  %v300_v13 = vadd.f32 %v563_v36, %v277_v12  ;;  %v285_v14 = vld [vmem:[%s757_s3 + $0x70] sm:$0xff] }
  0xda   :  { %319 = vst.msk [vmem:[%s757_s3 + $0x48] sm:$0xff] %vm19_vm2, %v303_v11  ;;  %v308_v15 = vadd.f32 %v563_v36, %v285_v14  ;;  %v275_v16 = vld [vmem:[%s757_s3 + $0x20] sm:$0xff] }
  0xdb   :  { %316 = vst.msk [vmem:[%s757_s3 + $0x30] sm:$0xff] %vm19_vm2, %v300_v13  ;;  %v298_v17 = vadd.f32 %v563_v36, %v275_v16  ;;  %v283_v18 = vld [vmem:[%s757_s3 + $0x60] sm:$0xff] }
  0xdc   :  { %324 = vst.msk [vmem:[%s757_s3 + $0x70] sm:$0xff] %vm19_vm2, %v308_v15  ;;  %v306_v19 = vadd.f32 %v563_v36, %v283_v18  ;;  %v278_v20 = vld [vmem:[%s757_s3 + $0x38] sm:$0xff] }
  0xdd   :  { %314 = vst.msk [vmem:[%s757_s3 + $0x20] sm:$0xff] %vm19_vm2, %v298_v17  ;;  %v301_v21 = vadd.f32 %v563_v36, %v278_v20  ;;  %v286_v22 = vld [vmem:[%s757_s3 + $0x78] sm:$0xff] }
  0xde   :  { %322 = vst.msk [vmem:[%s757_s3 + $0x60] sm:$0xff] %vm19_vm2, %v306_v19  ;;  %v309_v23 = vadd.f32 %v563_v36, %v286_v22  ;;  %v276_v24 = vld [vmem:[%s757_s3 + $0x28] sm:$0xff] }
  0xdf   :  { %317 = vst.msk [vmem:[%s757_s3 + $0x38] sm:$0xff] %vm19_vm2, %v301_v21  ;;  %v299_v25 = vadd.f32 %v563_v36, %v276_v24  ;;  %v284_v26 = vld [vmem:[%s757_s3 + $0x68] sm:$0xff] }
  0xe0   :  { %325 = vst.msk [vmem:[%s757_s3 + $0x78] sm:$0xff] %vm19_vm2, %v309_v23  ;;  %v307_v27 = vadd.f32 %v563_v36, %v284_v26 }
  0xe1   :  { %315 = vst.msk [vmem:[%s757_s3 + $0x28] sm:$0xff] %vm19_vm2, %v299_v25 }
  0xe2   :  { %323 = vst.msk [vmem:[%s757_s3 + $0x68] sm:$0xff] %vm19_vm2, %v307_v27 }

</bundles_post_ra>
